<compile_context>
chip_gen: v7x
topology: tpu7x:2x2x1
jax: 0.10.0
libtpu: 0.0.40
codegen_flags: <defaults>
</compile_context>

<pallas_src>
import functools

import numpy as np
import jax
import jax.numpy as jnp
from jax import lax
from jax.experimental import pallas as pl
from jax.experimental.pallas import tpu as pltpu

K = 3                      # conv kernel size
PAD = 1                    # conv padding
CENTER = PAD * K + PAD     # flat index of the (kd=1, kh=1) tap
EPS = 1e-5


def _resunit3d_kernel(x_ref, wb1_ref, wctr_ref, b1_ref, wb2_ref, bfin_ref,
                      out_ref, xslab_ref, xflat_ref, h1slab_ref, hflat_ref):
    """One (batch element, D-tile) per grid step.

    Layouts (W and C folded into the lane dim):
      x_ref     : (1, D, H, WCi)      bf16   whole batch element (resident across d)
      wb1_ref   : (8, WCi, WCo)       bf16   off-center conv1 taps, BN1 scale folded
      wctr_ref  : (WCi, 2*WCo)        bf16   [conv1 center tap | 1x1x1 shortcut]
      b1_ref    : (1, WCo)            f32    BN1 bias
      wb2_ref   : (9, WCo, WCo)       bf16   conv2 taps, BN2 scale folded
      bfin_ref  : (1, WCo)            f32    BN2 bias + shortcut-BN bias
      out_ref   : (1, Td*H, WCo)      f32
      xslab_ref : (Td+4, H+2, WCi)    bf16   x tile + 2-plane D halo, zero (D,H) halo
      xflat_ref : ((Td+4)*H, WCi)     bf16   per-kh flattened conv1 LHS
      h1slab_ref: (Td+2, H+2, WCo)    bf16   h1 tile + 1-plane D halo, zero (D,H) halo
      hflat_ref : ((Td+2)*H, WCo)     bf16   per-kh flattened conv2 LHS
    """
    f32, bf16 = jnp.float32, jnp.bfloat16
    _, D, H, WCi = x_ref.shape
    Pslab, Hp, _ = xslab_ref.shape
    P1, _, WCo = h1slab_ref.shape
    Td = Pslab - 4                  # output planes per step
    M1 = P1 * H                     # rows of h1 computed (tile + 1-plane halo)
    M2 = Td * H                     # output rows of this tile

    d = pl.program_id(1)
    nd = pl.num_programs(1)
    d0 = d * Td

    # ---- stage the x tile (+2-plane D halo) into the padded bf16 scratch -------
    xslab_ref[:, 0:1, :] = jnp.zeros((Pslab, 1, WCi), bf16)          # H halo rows
    xslab_ref[:, Hp - 1:Hp, :] = jnp.zeros((Pslab, 1, WCi), bf16)
    xslab_ref[2:2 + Td, 1:1 + H, :] = x_ref[0, pl.ds(d0, Td), :, :]  # tile planes

    @pl.when(d > 0)
    def _():                                                          # leading halo
        xslab_ref[0:2, 1:1 + H, :] = x_ref[0, pl.ds(d0 - 2, 2), :, :]

    @pl.when(d == 0)
    def _():
        xslab_ref[0:2, 1:1 + H, :] = jnp.zeros((2, H, WCi), bf16)

    @pl.when(d < nd - 1)
    def _():                                                          # trailing halo
        xslab_ref[Td + 2:Td + 4, 1:1 + H, :] = x_ref[0, pl.ds(d0 + Td, 2), :, :]

    @pl.when(d == nd - 1)
    def _():
        xslab_ref[Td + 2:Td + 4, 1:1 + H, :] = jnp.zeros((2, H, WCi), bf16)

    def stage_flat(src_ref, flat_ref, kh):
        # flat[p*H:(p+1)*H, :] = src[p, kh:kh+H, :] -- plain 2-D block copies,
        # done once per kh and reused by the three kd row windows.
        for p in range(src_ref.shape[0]):
            flat_ref[p * H:(p + 1) * H, :] = src_ref[p, kh:kh + H, :]

    # ---- conv1 (3x3x3) over Td+2 planes + fused 1x1x1 projection shortcut ------
    acc1 = None
    res = None
    for kh in range(K):
        stage_flat(xslab_ref, xflat_ref, kh)
        for kd in range(K):
            lhs = xflat_ref[kd * H:kd * H + M1, :]          # contiguous row window
            if kd == PAD and kh == PAD:
                # center tap + shortcut share one (M1, WCi) @ (WCi, 2*WCo) matmul
                both = jnp.dot(lhs, wctr_ref[...], preferred_element_type=f32)
                part = both[:, :WCo]
                res = both[H:H + M2, WCo:]                  # shortcut rows (tile)
            else:
                t = kd * K + kh
                part = jnp.dot(lhs, wb1_ref[t - 1 if t > CENTER else t],
                               preferred_element_type=f32)
            acc1 = part if acc1 is None else acc1 + part

    # bn1 (scale folded into wb1) + ReLU in f32; cast once when staging for conv2.
    h1 = jnp.maximum(acc1 + b1_ref[...], 0.0)               # (M1, WCo) f32

    # ---- stage h1 (+zero halo) into the second padded bf16 scratch --------------
    h1slab_ref[:, 0:1, :] = jnp.zeros((P1, 1, WCo), bf16)
    h1slab_ref[:, Hp - 1:Hp, :] = jnp.zeros((P1, 1, WCo), bf16)
    h1slab_ref[:, 1:1 + H, :] = h1.reshape(P1, H, WCo).astype(bf16)

    @pl.when(d == 0)            # conv2's zero padding at the volume D edges
    def _():
        h1slab_ref[0:1, 1:1 + H, :] = jnp.zeros((1, H, WCo), bf16)

    @pl.when(d == nd - 1)
    def _():
        h1slab_ref[P1 - 1:P1, 1:1 + H, :] = jnp.zeros((1, H, WCo), bf16)

    # ---- conv2 (3x3x3); the shortcut initializes the accumulator ----------------
    acc2 = res
    for kh in range(K):
        stage_flat(h1slab_ref, hflat_ref, kh)
        for kd in range(K):
            lhs = hflat_ref[kd * H:kd * H + M2, :]
            acc2 = acc2 + jnp.dot(lhs, wb2_ref[kd * K + kh],
                                  preferred_element_type=f32)

    # bn2 + shortcut-bn biases (combined) + final ReLU.
    out = jnp.maximum(acc2 + bfin_ref[...], 0.0)            # (M2, WCo) f32
    out_ref[...] = out[None, :, :].astype(out_ref.dtype)


# ---------------------- band-weight construction (wrapper) --------------------
def _band_selector(W):
    """sel[kw, wi, wo] = 1 iff input column wi feeds output column wo via tap kw."""
    sel = np.zeros((K, W, W), np.float32)
    for kw in range(K):
        for wo in range(W):
            wi = wo + kw - PAD
            if 0 <= wi < W:
                sel[kw, wi, wo] = 1.0
    return jnp.asarray(sel)


def _band_conv_weights(w, W):
    """(3,3,3,Ci,Co) -> (9, W*Ci, W*Co), banded along W (kw + W zero-pad baked in)."""
    sel = _band_selector(W)
    Ci, Co = w.shape[3], w.shape[4]
    band = jnp.einsum("kio,dhkcf->dhicof", sel, w)           # (3,3,W,Ci,W,Co)
    return band.reshape(K * K, W * Ci, W * Co)


def _band_pointwise_weight(w, W):
    """(Ci,Co) 1x1x1 conv -> block-diagonal (W*Ci, W*Co)."""
    Ci, Co = w.shape
    band = jnp.einsum("io,cf->icof", jnp.eye(W, dtype=w.dtype), w)
    return band.reshape(W * Ci, W * Co)


def _pick_d_tile(D, H, d_tile, target_rows=256):
    """D tile that divides D, keeps (tile*H) % 8 == 0 and tile >= 2 (else whole D)."""
    if d_tile is None:
        d_tile = max(2, -(-target_rows // H))     # aim for >=256-row matmuls
    d_tile = max(2, min(int(d_tile), D))
    while d_tile > 1 and (D % d_tile != 0 or (d_tile * H) % 8 != 0):
        d_tile -= 1
    if d_tile < 2:
        d_tile = D                                # degenerate: one tile per element
    return d_tile


def _pad_in_channels(cin, w, lane=128):
    """Smallest cin_p >= cin with w*cin_p a multiple of 128 lanes (if cheap)."""
    if (w * cin) % lane == 0:
        return cin
    for cp in range(cin + 1, 2 * cin + lane // max(w, 1) + 1):
        if (w * cp) % lane == 0:
            return cp
    return cin                                    # not worth padding


@functools.partial(jax.jit, static_argnames=("d_tile",))
def resunit3d(x, p, d_tile=None):
    """x: (N, D, H, W, Cin) float32 (NDHWC). Returns (N, D, H, W, Cout) float32."""
    N, D, H, W, Cin = x.shape
    Cout = p["w1"].shape[-1]

    # TODO(synk): stride != 1 and training-mode (batch-stats) BatchNorm are not
    # implemented; BN is applied in inference mode with folded scale/bias.

    # Fold BN scales into the conv weights; biases are added in-kernel.
    w1 = p["w1"] * p["s1"]
    w2 = p["w2"] * p["s2"]
    if "wsc" in p:                                 # projection shortcut
        wsc = p["wsc"] * p["ssc"]
        bsc = p["bsc"]
    else:                                          # identity shortcut (Cin == Cout)
        wsc = jnp.eye(Cin, Cout, dtype=jnp.float32)
        bsc = jnp.zeros((Cout,), jnp.float32)

    # Zero-pad Cin so the folded lane dim W*Cin is a dense multiple of 128.
    Cin_p = _pad_in_channels(Cin, W)
    if Cin_p != Cin:
        pad = Cin_p - Cin
        x = jnp.pad(x, ((0, 0),) * 4 + ((0, pad),))
        w1 = jnp.pad(w1, ((0, 0),) * 3 + ((0, pad), (0, 0)))
        wsc = jnp.pad(wsc, ((0, pad), (0, 0)))
    WCi, WCo = W * Cin_p, W * Cout

    Td = _pick_d_tile(D, H, d_tile)
    ND = D // Td
    Hp = H + 2 * PAD

    # Banded weights: one matmul per (kd, kh) tap contracts over (kw, W, C);
    # the shortcut columns are concatenated onto the center tap (MXU N = 2*WCo).
    wb1 = _band_conv_weights(w1, W)                                   # (9, WCi, WCo)
    wscb = _band_pointwise_weight(wsc, W)                             # (WCi, WCo)
    wctr = jnp.concatenate([wb1[CENTER], wscb], axis=-1).astype(jnp.bfloat16)
    wb1_off = jnp.concatenate([wb1[:CENTER], wb1[CENTER + 1:]],
                              axis=0).astype(jnp.bfloat16)            # (8, WCi, WCo)
    wb2 = _band_conv_weights(w2, W).astype(jnp.bfloat16)              # (9, WCo, WCo)
    b1 = jnp.tile(p["b1"], W)[None, :].astype(jnp.float32)            # (1, WCo)
    bfin = jnp.tile(p["b2"] + bsc, W)[None, :].astype(jnp.float32)    # (1, WCo)

    # Lane-dense activation layout: fold (W, C) into lanes; ship in bf16.
    xb = x.reshape(N, D, H, WCi).astype(jnp.bfloat16)

    out = pl.pallas_call(
        _resunit3d_kernel,
        out_shape=jax.ShapeDtypeStruct((N, D * H, WCo), jnp.float32),
        grid=(N, ND),
        in_specs=[
            pl.BlockSpec((1, D, H, WCi), lambda n, d: (n, 0, 0, 0)),
            pl.BlockSpec((K * K - 1, WCi, WCo), lambda n, d: (0, 0, 0)),
            pl.BlockSpec((WCi, 2 * WCo), lambda n, d: (0, 0)),
            pl.BlockSpec((1, WCo), lambda n, d: (0, 0)),
            pl.BlockSpec((K * K, WCo, WCo), lambda n, d: (0, 0, 0)),
            pl.BlockSpec((1, WCo), lambda n, d: (0, 0)),
        ],
        out_specs=pl.BlockSpec((1, Td * H, WCo), lambda n, d: (n, d, 0)),
        scratch_shapes=[pltpu.VMEM((Td + 4, Hp, WCi), jnp.bfloat16),
                        pltpu.VMEM(((Td + 4) * H, WCi), jnp.bfloat16),
                        pltpu.VMEM((Td + 2, Hp, WCo), jnp.bfloat16),
                        pltpu.VMEM(((Td + 2) * H, WCo), jnp.bfloat16)],
        compiler_params=pltpu.CompilerParams(
            dimension_semantics=("parallel", "parallel"),
            # 48 MiB: room for big tiles on v5e/v6e (128 MiB VMEM) while staying
            # inside v7x's 64 MiB physical budget.
            vmem_limit_bytes=48 * 1024 * 1024),
    )(xb, wb1_off, wctr, b1, wb2, bfin)
    return out.reshape(N, D, H, W, Cout)


# ---------------- deterministic parameter init (synthetic) ----------------
def _bn_fold(key, c):
    kg, kb, km, kv = jax.random.split(key, 4)
    gamma = jax.random.uniform(kg, (c,), minval=0.5, maxval=1.5)
    beta = 0.1 * jax.random.normal(kb, (c,))
    mean = 0.1 * jax.random.normal(km, (c,))
    var = jax.random.uniform(kv, (c,), minval=0.5, maxval=1.5)
    scale = gamma / jnp.sqrt(var + EPS)
    bias = beta - mean * scale
    return scale.astype(jnp.float32), bias.astype(jnp.float32)


def init_params(key, cin, cout):
    k1, k2, k3, k4, k5, k6 = jax.random.split(key, 6)
    w1 = 0.1 * jax.random.normal(k1, (K, K, K, cin, cout), jnp.float32)
    w2 = 0.1 * jax.random.normal(k2, (K, K, K, cout, cout), jnp.float32)
    wsc = 0.1 * jax.random.normal(k3, (cin, cout), jnp.float32)
    s1, b1 = _bn_fold(k4, cout)
    s2, b2 = _bn_fold(k5, cout)
    ssc, bsc = _bn_fold(k6, cout)
    return dict(w1=w1, w2=w2, wsc=wsc, s1=s1, b1=b1, s2=s2, b2=b2,
                ssc=ssc, bsc=bsc)


# ---------------- pure-JAX reference (mirrors the kernel's bf16 casts) -------
def _conv3d_ref(x, w):
    return lax.conv_general_dilated(
        x, w, window_strides=(1, 1, 1), padding=[(PAD, PAD)] * 3,
        dimension_numbers=("NDHWC", "DHWIO", "NDHWC"))


def resunit3d_ref(x, p):
    bf = lambda a: a.astype(jnp.bfloat16).astype(jnp.float32)
    xq = bf(x)
    w1 = bf(p["w1"] * p["s1"])
    w2 = bf(p["w2"] * p["s2"])
    h = jnp.maximum(_conv3d_ref(xq, w1) + p["b1"], 0.0)
    h = bf(h)
    out = _conv3d_ref(h, w2) + p["b2"]
    if "wsc" in p:
        res = jnp.einsum("ndhwc,co->ndhwo", xq, bf(p["wsc"] * p["ssc"])) + p["bsc"]
    else:
        res = xq
    return jnp.maximum(out + res, 0.0)


if __name__ == "__main__":
    # stride=1, Cin != Cout -> projection shortcut.  W*Cout = 128 -> dense lanes.
    N, Cin, Cout, D, H, W = 2, 4, 8, 8, 8, 16
    key = jax.random.PRNGKey(0)
    kx, kp = jax.random.split(key)
    x = jax.random.normal(kx, (N, D, H, W, Cin), jnp.float32)   # NDHWC
    params = init_params(kp, Cin, Cout)

    ref = jax.block_until_ready(resunit3d_ref(x, params))

    # Test the tiled-D path (grid (2, 2), halo recompute) and the whole-volume
    # path (grid (2, 1)).
    for dt in (4, None):
        out = jax.block_until_ready(resunit3d(x, params, d_tile=dt))
        assert out.shape == (N, D, H, W, Cout)
        max_err = float(jnp.max(jnp.abs(out - ref)))
        assert jnp.allclose(out, ref, rtol=2e-2, atol=2e-2), (dt, max_err)

    print("KERNEL_OK")
</pallas_src>

<mosaic_0001>
module attributes {stable_mosaic.version = 11 : i64} {
  func.func @_resunit3d_kernel(%arg0: i32, %arg1: i32, %arg2: memref<1x8x8x128xbf16, #tpu.memory_space<vmem>>, %arg3: memref<8x128x128xbf16, #tpu.memory_space<vmem>>, %arg4: memref<128x256xbf16, #tpu.memory_space<vmem>>, %arg5: memref<1x128xf32, #tpu.memory_space<vmem>>, %arg6: memref<9x128x128xbf16, #tpu.memory_space<vmem>>, %arg7: memref<1x128xf32, #tpu.memory_space<vmem>>, %arg8: memref<1x32x128xf32, #tpu.memory_space<vmem>>, %arg9: memref<8x10x128xbf16, #tpu.memory_space<vmem>>, %arg10: memref<64x128xbf16, #tpu.memory_space<vmem>>, %arg11: memref<6x10x128xbf16, #tpu.memory_space<vmem>>, %arg12: memref<48x128xbf16, #tpu.memory_space<vmem>>) attributes {dimension_semantics = [#tpu.dimension_semantics<parallel>, #tpu.dimension_semantics<parallel>], iteration_bounds = array<i64: 2, 2>, scalar_prefetch = 0 : i64, scratch_operands = 4 : i64, tpu.core_type = #tpu.core_type<tc>, window_params = [{transform_indices = @transform_0, window_bounds = array<i64: 1, 8, 8, 128>}, {pipeline_mode = #tpu.pipeline_mode<synchronous>, transform_indices = @transform_1, window_bounds = array<i64: 8, 128, 128>}, {pipeline_mode = #tpu.pipeline_mode<synchronous>, transform_indices = @transform_2, window_bounds = array<i64: 128, 256>}, {pipeline_mode = #tpu.pipeline_mode<synchronous>, transform_indices = @transform_3, window_bounds = array<i64: 1, 128>}, {pipeline_mode = #tpu.pipeline_mode<synchronous>, transform_indices = @transform_4, window_bounds = array<i64: 9, 128, 128>}, {pipeline_mode = #tpu.pipeline_mode<synchronous>, transform_indices = @transform_5, window_bounds = array<i64: 1, 128>}, {transform_indices = @transform_6, window_bounds = array<i64: 1, 32, 128>}]} {
    %c4_i32 = arith.constant 4 : i32
    %0 = arith.muli %arg1, %c4_i32 : i32
    %cst = arith.constant 0.000000e+00 : bf16
    %1 = vector.broadcast %cst : bf16 to vector<8x1x128xbf16>
    %c0 = arith.constant 0 : index
    %c0_0 = arith.constant 0 : index
    %c0_1 = arith.constant 0 : index
    %2 = vector.load %arg9[%c0, %c0_0, %c0_1] : memref<8x10x128xbf16, #tpu.memory_space<vmem>>, vector<8x1x128xbf16>
    tpu.vector_store %arg9[%c0, %c0_0, %c0_1], %1 {strides = array<i32>} : memref<8x10x128xbf16, #tpu.memory_space<vmem>>, vector<8x1x128xbf16>,
    %cst_2 = arith.constant 0.000000e+00 : bf16
    %3 = vector.broadcast %cst_2 : bf16 to vector<8x1x128xbf16>
    %c0_3 = arith.constant 0 : index
    %c9 = arith.constant 9 : index
    %c0_4 = arith.constant 0 : index
    %4 = vector.load %arg9[%c0_3, %c9, %c0_4] : memref<8x10x128xbf16, #tpu.memory_space<vmem>>, vector<8x1x128xbf16>
    tpu.vector_store %arg9[%c0_3, %c9, %c0_4], %3 {strides = array<i32>} : memref<8x10x128xbf16, #tpu.memory_space<vmem>>, vector<8x1x128xbf16>,
    %c0_5 = arith.constant 0 : index
    %5 = arith.index_cast %0 : i32 to index
    %c0_6 = arith.constant 0 : index
    %c0_7 = arith.constant 0 : index
    %6 = vector.load %arg2[%c0_5, %5, %c0_6, %c0_7] : memref<1x8x8x128xbf16, #tpu.memory_space<vmem>>, vector<1x4x8x128xbf16>
    %7 = vector.shape_cast %6 : vector<1x4x8x128xbf16> to vector<4x8x128xbf16>
    %c2 = arith.constant 2 : index
    %c1 = arith.constant 1 : index
    %c0_8 = arith.constant 0 : index
    %8 = vector.load %arg9[%c2, %c1, %c0_8] : memref<8x10x128xbf16, #tpu.memory_space<vmem>>, vector<4x8x128xbf16>
    tpu.vector_store %arg9[%c2, %c1, %c0_8], %7 {strides = array<i32>} : memref<8x10x128xbf16, #tpu.memory_space<vmem>>, vector<4x8x128xbf16>,
    %c0_i32 = arith.constant 0 : i32
    %9 = arith.cmpi sgt, %arg1, %c0_i32 : i32
    %10 = arith.extui %9 : i1 to i32
    %c0_i32_9 = arith.constant 0 : i32
    %11 = arith.cmpi ne, %10, %c0_i32_9 : i32
    scf.if %11 {
      %c2_i32 = arith.constant 2 : i32
      %262 = arith.subi %0, %c2_i32 : i32
      %c0_344 = arith.constant 0 : index
      %263 = arith.index_cast %262 : i32 to index
      %c0_345 = arith.constant 0 : index
      %c0_346 = arith.constant 0 : index
      %264 = vector.load %arg2[%c0_344, %263, %c0_345, %c0_346] : memref<1x8x8x128xbf16, #tpu.memory_space<vmem>>, vector<1x2x8x128xbf16>
      %265 = vector.shape_cast %264 : vector<1x2x8x128xbf16> to vector<2x8x128xbf16>
      %c0_347 = arith.constant 0 : index
      %c1_348 = arith.constant 1 : index
      %c0_349 = arith.constant 0 : index
      %266 = vector.load %arg9[%c0_347, %c1_348, %c0_349] : memref<8x10x128xbf16, #tpu.memory_space<vmem>>, vector<2x8x128xbf16>
      tpu.vector_store %arg9[%c0_347, %c1_348, %c0_349], %265 {strides = array<i32>} : memref<8x10x128xbf16, #tpu.memory_space<vmem>>, vector<2x8x128xbf16>,
    } else {
    }
    %c0_i32_10 = arith.constant 0 : i32
    %12 = arith.cmpi eq, %arg1, %c0_i32_10 : i32
    %13 = arith.extui %12 : i1 to i32
    %c0_i32_11 = arith.constant 0 : i32
    %14 = arith.cmpi ne, %13, %c0_i32_11 : i32
    scf.if %14 {
      %cst_344 = arith.constant 0.000000e+00 : bf16
      %262 = vector.broadcast %cst_344 : bf16 to vector<2x8x128xbf16>
      %c0_345 = arith.constant 0 : index
      %c1_346 = arith.constant 1 : index
      %c0_347 = arith.constant 0 : index
      %263 = vector.load %arg9[%c0_345, %c1_346, %c0_347] : memref<8x10x128xbf16, #tpu.memory_space<vmem>>, vector<2x8x128xbf16>
      tpu.vector_store %arg9[%c0_345, %c1_346, %c0_347], %262 {strides = array<i32>} : memref<8x10x128xbf16, #tpu.memory_space<vmem>>, vector<2x8x128xbf16>,
    } else {
    }
    %c1_i32 = arith.constant 1 : i32
    %15 = arith.cmpi slt, %arg1, %c1_i32 : i32
    %16 = arith.extui %15 : i1 to i32
    %c0_i32_12 = arith.constant 0 : i32
    %17 = arith.cmpi ne, %16, %c0_i32_12 : i32
    scf.if %17 {
      %c4_i32_344 = arith.constant 4 : i32
      %262 = arith.addi %0, %c4_i32_344 : i32
      %c0_345 = arith.constant 0 : index
      %263 = arith.index_cast %262 : i32 to index
      %c0_346 = arith.constant 0 : index
      %c0_347 = arith.constant 0 : index
      %264 = vector.load %arg2[%c0_345, %263, %c0_346, %c0_347] : memref<1x8x8x128xbf16, #tpu.memory_space<vmem>>, vector<1x2x8x128xbf16>
      %265 = vector.shape_cast %264 : vector<1x2x8x128xbf16> to vector<2x8x128xbf16>
      %c6_348 = arith.constant 6 : index
      %c1_349 = arith.constant 1 : index
      %c0_350 = arith.constant 0 : index
      %266 = vector.load %arg9[%c6_348, %c1_349, %c0_350] : memref<8x10x128xbf16, #tpu.memory_space<vmem>>, vector<2x8x128xbf16>
      tpu.vector_store %arg9[%c6_348, %c1_349, %c0_350], %265 {strides = array<i32>} : memref<8x10x128xbf16, #tpu.memory_space<vmem>>, vector<2x8x128xbf16>,
    } else {
    }
    %c1_i32_13 = arith.constant 1 : i32
    %18 = arith.cmpi eq, %arg1, %c1_i32_13 : i32
    %19 = arith.extui %18 : i1 to i32
    %c0_i32_14 = arith.constant 0 : i32
    %20 = arith.cmpi ne, %19, %c0_i32_14 : i32
    scf.if %20 {
      %cst_344 = arith.constant 0.000000e+00 : bf16
      %262 = vector.broadcast %cst_344 : bf16 to vector<2x8x128xbf16>
      %c6_345 = arith.constant 6 : index
      %c1_346 = arith.constant 1 : index
      %c0_347 = arith.constant 0 : index
      %263 = vector.load %arg9[%c6_345, %c1_346, %c0_347] : memref<8x10x128xbf16, #tpu.memory_space<vmem>>, vector<2x8x128xbf16>
      tpu.vector_store %arg9[%c6_345, %c1_346, %c0_347], %262 {strides = array<i32>} : memref<8x10x128xbf16, #tpu.memory_space<vmem>>, vector<2x8x128xbf16>,
    } else {
    }
    %c0_15 = arith.constant 0 : index
    %c0_16 = arith.constant 0 : index
    %c0_17 = arith.constant 0 : index
    %21 = vector.load %arg9[%c0_15, %c0_16, %c0_17] : memref<8x10x128xbf16, #tpu.memory_space<vmem>>, vector<1x8x128xbf16>
    %22 = vector.shape_cast %21 : vector<1x8x128xbf16> to vector<8x128xbf16>
    %c0_18 = arith.constant 0 : index
    %c0_19 = arith.constant 0 : index
    %23 = vector.load %arg10[%c0_18, %c0_19] : memref<64x128xbf16, #tpu.memory_space<vmem>>, vector<8x128xbf16>
    tpu.vector_store %arg10[%c0_18, %c0_19], %22 {strides = array<i32>} : memref<64x128xbf16, #tpu.memory_space<vmem>>, vector<8x128xbf16>,
    %c1_20 = arith.constant 1 : index
    %c0_21 = arith.constant 0 : index
    %c0_22 = arith.constant 0 : index
    %24 = vector.load %arg9[%c1_20, %c0_21, %c0_22] : memref<8x10x128xbf16, #tpu.memory_space<vmem>>, vector<1x8x128xbf16>
    %25 = vector.shape_cast %24 : vector<1x8x128xbf16> to vector<8x128xbf16>
    %c8 = arith.constant 8 : index
    %c0_23 = arith.constant 0 : index
    %26 = vector.load %arg10[%c8, %c0_23] : memref<64x128xbf16, #tpu.memory_space<vmem>>, vector<8x128xbf16>
    tpu.vector_store %arg10[%c8, %c0_23], %25 {strides = array<i32>} : memref<64x128xbf16, #tpu.memory_space<vmem>>, vector<8x128xbf16>,
    %c2_24 = arith.constant 2 : index
    %c0_25 = arith.constant 0 : index
    %c0_26 = arith.constant 0 : index
    %27 = vector.load %arg9[%c2_24, %c0_25, %c0_26] : memref<8x10x128xbf16, #tpu.memory_space<vmem>>, vector<1x8x128xbf16>
    %28 = vector.shape_cast %27 : vector<1x8x128xbf16> to vector<8x128xbf16>
    %c16 = arith.constant 16 : index
    %c0_27 = arith.constant 0 : index
    %29 = vector.load %arg10[%c16, %c0_27] : memref<64x128xbf16, #tpu.memory_space<vmem>>, vector<8x128xbf16>
    tpu.vector_store %arg10[%c16, %c0_27], %28 {strides = array<i32>} : memref<64x128xbf16, #tpu.memory_space<vmem>>, vector<8x128xbf16>,
    %c3 = arith.constant 3 : index
    %c0_28 = arith.constant 0 : index
    %c0_29 = arith.constant 0 : index
    %30 = vector.load %arg9[%c3, %c0_28, %c0_29] : memref<8x10x128xbf16, #tpu.memory_space<vmem>>, vector<1x8x128xbf16>
    %31 = vector.shape_cast %30 : vector<1x8x128xbf16> to vector<8x128xbf16>
    %c24 = arith.constant 24 : index
    %c0_30 = arith.constant 0 : index
    %32 = vector.load %arg10[%c24, %c0_30] : memref<64x128xbf16, #tpu.memory_space<vmem>>, vector<8x128xbf16>
    tpu.vector_store %arg10[%c24, %c0_30], %31 {strides = array<i32>} : memref<64x128xbf16, #tpu.memory_space<vmem>>, vector<8x128xbf16>,
    %c4 = arith.constant 4 : index
    %c0_31 = arith.constant 0 : index
    %c0_32 = arith.constant 0 : index
    %33 = vector.load %arg9[%c4, %c0_31, %c0_32] : memref<8x10x128xbf16, #tpu.memory_space<vmem>>, vector<1x8x128xbf16>
    %34 = vector.shape_cast %33 : vector<1x8x128xbf16> to vector<8x128xbf16>
    %c32 = arith.constant 32 : index
    %c0_33 = arith.constant 0 : index
    %35 = vector.load %arg10[%c32, %c0_33] : memref<64x128xbf16, #tpu.memory_space<vmem>>, vector<8x128xbf16>
    tpu.vector_store %arg10[%c32, %c0_33], %34 {strides = array<i32>} : memref<64x128xbf16, #tpu.memory_space<vmem>>, vector<8x128xbf16>,
    %c5 = arith.constant 5 : index
    %c0_34 = arith.constant 0 : index
    %c0_35 = arith.constant 0 : index
    %36 = vector.load %arg9[%c5, %c0_34, %c0_35] : memref<8x10x128xbf16, #tpu.memory_space<vmem>>, vector<1x8x128xbf16>
    %37 = vector.shape_cast %36 : vector<1x8x128xbf16> to vector<8x128xbf16>
    %c40 = arith.constant 40 : index
    %c0_36 = arith.constant 0 : index
    %38 = vector.load %arg10[%c40, %c0_36] : memref<64x128xbf16, #tpu.memory_space<vmem>>, vector<8x128xbf16>
    tpu.vector_store %arg10[%c40, %c0_36], %37 {strides = array<i32>} : memref<64x128xbf16, #tpu.memory_space<vmem>>, vector<8x128xbf16>,
    %c6 = arith.constant 6 : index
    %c0_37 = arith.constant 0 : index
    %c0_38 = arith.constant 0 : index
    %39 = vector.load %arg9[%c6, %c0_37, %c0_38] : memref<8x10x128xbf16, #tpu.memory_space<vmem>>, vector<1x8x128xbf16>
    %40 = vector.shape_cast %39 : vector<1x8x128xbf16> to vector<8x128xbf16>
    %c48 = arith.constant 48 : index
    %c0_39 = arith.constant 0 : index
    %41 = vector.load %arg10[%c48, %c0_39] : memref<64x128xbf16, #tpu.memory_space<vmem>>, vector<8x128xbf16>
    tpu.vector_store %arg10[%c48, %c0_39], %40 {strides = array<i32>} : memref<64x128xbf16, #tpu.memory_space<vmem>>, vector<8x128xbf16>,
    %c7 = arith.constant 7 : index
    %c0_40 = arith.constant 0 : index
    %c0_41 = arith.constant 0 : index
    %42 = vector.load %arg9[%c7, %c0_40, %c0_41] : memref<8x10x128xbf16, #tpu.memory_space<vmem>>, vector<1x8x128xbf16>
    %43 = vector.shape_cast %42 : vector<1x8x128xbf16> to vector<8x128xbf16>
    %c56 = arith.constant 56 : index
    %c0_42 = arith.constant 0 : index
    %44 = vector.load %arg10[%c56, %c0_42] : memref<64x128xbf16, #tpu.memory_space<vmem>>, vector<8x128xbf16>
    tpu.vector_store %arg10[%c56, %c0_42], %43 {strides = array<i32>} : memref<64x128xbf16, #tpu.memory_space<vmem>>, vector<8x128xbf16>,
    %c0_43 = arith.constant 0 : index
    %c0_44 = arith.constant 0 : index
    %45 = vector.load %arg10[%c0_43, %c0_44] : memref<64x128xbf16, #tpu.memory_space<vmem>>, vector<48x128xbf16>
    %c0_45 = arith.constant 0 : index
    %c0_46 = arith.constant 0 : index
    %c0_47 = arith.constant 0 : index
    %46 = vector.load %arg3[%c0_45, %c0_46, %c0_47] : memref<8x128x128xbf16, #tpu.memory_space<vmem>>, vector<1x128x128xbf16>
    %47 = vector.shape_cast %46 : vector<1x128x128xbf16> to vector<128x128xbf16>
    %cst_48 = arith.constant dense<0.000000e+00> : vector<48x128xf32>
    %48 = tpu.matmul %45, %47, %cst_48 {dimension_numbers = #tpu.dot_dimension_numbers<[1], [0], [0], [1], [0, 0, 1, 1], [], []>} : vector<48x128xbf16>, vector<128x128xbf16>, vector<48x128xf32> -> vector<48x128xf32>
    %c8_49 = arith.constant 8 : index
    %c0_50 = arith.constant 0 : index
    %49 = vector.load %arg10[%c8_49, %c0_50] : memref<64x128xbf16, #tpu.memory_space<vmem>>, vector<48x128xbf16>
    %c3_51 = arith.constant 3 : index
    %c0_52 = arith.constant 0 : index
    %c0_53 = arith.constant 0 : index
    %50 = vector.load %arg3[%c3_51, %c0_52, %c0_53] : memref<8x128x128xbf16, #tpu.memory_space<vmem>>, vector<1x128x128xbf16>
    %51 = vector.shape_cast %50 : vector<1x128x128xbf16> to vector<128x128xbf16>
    %cst_54 = arith.constant dense<0.000000e+00> : vector<48x128xf32>
    %52 = tpu.matmul %49, %51, %cst_54 {dimension_numbers = #tpu.dot_dimension_numbers<[1], [0], [0], [1], [0, 0, 1, 1], [], []>} : vector<48x128xbf16>, vector<128x128xbf16>, vector<48x128xf32> -> vector<48x128xf32>
    %53 = arith.addf %48, %52 : vector<48x128xf32>
    %c16_55 = arith.constant 16 : index
    %c0_56 = arith.constant 0 : index
    %54 = vector.load %arg10[%c16_55, %c0_56] : memref<64x128xbf16, #tpu.memory_space<vmem>>, vector<48x128xbf16>
    %c5_57 = arith.constant 5 : index
    %c0_58 = arith.constant 0 : index
    %c0_59 = arith.constant 0 : index
    %55 = vector.load %arg3[%c5_57, %c0_58, %c0_59] : memref<8x128x128xbf16, #tpu.memory_space<vmem>>, vector<1x128x128xbf16>
    %56 = vector.shape_cast %55 : vector<1x128x128xbf16> to vector<128x128xbf16>
    %cst_60 = arith.constant dense<0.000000e+00> : vector<48x128xf32>
    %57 = tpu.matmul %54, %56, %cst_60 {dimension_numbers = #tpu.dot_dimension_numbers<[1], [0], [0], [1], [0, 0, 1, 1], [], []>} : vector<48x128xbf16>, vector<128x128xbf16>, vector<48x128xf32> -> vector<48x128xf32>
    %58 = arith.addf %53, %57 : vector<48x128xf32>
    %c0_61 = arith.constant 0 : index
    %c1_62 = arith.constant 1 : index
    %c0_63 = arith.constant 0 : index
    %59 = vector.load %arg9[%c0_61, %c1_62, %c0_63] : memref<8x10x128xbf16, #tpu.memory_space<vmem>>, vector<1x8x128xbf16>
    %60 = vector.shape_cast %59 : vector<1x8x128xbf16> to vector<8x128xbf16>
    %c0_64 = arith.constant 0 : index
    %c0_65 = arith.constant 0 : index
    %61 = vector.load %arg10[%c0_64, %c0_65] : memref<64x128xbf16, #tpu.memory_space<vmem>>, vector<8x128xbf16>
    tpu.vector_store %arg10[%c0_64, %c0_65], %60 {strides = array<i32>} : memref<64x128xbf16, #tpu.memory_space<vmem>>, vector<8x128xbf16>,
    %c1_66 = arith.constant 1 : index
    %c1_67 = arith.constant 1 : index
    %c0_68 = arith.constant 0 : index
    %62 = vector.load %arg9[%c1_66, %c1_67, %c0_68] : memref<8x10x128xbf16, #tpu.memory_space<vmem>>, vector<1x8x128xbf16>
    %63 = vector.shape_cast %62 : vector<1x8x128xbf16> to vector<8x128xbf16>
    %c8_69 = arith.constant 8 : index
    %c0_70 = arith.constant 0 : index
    %64 = vector.load %arg10[%c8_69, %c0_70] : memref<64x128xbf16, #tpu.memory_space<vmem>>, vector<8x128xbf16>
    tpu.vector_store %arg10[%c8_69, %c0_70], %63 {strides = array<i32>} : memref<64x128xbf16, #tpu.memory_space<vmem>>, vector<8x128xbf16>,
    %c2_71 = arith.constant 2 : index
    %c1_72 = arith.constant 1 : index
    %c0_73 = arith.constant 0 : index
    %65 = vector.load %arg9[%c2_71, %c1_72, %c0_73] : memref<8x10x128xbf16, #tpu.memory_space<vmem>>, vector<1x8x128xbf16>
    %66 = vector.shape_cast %65 : vector<1x8x128xbf16> to vector<8x128xbf16>
    %c16_74 = arith.constant 16 : index
    %c0_75 = arith.constant 0 : index
    %67 = vector.load %arg10[%c16_74, %c0_75] : memref<64x128xbf16, #tpu.memory_space<vmem>>, vector<8x128xbf16>
    tpu.vector_store %arg10[%c16_74, %c0_75], %66 {strides = array<i32>} : memref<64x128xbf16, #tpu.memory_space<vmem>>, vector<8x128xbf16>,
    %c3_76 = arith.constant 3 : index
    %c1_77 = arith.constant 1 : index
    %c0_78 = arith.constant 0 : index
    %68 = vector.load %arg9[%c3_76, %c1_77, %c0_78] : memref<8x10x128xbf16, #tpu.memory_space<vmem>>, vector<1x8x128xbf16>
    %69 = vector.shape_cast %68 : vector<1x8x128xbf16> to vector<8x128xbf16>
    %c24_79 = arith.constant 24 : index
    %c0_80 = arith.constant 0 : index
    %70 = vector.load %arg10[%c24_79, %c0_80] : memref<64x128xbf16, #tpu.memory_space<vmem>>, vector<8x128xbf16>
    tpu.vector_store %arg10[%c24_79, %c0_80], %69 {strides = array<i32>} : memref<64x128xbf16, #tpu.memory_space<vmem>>, vector<8x128xbf16>,
    %c4_81 = arith.constant 4 : index
    %c1_82 = arith.constant 1 : index
    %c0_83 = arith.constant 0 : index
    %71 = vector.load %arg9[%c4_81, %c1_82, %c0_83] : memref<8x10x128xbf16, #tpu.memory_space<vmem>>, vector<1x8x128xbf16>
    %72 = vector.shape_cast %71 : vector<1x8x128xbf16> to vector<8x128xbf16>
    %c32_84 = arith.constant 32 : index
    %c0_85 = arith.constant 0 : index
    %73 = vector.load %arg10[%c32_84, %c0_85] : memref<64x128xbf16, #tpu.memory_space<vmem>>, vector<8x128xbf16>
    tpu.vector_store %arg10[%c32_84, %c0_85], %72 {strides = array<i32>} : memref<64x128xbf16, #tpu.memory_space<vmem>>, vector<8x128xbf16>,
    %c5_86 = arith.constant 5 : index
    %c1_87 = arith.constant 1 : index
    %c0_88 = arith.constant 0 : index
    %74 = vector.load %arg9[%c5_86, %c1_87, %c0_88] : memref<8x10x128xbf16, #tpu.memory_space<vmem>>, vector<1x8x128xbf16>
    %75 = vector.shape_cast %74 : vector<1x8x128xbf16> to vector<8x128xbf16>
    %c40_89 = arith.constant 40 : index
    %c0_90 = arith.constant 0 : index
    %76 = vector.load %arg10[%c40_89, %c0_90] : memref<64x128xbf16, #tpu.memory_space<vmem>>, vector<8x128xbf16>
    tpu.vector_store %arg10[%c40_89, %c0_90], %75 {strides = array<i32>} : memref<64x128xbf16, #tpu.memory_space<vmem>>, vector<8x128xbf16>,
    %c6_91 = arith.constant 6 : index
    %c1_92 = arith.constant 1 : index
    %c0_93 = arith.constant 0 : index
    %77 = vector.load %arg9[%c6_91, %c1_92, %c0_93] : memref<8x10x128xbf16, #tpu.memory_space<vmem>>, vector<1x8x128xbf16>
    %78 = vector.shape_cast %77 : vector<1x8x128xbf16> to vector<8x128xbf16>
    %c48_94 = arith.constant 48 : index
    %c0_95 = arith.constant 0 : index
    %79 = vector.load %arg10[%c48_94, %c0_95] : memref<64x128xbf16, #tpu.memory_space<vmem>>, vector<8x128xbf16>
    tpu.vector_store %arg10[%c48_94, %c0_95], %78 {strides = array<i32>} : memref<64x128xbf16, #tpu.memory_space<vmem>>, vector<8x128xbf16>,
    %c7_96 = arith.constant 7 : index
    %c1_97 = arith.constant 1 : index
    %c0_98 = arith.constant 0 : index
    %80 = vector.load %arg9[%c7_96, %c1_97, %c0_98] : memref<8x10x128xbf16, #tpu.memory_space<vmem>>, vector<1x8x128xbf16>
    %81 = vector.shape_cast %80 : vector<1x8x128xbf16> to vector<8x128xbf16>
    %c56_99 = arith.constant 56 : index
    %c0_100 = arith.constant 0 : index
    %82 = vector.load %arg10[%c56_99, %c0_100] : memref<64x128xbf16, #tpu.memory_space<vmem>>, vector<8x128xbf16>
    tpu.vector_store %arg10[%c56_99, %c0_100], %81 {strides = array<i32>} : memref<64x128xbf16, #tpu.memory_space<vmem>>, vector<8x128xbf16>,
    %c0_101 = arith.constant 0 : index
    %c0_102 = arith.constant 0 : index
    %83 = vector.load %arg10[%c0_101, %c0_102] : memref<64x128xbf16, #tpu.memory_space<vmem>>, vector<48x128xbf16>
    %c1_103 = arith.constant 1 : index
    %c0_104 = arith.constant 0 : index
    %c0_105 = arith.constant 0 : index
    %84 = vector.load %arg3[%c1_103, %c0_104, %c0_105] : memref<8x128x128xbf16, #tpu.memory_space<vmem>>, vector<1x128x128xbf16>
    %85 = vector.shape_cast %84 : vector<1x128x128xbf16> to vector<128x128xbf16>
    %cst_106 = arith.constant dense<0.000000e+00> : vector<48x128xf32>
    %86 = tpu.matmul %83, %85, %cst_106 {dimension_numbers = #tpu.dot_dimension_numbers<[1], [0], [0], [1], [0, 0, 1, 1], [], []>} : vector<48x128xbf16>, vector<128x128xbf16>, vector<48x128xf32> -> vector<48x128xf32>
    %87 = arith.addf %58, %86 : vector<48x128xf32>
    %c8_107 = arith.constant 8 : index
    %c0_108 = arith.constant 0 : index
    %88 = vector.load %arg10[%c8_107, %c0_108] : memref<64x128xbf16, #tpu.memory_space<vmem>>, vector<48x128xbf16>
    %c0_109 = arith.constant 0 : index
    %c0_110 = arith.constant 0 : index
    %89 = vector.load %arg4[%c0_109, %c0_110] : memref<128x256xbf16, #tpu.memory_space<vmem>>, vector<128x256xbf16>
    %cst_111 = arith.constant dense<0.000000e+00> : vector<48x256xf32>
    %90 = tpu.matmul %88, %89, %cst_111 {dimension_numbers = #tpu.dot_dimension_numbers<[1], [0], [0], [1], [0, 0, 1, 1], [], []>} : vector<48x128xbf16>, vector<128x256xbf16>, vector<48x256xf32> -> vector<48x256xf32>
    %91 = vector.extract_strided_slice %90 {offsets = [0, 0], sizes = [48, 128], strides = [1, 1]} : vector<48x256xf32> to vector<48x128xf32>
    %92 = vector.extract_strided_slice %90 {offsets = [8, 128], sizes = [32, 128], strides = [1, 1]} : vector<48x256xf32> to vector<32x128xf32>
    %93 = arith.addf %87, %91 : vector<48x128xf32>
    %c16_112 = arith.constant 16 : index
    %c0_113 = arith.constant 0 : index
    %94 = vector.load %arg10[%c16_112, %c0_113] : memref<64x128xbf16, #tpu.memory_space<vmem>>, vector<48x128xbf16>
    %c6_114 = arith.constant 6 : index
    %c0_115 = arith.constant 0 : index
    %c0_116 = arith.constant 0 : index
    %95 = vector.load %arg3[%c6_114, %c0_115, %c0_116] : memref<8x128x128xbf16, #tpu.memory_space<vmem>>, vector<1x128x128xbf16>
    %96 = vector.shape_cast %95 : vector<1x128x128xbf16> to vector<128x128xbf16>
    %cst_117 = arith.constant dense<0.000000e+00> : vector<48x128xf32>
    %97 = tpu.matmul %94, %96, %cst_117 {dimension_numbers = #tpu.dot_dimension_numbers<[1], [0], [0], [1], [0, 0, 1, 1], [], []>} : vector<48x128xbf16>, vector<128x128xbf16>, vector<48x128xf32> -> vector<48x128xf32>
    %98 = arith.addf %93, %97 : vector<48x128xf32>
    %c0_118 = arith.constant 0 : index
    %c2_119 = arith.constant 2 : index
    %c0_120 = arith.constant 0 : index
    %99 = vector.load %arg9[%c0_118, %c2_119, %c0_120] : memref<8x10x128xbf16, #tpu.memory_space<vmem>>, vector<1x8x128xbf16>
    %100 = vector.shape_cast %99 : vector<1x8x128xbf16> to vector<8x128xbf16>
    %c0_121 = arith.constant 0 : index
    %c0_122 = arith.constant 0 : index
    %101 = vector.load %arg10[%c0_121, %c0_122] : memref<64x128xbf16, #tpu.memory_space<vmem>>, vector<8x128xbf16>
    tpu.vector_store %arg10[%c0_121, %c0_122], %100 {strides = array<i32>} : memref<64x128xbf16, #tpu.memory_space<vmem>>, vector<8x128xbf16>,
    %c1_123 = arith.constant 1 : index
    %c2_124 = arith.constant 2 : index
    %c0_125 = arith.constant 0 : index
    %102 = vector.load %arg9[%c1_123, %c2_124, %c0_125] : memref<8x10x128xbf16, #tpu.memory_space<vmem>>, vector<1x8x128xbf16>
    %103 = vector.shape_cast %102 : vector<1x8x128xbf16> to vector<8x128xbf16>
    %c8_126 = arith.constant 8 : index
    %c0_127 = arith.constant 0 : index
    %104 = vector.load %arg10[%c8_126, %c0_127] : memref<64x128xbf16, #tpu.memory_space<vmem>>, vector<8x128xbf16>
    tpu.vector_store %arg10[%c8_126, %c0_127], %103 {strides = array<i32>} : memref<64x128xbf16, #tpu.memory_space<vmem>>, vector<8x128xbf16>,
    %c2_128 = arith.constant 2 : index
    %c2_129 = arith.constant 2 : index
    %c0_130 = arith.constant 0 : index
    %105 = vector.load %arg9[%c2_128, %c2_129, %c0_130] : memref<8x10x128xbf16, #tpu.memory_space<vmem>>, vector<1x8x128xbf16>
    %106 = vector.shape_cast %105 : vector<1x8x128xbf16> to vector<8x128xbf16>
    %c16_131 = arith.constant 16 : index
    %c0_132 = arith.constant 0 : index
    %107 = vector.load %arg10[%c16_131, %c0_132] : memref<64x128xbf16, #tpu.memory_space<vmem>>, vector<8x128xbf16>
    tpu.vector_store %arg10[%c16_131, %c0_132], %106 {strides = array<i32>} : memref<64x128xbf16, #tpu.memory_space<vmem>>, vector<8x128xbf16>,
    %c3_133 = arith.constant 3 : index
    %c2_134 = arith.constant 2 : index
    %c0_135 = arith.constant 0 : index
    %108 = vector.load %arg9[%c3_133, %c2_134, %c0_135] : memref<8x10x128xbf16, #tpu.memory_space<vmem>>, vector<1x8x128xbf16>
    %109 = vector.shape_cast %108 : vector<1x8x128xbf16> to vector<8x128xbf16>
    %c24_136 = arith.constant 24 : index
    %c0_137 = arith.constant 0 : index
    %110 = vector.load %arg10[%c24_136, %c0_137] : memref<64x128xbf16, #tpu.memory_space<vmem>>, vector<8x128xbf16>
    tpu.vector_store %arg10[%c24_136, %c0_137], %109 {strides = array<i32>} : memref<64x128xbf16, #tpu.memory_space<vmem>>, vector<8x128xbf16>,
    %c4_138 = arith.constant 4 : index
    %c2_139 = arith.constant 2 : index
    %c0_140 = arith.constant 0 : index
    %111 = vector.load %arg9[%c4_138, %c2_139, %c0_140] : memref<8x10x128xbf16, #tpu.memory_space<vmem>>, vector<1x8x128xbf16>
    %112 = vector.shape_cast %111 : vector<1x8x128xbf16> to vector<8x128xbf16>
    %c32_141 = arith.constant 32 : index
    %c0_142 = arith.constant 0 : index
    %113 = vector.load %arg10[%c32_141, %c0_142] : memref<64x128xbf16, #tpu.memory_space<vmem>>, vector<8x128xbf16>
    tpu.vector_store %arg10[%c32_141, %c0_142], %112 {strides = array<i32>} : memref<64x128xbf16, #tpu.memory_space<vmem>>, vector<8x128xbf16>,
    %c5_143 = arith.constant 5 : index
    %c2_144 = arith.constant 2 : index
    %c0_145 = arith.constant 0 : index
    %114 = vector.load %arg9[%c5_143, %c2_144, %c0_145] : memref<8x10x128xbf16, #tpu.memory_space<vmem>>, vector<1x8x128xbf16>
    %115 = vector.shape_cast %114 : vector<1x8x128xbf16> to vector<8x128xbf16>
    %c40_146 = arith.constant 40 : index
    %c0_147 = arith.constant 0 : index
    %116 = vector.load %arg10[%c40_146, %c0_147] : memref<64x128xbf16, #tpu.memory_space<vmem>>, vector<8x128xbf16>
    tpu.vector_store %arg10[%c40_146, %c0_147], %115 {strides = array<i32>} : memref<64x128xbf16, #tpu.memory_space<vmem>>, vector<8x128xbf16>,
    %c6_148 = arith.constant 6 : index
    %c2_149 = arith.constant 2 : index
    %c0_150 = arith.constant 0 : index
    %117 = vector.load %arg9[%c6_148, %c2_149, %c0_150] : memref<8x10x128xbf16, #tpu.memory_space<vmem>>, vector<1x8x128xbf16>
    %118 = vector.shape_cast %117 : vector<1x8x128xbf16> to vector<8x128xbf16>
    %c48_151 = arith.constant 48 : index
    %c0_152 = arith.constant 0 : index
    %119 = vector.load %arg10[%c48_151, %c0_152] : memref<64x128xbf16, #tpu.memory_space<vmem>>, vector<8x128xbf16>
    tpu.vector_store %arg10[%c48_151, %c0_152], %118 {strides = array<i32>} : memref<64x128xbf16, #tpu.memory_space<vmem>>, vector<8x128xbf16>,
    %c7_153 = arith.constant 7 : index
    %c2_154 = arith.constant 2 : index
    %c0_155 = arith.constant 0 : index
    %120 = vector.load %arg9[%c7_153, %c2_154, %c0_155] : memref<8x10x128xbf16, #tpu.memory_space<vmem>>, vector<1x8x128xbf16>
    %121 = vector.shape_cast %120 : vector<1x8x128xbf16> to vector<8x128xbf16>
    %c56_156 = arith.constant 56 : index
    %c0_157 = arith.constant 0 : index
    %122 = vector.load %arg10[%c56_156, %c0_157] : memref<64x128xbf16, #tpu.memory_space<vmem>>, vector<8x128xbf16>
    tpu.vector_store %arg10[%c56_156, %c0_157], %121 {strides = array<i32>} : memref<64x128xbf16, #tpu.memory_space<vmem>>, vector<8x128xbf16>,
    %c0_158 = arith.constant 0 : index
    %c0_159 = arith.constant 0 : index
    %123 = vector.load %arg10[%c0_158, %c0_159] : memref<64x128xbf16, #tpu.memory_space<vmem>>, vector<48x128xbf16>
    %c2_160 = arith.constant 2 : index
    %c0_161 = arith.constant 0 : index
    %c0_162 = arith.constant 0 : index
    %124 = vector.load %arg3[%c2_160, %c0_161, %c0_162] : memref<8x128x128xbf16, #tpu.memory_space<vmem>>, vector<1x128x128xbf16>
    %125 = vector.shape_cast %124 : vector<1x128x128xbf16> to vector<128x128xbf16>
    %cst_163 = arith.constant dense<0.000000e+00> : vector<48x128xf32>
    %126 = tpu.matmul %123, %125, %cst_163 {dimension_numbers = #tpu.dot_dimension_numbers<[1], [0], [0], [1], [0, 0, 1, 1], [], []>} : vector<48x128xbf16>, vector<128x128xbf16>, vector<48x128xf32> -> vector<48x128xf32>
    %127 = arith.addf %98, %126 : vector<48x128xf32>
    %c8_164 = arith.constant 8 : index
    %c0_165 = arith.constant 0 : index
    %128 = vector.load %arg10[%c8_164, %c0_165] : memref<64x128xbf16, #tpu.memory_space<vmem>>, vector<48x128xbf16>
    %c4_166 = arith.constant 4 : index
    %c0_167 = arith.constant 0 : index
    %c0_168 = arith.constant 0 : index
    %129 = vector.load %arg3[%c4_166, %c0_167, %c0_168] : memref<8x128x128xbf16, #tpu.memory_space<vmem>>, vector<1x128x128xbf16>
    %130 = vector.shape_cast %129 : vector<1x128x128xbf16> to vector<128x128xbf16>
    %cst_169 = arith.constant dense<0.000000e+00> : vector<48x128xf32>
    %131 = tpu.matmul %128, %130, %cst_169 {dimension_numbers = #tpu.dot_dimension_numbers<[1], [0], [0], [1], [0, 0, 1, 1], [], []>} : vector<48x128xbf16>, vector<128x128xbf16>, vector<48x128xf32> -> vector<48x128xf32>
    %132 = arith.addf %127, %131 : vector<48x128xf32>
    %c16_170 = arith.constant 16 : index
    %c0_171 = arith.constant 0 : index
    %133 = vector.load %arg10[%c16_170, %c0_171] : memref<64x128xbf16, #tpu.memory_space<vmem>>, vector<48x128xbf16>
    %c7_172 = arith.constant 7 : index
    %c0_173 = arith.constant 0 : index
    %c0_174 = arith.constant 0 : index
    %134 = vector.load %arg3[%c7_172, %c0_173, %c0_174] : memref<8x128x128xbf16, #tpu.memory_space<vmem>>, vector<1x128x128xbf16>
    %135 = vector.shape_cast %134 : vector<1x128x128xbf16> to vector<128x128xbf16>
    %cst_175 = arith.constant dense<0.000000e+00> : vector<48x128xf32>
    %136 = tpu.matmul %133, %135, %cst_175 {dimension_numbers = #tpu.dot_dimension_numbers<[1], [0], [0], [1], [0, 0, 1, 1], [], []>} : vector<48x128xbf16>, vector<128x128xbf16>, vector<48x128xf32> -> vector<48x128xf32>
    %137 = arith.addf %132, %136 : vector<48x128xf32>
    %c0_176 = arith.constant 0 : index
    %c0_177 = arith.constant 0 : index
    %138 = vector.load %arg5[%c0_176, %c0_177] : memref<1x128xf32, #tpu.memory_space<vmem>>, vector<1x128xf32>
    %139 = vector.broadcast %138 : vector<1x128xf32> to vector<48x128xf32>
    %140 = arith.addf %137, %139 : vector<48x128xf32>
    %cst_178 = arith.constant 0.000000e+00 : f32
    %141 = vector.broadcast %cst_178 : f32 to vector<48x128xf32>
    %142 = arith.maximumf %140, %141 : vector<48x128xf32>
    %cst_179 = arith.constant 0.000000e+00 : bf16
    %143 = vector.broadcast %cst_179 : bf16 to vector<6x1x128xbf16>
    %c0_180 = arith.constant 0 : index
    %c0_181 = arith.constant 0 : index
    %c0_182 = arith.constant 0 : index
    %144 = vector.load %arg11[%c0_180, %c0_181, %c0_182] : memref<6x10x128xbf16, #tpu.memory_space<vmem>>, vector<6x1x128xbf16>
    tpu.vector_store %arg11[%c0_180, %c0_181, %c0_182], %143 {strides = array<i32>} : memref<6x10x128xbf16, #tpu.memory_space<vmem>>, vector<6x1x128xbf16>,
    %cst_183 = arith.constant 0.000000e+00 : bf16
    %145 = vector.broadcast %cst_183 : bf16 to vector<6x1x128xbf16>
    %c0_184 = arith.constant 0 : index
    %c9_185 = arith.constant 9 : index
    %c0_186 = arith.constant 0 : index
    %146 = vector.load %arg11[%c0_184, %c9_185, %c0_186] : memref<6x10x128xbf16, #tpu.memory_space<vmem>>, vector<6x1x128xbf16>
    tpu.vector_store %arg11[%c0_184, %c9_185, %c0_186], %145 {strides = array<i32>} : memref<6x10x128xbf16, #tpu.memory_space<vmem>>, vector<6x1x128xbf16>,
    %147 = vector.shape_cast %142 : vector<48x128xf32> to vector<6x8x128xf32>
    %148 = arith.truncf %147 : vector<6x8x128xf32> to vector<6x8x128xbf16>
    %c0_187 = arith.constant 0 : index
    %c1_188 = arith.constant 1 : index
    %c0_189 = arith.constant 0 : index
    %149 = vector.load %arg11[%c0_187, %c1_188, %c0_189] : memref<6x10x128xbf16, #tpu.memory_space<vmem>>, vector<6x8x128xbf16>
    tpu.vector_store %arg11[%c0_187, %c1_188, %c0_189], %148 {strides = array<i32>} : memref<6x10x128xbf16, #tpu.memory_space<vmem>>, vector<6x8x128xbf16>,
    %c0_i32_190 = arith.constant 0 : i32
    %150 = arith.cmpi eq, %arg1, %c0_i32_190 : i32
    %151 = arith.extui %150 : i1 to i32
    %c0_i32_191 = arith.constant 0 : i32
    %152 = arith.cmpi ne, %151, %c0_i32_191 : i32
    scf.if %152 {
      %cst_344 = arith.constant 0.000000e+00 : bf16
      %262 = vector.broadcast %cst_344 : bf16 to vector<1x8x128xbf16>
      %c0_345 = arith.constant 0 : index
      %c1_346 = arith.constant 1 : index
      %c0_347 = arith.constant 0 : index
      %263 = vector.load %arg11[%c0_345, %c1_346, %c0_347] : memref<6x10x128xbf16, #tpu.memory_space<vmem>>, vector<1x8x128xbf16>
      tpu.vector_store %arg11[%c0_345, %c1_346, %c0_347], %262 {strides = array<i32>} : memref<6x10x128xbf16, #tpu.memory_space<vmem>>, vector<1x8x128xbf16>,
    } else {
    }
    %c1_i32_192 = arith.constant 1 : i32
    %153 = arith.cmpi eq, %arg1, %c1_i32_192 : i32
    %154 = arith.extui %153 : i1 to i32
    %c0_i32_193 = arith.constant 0 : i32
    %155 = arith.cmpi ne, %154, %c0_i32_193 : i32
    scf.if %155 {
      %cst_344 = arith.constant 0.000000e+00 : bf16
      %262 = vector.broadcast %cst_344 : bf16 to vector<1x8x128xbf16>
      %c5_345 = arith.constant 5 : index
      %c1_346 = arith.constant 1 : index
      %c0_347 = arith.constant 0 : index
      %263 = vector.load %arg11[%c5_345, %c1_346, %c0_347] : memref<6x10x128xbf16, #tpu.memory_space<vmem>>, vector<1x8x128xbf16>
      tpu.vector_store %arg11[%c5_345, %c1_346, %c0_347], %262 {strides = array<i32>} : memref<6x10x128xbf16, #tpu.memory_space<vmem>>, vector<1x8x128xbf16>,
    } else {
    }
    %c0_194 = arith.constant 0 : index
    %c0_195 = arith.constant 0 : index
    %c0_196 = arith.constant 0 : index
    %156 = vector.load %arg11[%c0_194, %c0_195, %c0_196] : memref<6x10x128xbf16, #tpu.memory_space<vmem>>, vector<1x8x128xbf16>
    %157 = vector.shape_cast %156 : vector<1x8x128xbf16> to vector<8x128xbf16>
    %c0_197 = arith.constant 0 : index
    %c0_198 = arith.constant 0 : index
    %158 = vector.load %arg12[%c0_197, %c0_198] : memref<48x128xbf16, #tpu.memory_space<vmem>>, vector<8x128xbf16>
    tpu.vector_store %arg12[%c0_197, %c0_198], %157 {strides = array<i32>} : memref<48x128xbf16, #tpu.memory_space<vmem>>, vector<8x128xbf16>,
    %c1_199 = arith.constant 1 : index
    %c0_200 = arith.constant 0 : index
    %c0_201 = arith.constant 0 : index
    %159 = vector.load %arg11[%c1_199, %c0_200, %c0_201] : memref<6x10x128xbf16, #tpu.memory_space<vmem>>, vector<1x8x128xbf16>
    %160 = vector.shape_cast %159 : vector<1x8x128xbf16> to vector<8x128xbf16>
    %c8_202 = arith.constant 8 : index
    %c0_203 = arith.constant 0 : index
    %161 = vector.load %arg12[%c8_202, %c0_203] : memref<48x128xbf16, #tpu.memory_space<vmem>>, vector<8x128xbf16>
    tpu.vector_store %arg12[%c8_202, %c0_203], %160 {strides = array<i32>} : memref<48x128xbf16, #tpu.memory_space<vmem>>, vector<8x128xbf16>,
    %c2_204 = arith.constant 2 : index
    %c0_205 = arith.constant 0 : index
    %c0_206 = arith.constant 0 : index
    %162 = vector.load %arg11[%c2_204, %c0_205, %c0_206] : memref<6x10x128xbf16, #tpu.memory_space<vmem>>, vector<1x8x128xbf16>
    %163 = vector.shape_cast %162 : vector<1x8x128xbf16> to vector<8x128xbf16>
    %c16_207 = arith.constant 16 : index
    %c0_208 = arith.constant 0 : index
    %164 = vector.load %arg12[%c16_207, %c0_208] : memref<48x128xbf16, #tpu.memory_space<vmem>>, vector<8x128xbf16>
    tpu.vector_store %arg12[%c16_207, %c0_208], %163 {strides = array<i32>} : memref<48x128xbf16, #tpu.memory_space<vmem>>, vector<8x128xbf16>,
    %c3_209 = arith.constant 3 : index
    %c0_210 = arith.constant 0 : index
    %c0_211 = arith.constant 0 : index
    %165 = vector.load %arg11[%c3_209, %c0_210, %c0_211] : memref<6x10x128xbf16, #tpu.memory_space<vmem>>, vector<1x8x128xbf16>
    %166 = vector.shape_cast %165 : vector<1x8x128xbf16> to vector<8x128xbf16>
    %c24_212 = arith.constant 24 : index
    %c0_213 = arith.constant 0 : index
    %167 = vector.load %arg12[%c24_212, %c0_213] : memref<48x128xbf16, #tpu.memory_space<vmem>>, vector<8x128xbf16>
    tpu.vector_store %arg12[%c24_212, %c0_213], %166 {strides = array<i32>} : memref<48x128xbf16, #tpu.memory_space<vmem>>, vector<8x128xbf16>,
    %c4_214 = arith.constant 4 : index
    %c0_215 = arith.constant 0 : index
    %c0_216 = arith.constant 0 : index
    %168 = vector.load %arg11[%c4_214, %c0_215, %c0_216] : memref<6x10x128xbf16, #tpu.memory_space<vmem>>, vector<1x8x128xbf16>
    %169 = vector.shape_cast %168 : vector<1x8x128xbf16> to vector<8x128xbf16>
    %c32_217 = arith.constant 32 : index
    %c0_218 = arith.constant 0 : index
    %170 = vector.load %arg12[%c32_217, %c0_218] : memref<48x128xbf16, #tpu.memory_space<vmem>>, vector<8x128xbf16>
    tpu.vector_store %arg12[%c32_217, %c0_218], %169 {strides = array<i32>} : memref<48x128xbf16, #tpu.memory_space<vmem>>, vector<8x128xbf16>,
    %c5_219 = arith.constant 5 : index
    %c0_220 = arith.constant 0 : index
    %c0_221 = arith.constant 0 : index
    %171 = vector.load %arg11[%c5_219, %c0_220, %c0_221] : memref<6x10x128xbf16, #tpu.memory_space<vmem>>, vector<1x8x128xbf16>
    %172 = vector.shape_cast %171 : vector<1x8x128xbf16> to vector<8x128xbf16>
    %c40_222 = arith.constant 40 : index
    %c0_223 = arith.constant 0 : index
    %173 = vector.load %arg12[%c40_222, %c0_223] : memref<48x128xbf16, #tpu.memory_space<vmem>>, vector<8x128xbf16>
    tpu.vector_store %arg12[%c40_222, %c0_223], %172 {strides = array<i32>} : memref<48x128xbf16, #tpu.memory_space<vmem>>, vector<8x128xbf16>,
    %c0_224 = arith.constant 0 : index
    %c0_225 = arith.constant 0 : index
    %174 = vector.load %arg12[%c0_224, %c0_225] : memref<48x128xbf16, #tpu.memory_space<vmem>>, vector<32x128xbf16>
    %c0_226 = arith.constant 0 : index
    %c0_227 = arith.constant 0 : index
    %c0_228 = arith.constant 0 : index
    %175 = vector.load %arg6[%c0_226, %c0_227, %c0_228] : memref<9x128x128xbf16, #tpu.memory_space<vmem>>, vector<1x128x128xbf16>
    %176 = vector.shape_cast %175 : vector<1x128x128xbf16> to vector<128x128xbf16>
    %cst_229 = arith.constant dense<0.000000e+00> : vector<32x128xf32>
    %177 = tpu.matmul %174, %176, %cst_229 {dimension_numbers = #tpu.dot_dimension_numbers<[1], [0], [0], [1], [0, 0, 1, 1], [], []>} : vector<32x128xbf16>, vector<128x128xbf16>, vector<32x128xf32> -> vector<32x128xf32>
    %178 = arith.addf %92, %177 : vector<32x128xf32>
    %c8_230 = arith.constant 8 : index
    %c0_231 = arith.constant 0 : index
    %179 = vector.load %arg12[%c8_230, %c0_231] : memref<48x128xbf16, #tpu.memory_space<vmem>>, vector<32x128xbf16>
    %c3_232 = arith.constant 3 : index
    %c0_233 = arith.constant 0 : index
    %c0_234 = arith.constant 0 : index
    %180 = vector.load %arg6[%c3_232, %c0_233, %c0_234] : memref<9x128x128xbf16, #tpu.memory_space<vmem>>, vector<1x128x128xbf16>
    %181 = vector.shape_cast %180 : vector<1x128x128xbf16> to vector<128x128xbf16>
    %cst_235 = arith.constant dense<0.000000e+00> : vector<32x128xf32>
    %182 = tpu.matmul %179, %181, %cst_235 {dimension_numbers = #tpu.dot_dimension_numbers<[1], [0], [0], [1], [0, 0, 1, 1], [], []>} : vector<32x128xbf16>, vector<128x128xbf16>, vector<32x128xf32> -> vector<32x128xf32>
    %183 = arith.addf %178, %182 : vector<32x128xf32>
    %c16_236 = arith.constant 16 : index
    %c0_237 = arith.constant 0 : index
    %184 = vector.load %arg12[%c16_236, %c0_237] : memref<48x128xbf16, #tpu.memory_space<vmem>>, vector<32x128xbf16>
    %c6_238 = arith.constant 6 : index
    %c0_239 = arith.constant 0 : index
    %c0_240 = arith.constant 0 : index
    %185 = vector.load %arg6[%c6_238, %c0_239, %c0_240] : memref<9x128x128xbf16, #tpu.memory_space<vmem>>, vector<1x128x128xbf16>
    %186 = vector.shape_cast %185 : vector<1x128x128xbf16> to vector<128x128xbf16>
    %cst_241 = arith.constant dense<0.000000e+00> : vector<32x128xf32>
    %187 = tpu.matmul %184, %186, %cst_241 {dimension_numbers = #tpu.dot_dimension_numbers<[1], [0], [0], [1], [0, 0, 1, 1], [], []>} : vector<32x128xbf16>, vector<128x128xbf16>, vector<32x128xf32> -> vector<32x128xf32>
    %188 = arith.addf %183, %187 : vector<32x128xf32>
    %c0_242 = arith.constant 0 : index
    %c1_243 = arith.constant 1 : index
    %c0_244 = arith.constant 0 : index
    %189 = vector.load %arg11[%c0_242, %c1_243, %c0_244] : memref<6x10x128xbf16, #tpu.memory_space<vmem>>, vector<1x8x128xbf16>
    %190 = vector.shape_cast %189 : vector<1x8x128xbf16> to vector<8x128xbf16>
    %c0_245 = arith.constant 0 : index
    %c0_246 = arith.constant 0 : index
    %191 = vector.load %arg12[%c0_245, %c0_246] : memref<48x128xbf16, #tpu.memory_space<vmem>>, vector<8x128xbf16>
    tpu.vector_store %arg12[%c0_245, %c0_246], %190 {strides = array<i32>} : memref<48x128xbf16, #tpu.memory_space<vmem>>, vector<8x128xbf16>,
    %c1_247 = arith.constant 1 : index
    %c1_248 = arith.constant 1 : index
    %c0_249 = arith.constant 0 : index
    %192 = vector.load %arg11[%c1_247, %c1_248, %c0_249] : memref<6x10x128xbf16, #tpu.memory_space<vmem>>, vector<1x8x128xbf16>
    %193 = vector.shape_cast %192 : vector<1x8x128xbf16> to vector<8x128xbf16>
    %c8_250 = arith.constant 8 : index
    %c0_251 = arith.constant 0 : index
    %194 = vector.load %arg12[%c8_250, %c0_251] : memref<48x128xbf16, #tpu.memory_space<vmem>>, vector<8x128xbf16>
    tpu.vector_store %arg12[%c8_250, %c0_251], %193 {strides = array<i32>} : memref<48x128xbf16, #tpu.memory_space<vmem>>, vector<8x128xbf16>,
    %c2_252 = arith.constant 2 : index
    %c1_253 = arith.constant 1 : index
    %c0_254 = arith.constant 0 : index
    %195 = vector.load %arg11[%c2_252, %c1_253, %c0_254] : memref<6x10x128xbf16, #tpu.memory_space<vmem>>, vector<1x8x128xbf16>
    %196 = vector.shape_cast %195 : vector<1x8x128xbf16> to vector<8x128xbf16>
    %c16_255 = arith.constant 16 : index
    %c0_256 = arith.constant 0 : index
    %197 = vector.load %arg12[%c16_255, %c0_256] : memref<48x128xbf16, #tpu.memory_space<vmem>>, vector<8x128xbf16>
    tpu.vector_store %arg12[%c16_255, %c0_256], %196 {strides = array<i32>} : memref<48x128xbf16, #tpu.memory_space<vmem>>, vector<8x128xbf16>,
    %c3_257 = arith.constant 3 : index
    %c1_258 = arith.constant 1 : index
    %c0_259 = arith.constant 0 : index
    %198 = vector.load %arg11[%c3_257, %c1_258, %c0_259] : memref<6x10x128xbf16, #tpu.memory_space<vmem>>, vector<1x8x128xbf16>
    %199 = vector.shape_cast %198 : vector<1x8x128xbf16> to vector<8x128xbf16>
    %c24_260 = arith.constant 24 : index
    %c0_261 = arith.constant 0 : index
    %200 = vector.load %arg12[%c24_260, %c0_261] : memref<48x128xbf16, #tpu.memory_space<vmem>>, vector<8x128xbf16>
    tpu.vector_store %arg12[%c24_260, %c0_261], %199 {strides = array<i32>} : memref<48x128xbf16, #tpu.memory_space<vmem>>, vector<8x128xbf16>,
    %c4_262 = arith.constant 4 : index
    %c1_263 = arith.constant 1 : index
    %c0_264 = arith.constant 0 : index
    %201 = vector.load %arg11[%c4_262, %c1_263, %c0_264] : memref<6x10x128xbf16, #tpu.memory_space<vmem>>, vector<1x8x128xbf16>
    %202 = vector.shape_cast %201 : vector<1x8x128xbf16> to vector<8x128xbf16>
    %c32_265 = arith.constant 32 : index
    %c0_266 = arith.constant 0 : index
    %203 = vector.load %arg12[%c32_265, %c0_266] : memref<48x128xbf16, #tpu.memory_space<vmem>>, vector<8x128xbf16>
    tpu.vector_store %arg12[%c32_265, %c0_266], %202 {strides = array<i32>} : memref<48x128xbf16, #tpu.memory_space<vmem>>, vector<8x128xbf16>,
    %c5_267 = arith.constant 5 : index
    %c1_268 = arith.constant 1 : index
    %c0_269 = arith.constant 0 : index
    %204 = vector.load %arg11[%c5_267, %c1_268, %c0_269] : memref<6x10x128xbf16, #tpu.memory_space<vmem>>, vector<1x8x128xbf16>
    %205 = vector.shape_cast %204 : vector<1x8x128xbf16> to vector<8x128xbf16>
    %c40_270 = arith.constant 40 : index
    %c0_271 = arith.constant 0 : index
    %206 = vector.load %arg12[%c40_270, %c0_271] : memref<48x128xbf16, #tpu.memory_space<vmem>>, vector<8x128xbf16>
    tpu.vector_store %arg12[%c40_270, %c0_271], %205 {strides = array<i32>} : memref<48x128xbf16, #tpu.memory_space<vmem>>, vector<8x128xbf16>,
    %c0_272 = arith.constant 0 : index
    %c0_273 = arith.constant 0 : index
    %207 = vector.load %arg12[%c0_272, %c0_273] : memref<48x128xbf16, #tpu.memory_space<vmem>>, vector<32x128xbf16>
    %c1_274 = arith.constant 1 : index
    %c0_275 = arith.constant 0 : index
    %c0_276 = arith.constant 0 : index
    %208 = vector.load %arg6[%c1_274, %c0_275, %c0_276] : memref<9x128x128xbf16, #tpu.memory_space<vmem>>, vector<1x128x128xbf16>
    %209 = vector.shape_cast %208 : vector<1x128x128xbf16> to vector<128x128xbf16>
    %cst_277 = arith.constant dense<0.000000e+00> : vector<32x128xf32>
    %210 = tpu.matmul %207, %209, %cst_277 {dimension_numbers = #tpu.dot_dimension_numbers<[1], [0], [0], [1], [0, 0, 1, 1], [], []>} : vector<32x128xbf16>, vector<128x128xbf16>, vector<32x128xf32> -> vector<32x128xf32>
    %211 = arith.addf %188, %210 : vector<32x128xf32>
    %c8_278 = arith.constant 8 : index
    %c0_279 = arith.constant 0 : index
    %212 = vector.load %arg12[%c8_278, %c0_279] : memref<48x128xbf16, #tpu.memory_space<vmem>>, vector<32x128xbf16>
    %c4_280 = arith.constant 4 : index
    %c0_281 = arith.constant 0 : index
    %c0_282 = arith.constant 0 : index
    %213 = vector.load %arg6[%c4_280, %c0_281, %c0_282] : memref<9x128x128xbf16, #tpu.memory_space<vmem>>, vector<1x128x128xbf16>
    %214 = vector.shape_cast %213 : vector<1x128x128xbf16> to vector<128x128xbf16>
    %cst_283 = arith.constant dense<0.000000e+00> : vector<32x128xf32>
    %215 = tpu.matmul %212, %214, %cst_283 {dimension_numbers = #tpu.dot_dimension_numbers<[1], [0], [0], [1], [0, 0, 1, 1], [], []>} : vector<32x128xbf16>, vector<128x128xbf16>, vector<32x128xf32> -> vector<32x128xf32>
    %216 = arith.addf %211, %215 : vector<32x128xf32>
    %c16_284 = arith.constant 16 : index
    %c0_285 = arith.constant 0 : index
    %217 = vector.load %arg12[%c16_284, %c0_285] : memref<48x128xbf16, #tpu.memory_space<vmem>>, vector<32x128xbf16>
    %c7_286 = arith.constant 7 : index
    %c0_287 = arith.constant 0 : index
    %c0_288 = arith.constant 0 : index
    %218 = vector.load %arg6[%c7_286, %c0_287, %c0_288] : memref<9x128x128xbf16, #tpu.memory_space<vmem>>, vector<1x128x128xbf16>
    %219 = vector.shape_cast %218 : vector<1x128x128xbf16> to vector<128x128xbf16>
    %cst_289 = arith.constant dense<0.000000e+00> : vector<32x128xf32>
    %220 = tpu.matmul %217, %219, %cst_289 {dimension_numbers = #tpu.dot_dimension_numbers<[1], [0], [0], [1], [0, 0, 1, 1], [], []>} : vector<32x128xbf16>, vector<128x128xbf16>, vector<32x128xf32> -> vector<32x128xf32>
    %221 = arith.addf %216, %220 : vector<32x128xf32>
    %c0_290 = arith.constant 0 : index
    %c2_291 = arith.constant 2 : index
    %c0_292 = arith.constant 0 : index
    %222 = vector.load %arg11[%c0_290, %c2_291, %c0_292] : memref<6x10x128xbf16, #tpu.memory_space<vmem>>, vector<1x8x128xbf16>
    %223 = vector.shape_cast %222 : vector<1x8x128xbf16> to vector<8x128xbf16>
    %c0_293 = arith.constant 0 : index
    %c0_294 = arith.constant 0 : index
    %224 = vector.load %arg12[%c0_293, %c0_294] : memref<48x128xbf16, #tpu.memory_space<vmem>>, vector<8x128xbf16>
    tpu.vector_store %arg12[%c0_293, %c0_294], %223 {strides = array<i32>} : memref<48x128xbf16, #tpu.memory_space<vmem>>, vector<8x128xbf16>,
    %c1_295 = arith.constant 1 : index
    %c2_296 = arith.constant 2 : index
    %c0_297 = arith.constant 0 : index
    %225 = vector.load %arg11[%c1_295, %c2_296, %c0_297] : memref<6x10x128xbf16, #tpu.memory_space<vmem>>, vector<1x8x128xbf16>
    %226 = vector.shape_cast %225 : vector<1x8x128xbf16> to vector<8x128xbf16>
    %c8_298 = arith.constant 8 : index
    %c0_299 = arith.constant 0 : index
    %227 = vector.load %arg12[%c8_298, %c0_299] : memref<48x128xbf16, #tpu.memory_space<vmem>>, vector<8x128xbf16>
    tpu.vector_store %arg12[%c8_298, %c0_299], %226 {strides = array<i32>} : memref<48x128xbf16, #tpu.memory_space<vmem>>, vector<8x128xbf16>,
    %c2_300 = arith.constant 2 : index
    %c2_301 = arith.constant 2 : index
    %c0_302 = arith.constant 0 : index
    %228 = vector.load %arg11[%c2_300, %c2_301, %c0_302] : memref<6x10x128xbf16, #tpu.memory_space<vmem>>, vector<1x8x128xbf16>
    %229 = vector.shape_cast %228 : vector<1x8x128xbf16> to vector<8x128xbf16>
    %c16_303 = arith.constant 16 : index
    %c0_304 = arith.constant 0 : index
    %230 = vector.load %arg12[%c16_303, %c0_304] : memref<48x128xbf16, #tpu.memory_space<vmem>>, vector<8x128xbf16>
    tpu.vector_store %arg12[%c16_303, %c0_304], %229 {strides = array<i32>} : memref<48x128xbf16, #tpu.memory_space<vmem>>, vector<8x128xbf16>,
    %c3_305 = arith.constant 3 : index
    %c2_306 = arith.constant 2 : index
    %c0_307 = arith.constant 0 : index
    %231 = vector.load %arg11[%c3_305, %c2_306, %c0_307] : memref<6x10x128xbf16, #tpu.memory_space<vmem>>, vector<1x8x128xbf16>
    %232 = vector.shape_cast %231 : vector<1x8x128xbf16> to vector<8x128xbf16>
    %c24_308 = arith.constant 24 : index
    %c0_309 = arith.constant 0 : index
    %233 = vector.load %arg12[%c24_308, %c0_309] : memref<48x128xbf16, #tpu.memory_space<vmem>>, vector<8x128xbf16>
    tpu.vector_store %arg12[%c24_308, %c0_309], %232 {strides = array<i32>} : memref<48x128xbf16, #tpu.memory_space<vmem>>, vector<8x128xbf16>,
    %c4_310 = arith.constant 4 : index
    %c2_311 = arith.constant 2 : index
    %c0_312 = arith.constant 0 : index
    %234 = vector.load %arg11[%c4_310, %c2_311, %c0_312] : memref<6x10x128xbf16, #tpu.memory_space<vmem>>, vector<1x8x128xbf16>
    %235 = vector.shape_cast %234 : vector<1x8x128xbf16> to vector<8x128xbf16>
    %c32_313 = arith.constant 32 : index
    %c0_314 = arith.constant 0 : index
    %236 = vector.load %arg12[%c32_313, %c0_314] : memref<48x128xbf16, #tpu.memory_space<vmem>>, vector<8x128xbf16>
    tpu.vector_store %arg12[%c32_313, %c0_314], %235 {strides = array<i32>} : memref<48x128xbf16, #tpu.memory_space<vmem>>, vector<8x128xbf16>,
    %c5_315 = arith.constant 5 : index
    %c2_316 = arith.constant 2 : index
    %c0_317 = arith.constant 0 : index
    %237 = vector.load %arg11[%c5_315, %c2_316, %c0_317] : memref<6x10x128xbf16, #tpu.memory_space<vmem>>, vector<1x8x128xbf16>
    %238 = vector.shape_cast %237 : vector<1x8x128xbf16> to vector<8x128xbf16>
    %c40_318 = arith.constant 40 : index
    %c0_319 = arith.constant 0 : index
    %239 = vector.load %arg12[%c40_318, %c0_319] : memref<48x128xbf16, #tpu.memory_space<vmem>>, vector<8x128xbf16>
    tpu.vector_store %arg12[%c40_318, %c0_319], %238 {strides = array<i32>} : memref<48x128xbf16, #tpu.memory_space<vmem>>, vector<8x128xbf16>,
    %c0_320 = arith.constant 0 : index
    %c0_321 = arith.constant 0 : index
    %240 = vector.load %arg12[%c0_320, %c0_321] : memref<48x128xbf16, #tpu.memory_space<vmem>>, vector<32x128xbf16>
    %c2_322 = arith.constant 2 : index
    %c0_323 = arith.constant 0 : index
    %c0_324 = arith.constant 0 : index
    %241 = vector.load %arg6[%c2_322, %c0_323, %c0_324] : memref<9x128x128xbf16, #tpu.memory_space<vmem>>, vector<1x128x128xbf16>
    %242 = vector.shape_cast %241 : vector<1x128x128xbf16> to vector<128x128xbf16>
    %cst_325 = arith.constant dense<0.000000e+00> : vector<32x128xf32>
    %243 = tpu.matmul %240, %242, %cst_325 {dimension_numbers = #tpu.dot_dimension_numbers<[1], [0], [0], [1], [0, 0, 1, 1], [], []>} : vector<32x128xbf16>, vector<128x128xbf16>, vector<32x128xf32> -> vector<32x128xf32>
    %244 = arith.addf %221, %243 : vector<32x128xf32>
    %c8_326 = arith.constant 8 : index
    %c0_327 = arith.constant 0 : index
    %245 = vector.load %arg12[%c8_326, %c0_327] : memref<48x128xbf16, #tpu.memory_space<vmem>>, vector<32x128xbf16>
    %c5_328 = arith.constant 5 : index
    %c0_329 = arith.constant 0 : index
    %c0_330 = arith.constant 0 : index
    %246 = vector.load %arg6[%c5_328, %c0_329, %c0_330] : memref<9x128x128xbf16, #tpu.memory_space<vmem>>, vector<1x128x128xbf16>
    %247 = vector.shape_cast %246 : vector<1x128x128xbf16> to vector<128x128xbf16>
    %cst_331 = arith.constant dense<0.000000e+00> : vector<32x128xf32>
    %248 = tpu.matmul %245, %247, %cst_331 {dimension_numbers = #tpu.dot_dimension_numbers<[1], [0], [0], [1], [0, 0, 1, 1], [], []>} : vector<32x128xbf16>, vector<128x128xbf16>, vector<32x128xf32> -> vector<32x128xf32>
    %249 = arith.addf %244, %248 : vector<32x128xf32>
    %c16_332 = arith.constant 16 : index
    %c0_333 = arith.constant 0 : index
    %250 = vector.load %arg12[%c16_332, %c0_333] : memref<48x128xbf16, #tpu.memory_space<vmem>>, vector<32x128xbf16>
    %c8_334 = arith.constant 8 : index
    %c0_335 = arith.constant 0 : index
    %c0_336 = arith.constant 0 : index
    %251 = vector.load %arg6[%c8_334, %c0_335, %c0_336] : memref<9x128x128xbf16, #tpu.memory_space<vmem>>, vector<1x128x128xbf16>
    %252 = vector.shape_cast %251 : vector<1x128x128xbf16> to vector<128x128xbf16>
    %cst_337 = arith.constant dense<0.000000e+00> : vector<32x128xf32>
    %253 = tpu.matmul %250, %252, %cst_337 {dimension_numbers = #tpu.dot_dimension_numbers<[1], [0], [0], [1], [0, 0, 1, 1], [], []>} : vector<32x128xbf16>, vector<128x128xbf16>, vector<32x128xf32> -> vector<32x128xf32>
    %254 = arith.addf %249, %253 : vector<32x128xf32>
    %c0_338 = arith.constant 0 : index
    %c0_339 = arith.constant 0 : index
    %255 = vector.load %arg7[%c0_338, %c0_339] : memref<1x128xf32, #tpu.memory_space<vmem>>, vector<1x128xf32>
    %256 = vector.broadcast %255 : vector<1x128xf32> to vector<32x128xf32>
    %257 = arith.addf %254, %256 : vector<32x128xf32>
    %cst_340 = arith.constant 0.000000e+00 : f32
    %258 = vector.broadcast %cst_340 : f32 to vector<32x128xf32>
    %259 = arith.maximumf %257, %258 : vector<32x128xf32>
    %260 = vector.shape_cast %259 : vector<32x128xf32> to vector<1x32x128xf32>
    %c0_341 = arith.constant 0 : index
    %c0_342 = arith.constant 0 : index
    %c0_343 = arith.constant 0 : index
    %261 = vector.load %arg8[%c0_341, %c0_342, %c0_343] : memref<1x32x128xf32, #tpu.memory_space<vmem>>, vector<1x32x128xf32>
    tpu.vector_store %arg8[%c0_341, %c0_342, %c0_343], %260 {strides = array<i32>} : memref<1x32x128xf32, #tpu.memory_space<vmem>>, vector<1x32x128xf32>,
    return
  }
  func.func @transform_0(%arg0: i32, %arg1: i32) -> (i32, i32, i32, i32) {
    %c0_i32 = arith.constant 0 : i32
    %c0_i32_0 = arith.constant 0 : i32
    %c0_i32_1 = arith.constant 0 : i32
    %c0_i32_2 = arith.constant 0 : i32
    return %arg0, %c0_i32, %c0_i32_0, %c0_i32_1 : i32, i32, i32, i32
  }
  func.func @transform_1(%arg0: i32, %arg1: i32) -> (i32, i32, i32) {
    %c0_i32 = arith.constant 0 : i32
    %c0_i32_0 = arith.constant 0 : i32
    %c0_i32_1 = arith.constant 0 : i32
    %c0_i32_2 = arith.constant 0 : i32
    return %c0_i32, %c0_i32_0, %c0_i32_1 : i32, i32, i32
  }
  func.func @transform_2(%arg0: i32, %arg1: i32) -> (i32, i32) {
    %c0_i32 = arith.constant 0 : i32
    %c0_i32_0 = arith.constant 0 : i32
    %c0_i32_1 = arith.constant 0 : i32
    return %c0_i32, %c0_i32_0 : i32, i32
  }
  func.func @transform_3(%arg0: i32, %arg1: i32) -> (i32, i32) {
    %c0_i32 = arith.constant 0 : i32
    %c0_i32_0 = arith.constant 0 : i32
    %c0_i32_1 = arith.constant 0 : i32
    return %c0_i32, %c0_i32_0 : i32, i32
  }
  func.func @transform_4(%arg0: i32, %arg1: i32) -> (i32, i32, i32) {
    %c0_i32 = arith.constant 0 : i32
    %c0_i32_0 = arith.constant 0 : i32
    %c0_i32_1 = arith.constant 0 : i32
    %c0_i32_2 = arith.constant 0 : i32
    return %c0_i32, %c0_i32_0, %c0_i32_1 : i32, i32, i32
  }
  func.func @transform_5(%arg0: i32, %arg1: i32) -> (i32, i32) {
    %c0_i32 = arith.constant 0 : i32
    %c0_i32_0 = arith.constant 0 : i32
    %c0_i32_1 = arith.constant 0 : i32
    return %c0_i32, %c0_i32_0 : i32, i32
  }
  func.func @transform_6(%arg0: i32, %arg1: i32) -> (i32, i32, i32) {
    %c0_i32 = arith.constant 0 : i32
    %c0_i32_0 = arith.constant 0 : i32
    return %arg0, %arg1, %c0_i32 : i32, i32, i32
  }
}

</mosaic_0001>

<bundles_post_ra>
// kernel: tile.18
= control target key start
LH: loop header
LB: loop body
LE: loop exit
PB: predicated region body
PF: predicated region fallthrough
CT: control target
= control target key end

     0   :  { %s28_s0 = inlined_call_operand.vmem [shape: f32[8], index: 0, kind: input, shape index: {}]   ;;  %s29_s1 = inlined_call_operand.vmem [shape: f32[16,8], index: 1, kind: output, shape index: {}]  }
   0x1   :  { %v4_v0 = vld [vmem:[%s28_s0] ss:$0 sm:$0xff] }
   0x2   :  { %5 = vst [vmem:[%s29_s1] sm:$0xff] %v4_v0  ;;  %8 = vst [vmem:[%s29_s1 + $0x8] sm:$0xff] %v4_v0 }

// kernel: tile.19
= control target key start
LH: loop header
LB: loop body
LE: loop exit
PB: predicated region body
PF: predicated region fallthrough
CT: control target
= control target key end

     0   :  { %s131_s10 = smov 120   ;;  %s132_s11 = smov 104   ;;  %vm3_vm0 = vcmask 64512   ;;  %vm9_vm1 = vcmask 1048512   ;;  %vm15_vm2 = vcmask 982912   ;;  %vm21_vm3 = vcmask 917312   ;;  %s207_s0 = inlined_call_operand.vmem [shape: f32[16,8], index: 0, kind: input, shape index: {}]   ;;  %s208_s1 = inlined_call_operand.vmem [shape: f32[1,128], index: 1, kind: output, shape index: {}]  }
   0x1   :  { %v101_v0 = vld [vmem:[%s207_s0 + $0xf] sm:$0x1]   ;;  %v103_v1 = vld [vmem:[%s207_s0 + $0xd] sm:$0x1]   ;;  %v102_v2 = vld [vmem:[%s207_s0 + $0xe] sm:$0x1]  }
   0x2   :  { %7 = vrot.lane.b32.xlu0 %v101_v0, %s131_s10  ;;  %19 = vrot.lane.b32.xlu1 %v103_v1, %s132_s11  ;;  %v104_v3 = vld [vmem:[%s207_s0 + $0xc] sm:$0x1]   ;;  %s133_s16 = smov 112   ;;  %s134_s17 = smov 96   ;;  %v105_v4 = vld [vmem:[%s207_s0 + $0xb] sm:$0x1]  }
   0x3   :  { %v106_v5 = vld [vmem:[%s207_s0 + $0xa] sm:$0x1]   ;;  %v2_v6 = vld [vmem:[%s207_s0] sm:$0x1]   ;;  %s135_s24 = smov 88   ;;  %s136_s25 = smov 80  }
   0x4   :  { %4 = vst.msk [vmem:[#allocation0] sm:$0x1] %vm3_vm0, %v2_v6   ;;  %v107_v7 = vld [vmem:[%s207_s0 + $0x9] sm:$0x1]   ;;  %v108_v8 = vld [vmem:[%s207_s0 + $0x8] sm:$0x1]  }
   0x5   :  { %s137_s30 = smov 72   ;;  %s138_s2 = smov 64   ;;  %v109_v9 = vld [vmem:[%s207_s0 + $0x7] sm:$0x1]   ;;  %v110_v10 = vld [vmem:[%s207_s0 + $0x6] sm:$0x1]  }
   0x6   :  { %13 = vrot.lane.b32.xlu0 %v102_v2, %s133_s16  ;;  %25 = vrot.lane.b32.xlu1 %v104_v3, %s134_s17  ;;  %s139_s7 = smov 56   ;;  %s140_s8 = smov 48   ;;  %v111_v11 = vld [vmem:[%s207_s0 + $0x5] sm:$0x1]   ;;  %v112_v12 = vld [vmem:[%s207_s0 + $0x4] sm:$0x1]  }
   0x7   :  { %s141_s13 = smov 40   ;;  %s142_s14 = smov 32   ;;  %v113_v13 = vld [vmem:[%s207_s0 + $0x3] sm:$0x1]   ;;  %v114_v14 = vld [vmem:[%s207_s0 + $0x2] sm:$0x1]  }
   0x8   :  { %s143_s19 = smov 24   ;;  %s144_s20 = smov 16   ;;  %v115_v15 = vld [vmem:[%s207_s0 + $0x1] sm:$0x1]   ;;  %vm27_vm4 = vcmask 851712   ;;  %vm33_vm5 = vcmask 786112  }
   0x9   :  { %s145_s0 = smov 8   ;;  %vm39_vm6 = vcmask 720512   ;;  %vm45_vm7 = vcmask 654912   ;;  %vm51_vm8 = vcmask 589312   ;;  %vm57_vm9 = vcmask 523712  }
   0xa   :  { %31 = vrot.lane.b32.xlu0 %v105_v4, %s135_s24  ;;  %37 = vrot.lane.b32.xlu1 %v106_v5, %s136_s25  ;;  %vm63_vm10 = vcmask 458112   ;;  %vm69_vm11 = vcmask 392512   ;;  %vm75_vm12 = vcmask 326912   ;;  %vm81_vm13 = vcmask 261312  }
   0xb   :  { %vm87_vm14 = vcmask 195712   ;;  %vm93_vm15 = vcmask 130112  }
   0xe   :  { %43 = vrot.lane.b32.xlu0 %v107_v7, %s137_s30  ;;  %49 = vrot.lane.b32.xlu1 %v108_v8, %s138_s2 }
  0x12   :  { %55 = vrot.lane.b32.xlu0 %v109_v9, %s139_s7  ;;  %61 = vrot.lane.b32.xlu1 %v110_v10, %s140_s8 }
  0x16   :  { %67 = vrot.lane.b32.xlu0 %v111_v11, %s141_s13  ;;  %73 = vrot.lane.b32.xlu1 %v112_v12, %s142_s14 }
  0x1a   :  { %79 = vrot.lane.b32.xlu0 %v113_v13, %s143_s19  ;;  %85 = vrot.lane.b32.xlu1 %v114_v14, %s144_s20 }
  0x1e   :  { %91 = vrot.lane.b32.xlu0 %v115_v15, %s145_s0 }
  0x74   :  { %v8_v16 = vpop.permute.xlu0 %7   ;;  %v20_v17 = vpop.permute.xlu1 %19  }
  0x75   :  { %10 = vst.msk [vmem:[#allocation0] sm:$0x1] %vm9_vm1, %v8_v16  }
  0x78   :  { %v14_v18 = vpop.permute.xlu0 %13   ;;  %v26_v19 = vpop.permute.xlu1 %25  }
  0x79   :  { %16 = vst.msk [vmem:[#allocation0] sm:$0x1] %vm15_vm2, %v14_v18  }
  0x7a   :  { %22 = vst.msk [vmem:[#allocation0] sm:$0x1] %vm21_vm3, %v20_v17  }
  0x7b   :  { %28 = vst.msk [vmem:[#allocation0] sm:$0x1] %vm27_vm4, %v26_v19  }
  0x7c   :  { %v32_v20 = vpop.permute.xlu0 %31   ;;  %v38_v21 = vpop.permute.xlu1 %37  }
  0x7d   :  { %34 = vst.msk [vmem:[#allocation0] sm:$0x1] %vm33_vm5, %v32_v20  }
  0x7e   :  { %40 = vst.msk [vmem:[#allocation0] sm:$0x1] %vm39_vm6, %v38_v21  }
  0x80   :  { %v44_v22 = vpop.permute.xlu0 %43   ;;  %v50_v23 = vpop.permute.xlu1 %49  }
  0x81   :  { %46 = vst.msk [vmem:[#allocation0] sm:$0x1] %vm45_vm7, %v44_v22  }
  0x82   :  { %52 = vst.msk [vmem:[#allocation0] sm:$0x1] %vm51_vm8, %v50_v23  }
  0x84   :  { %v56_v24 = vpop.permute.xlu0 %55   ;;  %v62_v25 = vpop.permute.xlu1 %61  }
  0x85   :  { %58 = vst.msk [vmem:[#allocation0] sm:$0x1] %vm57_vm9, %v56_v24  }
  0x86   :  { %64 = vst.msk [vmem:[#allocation0] sm:$0x1] %vm63_vm10, %v62_v25  }
  0x88   :  { %v68_v26 = vpop.permute.xlu0 %67   ;;  %v74_v27 = vpop.permute.xlu1 %73  }
  0x89   :  { %70 = vst.msk [vmem:[#allocation0] sm:$0x1] %vm69_vm11, %v68_v26  }
  0x8a   :  { %76 = vst.msk [vmem:[#allocation0] sm:$0x1] %vm75_vm12, %v74_v27  }
  0x8c   :  { %v80_v28 = vpop.permute.xlu0 %79   ;;  %v86_v29 = vpop.permute.xlu1 %85  }
  0x8d   :  { %82 = vst.msk [vmem:[#allocation0] sm:$0x1] %vm81_vm13, %v80_v28  }
  0x8e   :  { %88 = vst.msk [vmem:[#allocation0] sm:$0x1] %vm87_vm14, %v86_v29  }
  0x90   :  { %v92_v30 = vpop.permute.xlu0 %91  }
  0x91   :  { %94 = vst.msk [vmem:[#allocation0] sm:$0x1] %vm93_vm15, %v92_v30  }
  0x98   :  { %v98_v31 = vld [vmem:[#allocation0] sm:$0x1] }
  0x99   :  { %100 = vst [vmem:[%s208_s1] sm:$0x1] %v98_v31 }

// kernel: resunit3d.1
= control target key start
LH: loop header
LB: loop body
LE: loop exit
PB: predicated region body
PF: predicated region fallthrough
CT: control target
= control target key end

     0   :  { %s5023_s21 = smov 0   ;;  %s5025_s22 = smov 0   ;;  %s5962_s0 = inlined_call_operand.vmem [shape: bf16[2,8,8,128], index: 0, kind: input, shape index: {}]   ;;  %s5963_s1 = inlined_call_operand.vmem [shape: bf16[8,128,128], index: 1, kind: input, shape index: {}]   ;;  %s5964_s2 = inlined_call_operand.vmem [shape: bf16[128,256], index: 2, kind: input, shape index: {}]   ;;  %s5965_s3 = inlined_call_operand.vmem [shape: f32[1,128], index: 3, kind: input, shape index: {}]   ;;  %s5966_s4 = inlined_call_operand.vmem [shape: bf16[9,128,128], index: 4, kind: input, shape index: {}]   ;;  %s5967_s5 = inlined_call_operand.vmem [shape: f32[1,128], index: 5, kind: input, shape index: {}]   ;;  %s5968_s6 = inlined_call_operand.vmem [shape: f32[2,64,128], index: 6, kind: output, shape index: {}]  }
   0x1   :  { %s5027_s23 = smov 0   ;;  %s5029_s24 = smov 0  }
   0x2   :  { %s5031_s25 = smov 0  }
   0x3 LB: > { %s25_s26 = sadd.s32 1, %s4975_s23  ;;  %s28_s27 = sadd.s32 1, %s4979_s24  ;;  %s4983_s25 = sphi %s5031_s25, %s16_s25   ;;  %s4979_s24 = sphi %s5029_s24, %s5978_s24   ;;  %s4975_s23 = sphi %s5027_s23, %s5977_s23   ;;  %s4971_s22 = sphi %s5025_s22, %s5976_s22   ;;  %s4967_s21 = sphi %s5023_s21, %s5975_s21  }
   0x4   : > { %p26_p0 = scmp.ge.s32.totalorder %s25_s26, 2  ;;  %p3615_p1 = scmp.ge.s32.totalorder %s4983_s25, 1 }
   0x5   : > { %p226_p2 = scmp.lt.s32.totalorder %s4983_s25, 5 }
   0x6   : > { %s5980_s26 = smov (%p26_p0, %s25_s26), 0  ;;  %s5982_s27 = smov (!%p26_p0, %s28_s27), %s4979_s24 }
   0x7   : > { %p227_p3 = pnand %p3615_p1, %p226_p2  ;;  %p30_p4 = scmp.ge.s32.totalorder %s5982_s27, 2 }
   0x8   : > { %vm277_vm0 = vcmask (!%p227_p3), 1040384   ;;  %vm278_vm1 = vsmask.f32 (!%p227_p3), 256  ;;  %v286_v0 = vld [vmem:[#allocation2 + $0x10] sm:$0x1] (!%p227_p3)  ;;  %p260_p5 = scmp.lt.s32.totalorder (!%p227_p3), %s4971_s22, 1 }
   0x9   : > { %s5984_s27 = smov (%p30_p4, %s5982_s27), 0  ;;  %230 = sbr.rel (%p227_p3) target bundleno = 1069 (0x42d), region = 44 }
   0xa   : > { %vm5055_vm2 = vmand (!%p227_p3), %vm277_vm0, %vm278_vm1  ;;  %v289_v2 = vld [vmem:[#allocation2 + $0x18] sm:$0x1] (!%p227_p3)  ;;  %v292_v3 = vld [vmem:[#allocation2 + $0x20] sm:$0x1] (!%p227_p3)  ;;  %vm304_vm3 = vsmask.f32 (!%p227_p3), 7938 }
   0xb   : > { %v287_v4 = vsel (!%p227_p3), %vm5055_vm2, 0, %v286_v0  ;;  %v290_v5 = vsel (!%p227_p3), %vm5055_vm2, 0, %v289_v2  ;;  %v293_v6 = vsel (!%p227_p3), %vm5055_vm2, 0, %v292_v3  ;;  %v295_v7 = vld [vmem:[#allocation2 + $0x28] sm:$0x1] (!%p227_p3)  ;;  %vm5066_vm4 = vmand (!%p227_p3), %vm277_vm0, %vm304_vm3  ;;  %s5075_s28 = sshll.u32 (!%p227_p3), %s4967_s21, 2 }
   0xc   : > { %288 = vst [vmem:[#allocation2 + $0x10] sm:$0x1] (!%p227_p3), %v287_v4  ;;  %291 = vst [vmem:[#allocation2 + $0x18] sm:$0x1] (!%p227_p3), %v290_v5  ;;  %v296_v9 = vsel (!%p227_p3), %vm5055_vm2, 0, %v295_v7  ;;  %p268_p6 = scmp.lt.s32.totalorder (!%p227_p3), %s5075_s28, 7 }
   0xd   : > { %294 = vst [vmem:[#allocation2 + $0x20] sm:$0x1] (!%p227_p3), %v293_v6  ;;  %v312_v10 = vld [vmem:[#allocation2 + $0x14] sm:$0x1] (!%p227_p3)  ;;  %v315_v11 = vld [vmem:[#allocation2 + $0x1c] sm:$0x1] (!%p227_p3) }
   0xe   : > { %297 = vst [vmem:[#allocation2 + $0x28] sm:$0x1] (!%p227_p3), %v296_v9  ;;  %v313_v12 = vsel (!%p227_p3), %vm5066_vm4, 0, %v312_v10  ;;  %v316_v13 = vsel (!%p227_p3), %vm5066_vm4, 0, %v315_v11  ;;  %v318_v14 = vld [vmem:[#allocation2 + $0x24] sm:$0x1] (!%p227_p3) }
   0xf   : > { %v321_v15 = vld [vmem:[#allocation2 + $0x2c] sm:$0x1] (!%p227_p3)  ;;  %314 = vst [vmem:[#allocation2 + $0x14] sm:$0x1] (!%p227_p3), %v313_v12  ;;  %317 = vst [vmem:[#allocation2 + $0x1c] sm:$0x1] (!%p227_p3), %v316_v13 }
  0x10   : > { %s5986_s22 = smov (!%p260_p5, %s4971_s22), 1  ;;  %v319_v16 = vsel %vm5066_vm4, 0, %v318_v14  ;;  %v322_v17 = vsel %vm5066_vm4, 0, %v321_v15  ;;  %v280_v18 = vld [vmem:[#allocation2] sm:$0x1]  ;;  %s4073_s11 = sshll.u32 %s4967_s21, 4 }
  0x11   : > { %v283_v19 = vld [vmem:[#allocation2 + $0x8] sm:$0x1]  ;;  %320 = vst [vmem:[#allocation2 + $0x24] sm:$0x1] %v319_v16  ;;  %323 = vst [vmem:[#allocation2 + $0x2c] sm:$0x1] %v322_v17 }
  0x12   : > { %v281_v20 = vsel %vm5055_vm2, 0, %v280_v18  ;;  %v284_v21 = vsel %vm5055_vm2, 0, %v283_v19  ;;  %v298_v22 = vld [vmem:[#allocation2 + $0x30] sm:$0x1]  ;;  %v301_v23 = vld [vmem:[#allocation2 + $0x38] sm:$0x1] }
  0x13   : > { %282 = vst [vmem:[#allocation2] sm:$0x1] %v281_v20  ;;  %285 = vst [vmem:[#allocation2 + $0x8] sm:$0x1] %v284_v21  ;;  %v299_v24 = vsel %vm5055_vm2, 0, %v298_v22  ;;  %v302_v25 = vsel %vm5055_vm2, 0, %v301_v23 }
  0x14   : > { %v306_v26 = vld [vmem:[#allocation2 + $0x4] sm:$0x1]  ;;  %v309_v27 = vld [vmem:[#allocation2 + $0xc] sm:$0x1]  ;;  %300 = vst [vmem:[#allocation2 + $0x30] sm:$0x1] %v299_v24 }
  0x15   : > { %303 = vst [vmem:[#allocation2 + $0x38] sm:$0x1] %v302_v25  ;;  %v307_v28 = vsel %vm5066_vm4, 0, %v306_v26  ;;  %v310_v29 = vsel %vm5066_vm4, 0, %v309_v27  ;;  %v324_v30 = vld [vmem:[#allocation2 + $0x34] sm:$0x1] }
  0x16   : > { %v327_v31 = vld [vmem:[#allocation2 + $0x3c] sm:$0x1]  ;;  %308 = vst [vmem:[#allocation2 + $0x4] sm:$0x1] %v307_v28  ;;  %311 = vst [vmem:[#allocation2 + $0xc] sm:$0x1] %v310_v29 }
  0x17   : > { %v325_v32 = vsel %vm5066_vm4, 0, %v324_v30  ;;  %v328_v33 = vsel %vm5066_vm4, 0, %v327_v31  ;;  %s4072_s29 = sshll.u32 %s5986_s22, 5  ;;  %s3619_s9 = sshll.u32 %s5986_s22, 3  ;;  %vm377_vm5 = vcmask 1043456  }
  0x18   : > { %326 = vst [vmem:[#allocation2 + $0x34] sm:$0x1] %v325_v32  ;;  %329 = vst [vmem:[#allocation2 + $0x3c] sm:$0x1] %v328_v33  ;;  %s5106_s8 = scalar_lea.vmem %s5962_s0, %s4072_s29  ;;  %v379_v41 = vld [vmem:[#allocation2 + $0x10] sm:$0xf] }
  0x19   : > { %s269_s10 = scalar_select %p268_p6, %s5075_s28, 7  ;;  %v385_v47 = vld [vmem:[#allocation2 + $0x18] sm:$0xf]  ;;  %vm5125_vm6 = vmand %vm377_vm5, %vm304_vm3  ;;  %v382_v50 = vld [vmem:[#allocation2 + $0x14] sm:$0x1] }
  0x1a   : > { %s5112_s13 = scalar_lea.vmem %s5106_s8, %s4073_s11  ;;  %v388_v51 = vld [vmem:[#allocation2 + $0x1c] sm:$0x1]  ;;  %v391_v58 = vld [vmem:[#allocation2 + $0x20] sm:$0xf]  ;;  %v394_v59 = vld [vmem:[#allocation2 + $0x24] sm:$0x1] }
  0x1b   : > { %s271_s12 = sadd.s32 %s3619_s9, %s269_s10  ;;  %v332_v34 = vld [vmem:[%s5112_s13] sm:$0xf]  ;;  %v333_v35 = vld [vmem:[%s5112_s13 + $0x4] sm:$0xf]  ;;  %v334_v40 = vld [vmem:[%s5112_s13 + $0x8] sm:$0xf] }
  0x1c   : > { %s3620_s14 = sshll.u32 %s271_s12, 3  ;;  %v337_v36 = vshrl.u32 %v332_v34, 16  ;;  %v340_v37 = vshll.u32 %v332_v34, 16  ;;  %v345_v38 = vshrl.u32 %v333_v35, 16  ;;  %v348_v39 = vshll.u32 %v333_v35, 16  ;;  %p3623_p7 = scmp.le.s32.totalorder %s4967_s21, 0 }
  0x1d   : > { %s5119_s17 = scalar_lea.vmem %s5968_s6, %s3620_s14  ;;  %v353_v42 = vshrl.u32 %v334_v40, 16  ;;  %v356_v43 = vshll.u32 %v334_v40, 16  ;;  %v335_v44 = vld [vmem:[%s5112_s13 + $0xc] sm:$0xf]  ;;  %v397_v4 = vld [vmem:[#allocation2 + $0x28] sm:$0xf] }
  0x1e   : > { %v339_v45 = vrot.slane %v337_v36, 7  ;;  %v347_v46 = vrot.slane %v345_v38, 7  ;;  %v361_v48 = vshrl.u32 %v335_v44, 16  ;;  %v364_v53 = vshll.u32 %v335_v44, 16  ;;  %v400_v5 = vld [vmem:[#allocation2 + $0x2c] sm:$0x1] }
  0x1f   : > { %v355_v52 = vrot.slane %v353_v42, 7  ;;  %s3624_s18 = sadd.s32 (!%p3623_p7), 4294967294, %s5075_s28  ;;  %v432_v20 = vld [vmem:[#allocation2] sm:$0xf] (!%p3623_p7)  ;;  %v435_v22 = vld [vmem:[#allocation2 + $0x4] sm:$0x1] (!%p3623_p7) }
  0x20   : > { %v342_v54 = vor.u32 %v340_v37, %v339_v45  ;;  %v343_v55 = vrot.slane %v339_v45, 4  ;;  %v350_v56 = vor.u32 %v348_v39, %v347_v46  ;;  %v351_v57 = vrot.slane %v347_v46, 4  ;;  %406 = sbr.rel (%p3623_p7) target bundleno = 45 (0x2d), region = 48  ;;  %s3625_s19 = sshll.u32 (!%p3623_p7), %s3624_s18, 2  ;;  %v438_v23 = vld [vmem:[#allocation2 + $0x8] sm:$0xf] (!%p3623_p7) }
  0x21   : > { %v358_v60 = vor.u32 %v356_v43, %v355_v52  ;;  %v359_v61 = vrot.slane %v355_v52, 4  ;;  %v363_v62 = vrot.slane %v361_v48, 7  ;;  %s409_s20 = scalar_lea.vmem (!%p3623_p7), %s5106_s8, %s3625_s19  ;;  %v441_v24 = vld [vmem:[#allocation2 + $0xc] sm:$0x1] (!%p3623_p7) }
  0x22   : > { %v380_v63 = vsel %vm5125_vm6, %v342_v54, %v379_v41  ;;  %v383_v0 = vsel %vm5055_vm2, %v343_v55, %v382_v50  ;;  %v386_v2 = vsel %vm5125_vm6, %v350_v56, %v385_v47  ;;  %v389_v3 = vsel %vm5055_vm2, %v351_v57, %v388_v51  ;;  %v410_v13 = vld [vmem:[%s409_s20] sm:$0xf] (!%p3623_p7)  ;;  %v411_v14 = vld [vmem:[%s409_s20 + $0x4] sm:$0xf] (!%p3623_p7) }
  0x23   : > { %381 = vst [vmem:[#allocation2 + $0x10] sm:$0xf] %v380_v63  ;;  %384 = vst [vmem:[#allocation2 + $0x14] sm:$0x1] %v383_v0  ;;  %v392_v6 = vsel %vm5125_vm6, %v358_v60, %v391_v58  ;;  %v395_v7 = vsel %vm5055_vm2, %v359_v61, %v394_v59  ;;  %v366_v9 = vor.u32 %v364_v53, %v363_v62  ;;  %v367_v10 = vrot.slane %v363_v62, 4 }
  0x24   : > { %387 = vst [vmem:[#allocation2 + $0x18] sm:$0xf] %v386_v2  ;;  %390 = vst [vmem:[#allocation2 + $0x1c] sm:$0x1] %v389_v3  ;;  %v413_v15 = vshrl.u32 (!%p3623_p7), %v410_v13, 16  ;;  %v416_v16 = vshll.u32 (!%p3623_p7), %v410_v13, 16 }
  0x25   : > { %393 = vst [vmem:[#allocation2 + $0x20] sm:$0xf] %v392_v6  ;;  %396 = vst [vmem:[#allocation2 + $0x24] sm:$0x1] %v395_v7  ;;  %v398_v11 = vsel %vm5125_vm6, %v366_v9, %v397_v4  ;;  %v401_v12 = vsel %vm5055_vm2, %v367_v10, %v400_v5  ;;  %v421_v17 = vshrl.u32 (!%p3623_p7), %v411_v14, 16  ;;  %v424_v18 = vshll.u32 (!%p3623_p7), %v411_v14, 16 }
  0x26   : > { %399 = vst [vmem:[#allocation2 + $0x28] sm:$0xf] %v398_v11  ;;  %402 = vst [vmem:[#allocation2 + $0x2c] sm:$0x1] %v401_v12  ;;  %v415_v19 = vrot.slane (!%p3623_p7), %v413_v15, 7 }
  0x27   : > { %v423_v21 = vrot.slane %v421_v17, 7 }
  0x28   : > { %v418_v25 = vor.u32 %v416_v16, %v415_v19  ;;  %v419_v26 = vrot.slane %v415_v19, 4 }
  0x29   : > { %v426_v27 = vor.u32 %v424_v18, %v423_v21  ;;  %v427_v28 = vrot.slane %v423_v21, 4 }
  0x2a   : > { %v433_v29 = vsel %vm5125_vm6, %v418_v25, %v432_v20  ;;  %v436_v30 = vsel %vm5055_vm2, %v419_v26, %v435_v22 }
  0x2b   : > { %v439_v31 = vsel %vm5125_vm6, %v426_v27, %v438_v23  ;;  %v442_v32 = vsel %vm5055_vm2, %v427_v28, %v441_v24  ;;  %434 = vst [vmem:[#allocation2] sm:$0xf] %v433_v29  ;;  %437 = vst [vmem:[#allocation2 + $0x4] sm:$0x1] %v436_v30 }
  0x2c   : > { %440 = vst [vmem:[#allocation2 + $0x8] sm:$0xf] %v439_v31  ;;  %443 = vst [vmem:[#allocation2 + $0xc] sm:$0x1] %v442_v32 }
  0x2d PF: > { %p3626_p8 = scmp.ne.s32.totalorder %s4967_s21, 0 }
  0x2f   : > { %447 = sbr.rel (%p3626_p8) target bundleno = 54 (0x36), region = 52 }
  0x32   : > { %v448_v33 = vld [vmem:[#allocation2] sm:$0xf] (!%p3626_p8)  ;;  %v451_v34 = vld [vmem:[#allocation2 + $0x4] sm:$0x1] (!%p3626_p8) }
  0x33   : > { %v454_v35 = vld [vmem:[#allocation2 + $0x8] sm:$0xf] (!%p3626_p8)  ;;  %v449_v36 = vsel (!%p3626_p8), %vm5125_vm6, 0, %v448_v33  ;;  %v452_v37 = vsel (!%p3626_p8), %vm5055_vm2, 0, %v451_v34  ;;  %v457_v39 = vld [vmem:[#allocation2 + $0xc] sm:$0x1] (!%p3626_p8) }
  0x34   : > { %v455_v38 = vsel (!%p3626_p8), %vm5125_vm6, 0, %v454_v35  ;;  %450 = vst [vmem:[#allocation2] sm:$0xf] (!%p3626_p8), %v449_v36  ;;  %453 = vst [vmem:[#allocation2 + $0x4] sm:$0x1] (!%p3626_p8), %v452_v37  ;;  %v458_v40 = vsel (!%p3626_p8), %vm5055_vm2, 0, %v457_v39 }
  0x35   : > { %456 = vst [vmem:[#allocation2 + $0x8] sm:$0xf] (!%p3626_p8), %v455_v38  ;;  %459 = vst [vmem:[#allocation2 + $0xc] sm:$0x1] (!%p3626_p8), %v458_v40 }
  0x36 PF: > { %p3627_p9 = scmp.ge.s32.totalorder %s4967_s21, 1 }
  0x37   : > { %v3630_v41 = vld [vmem:[%s5112_s13 + $0x10] sm:$0xf] (!%p3627_p9)  ;;  %v3631_v44 = vld [vmem:[%s5112_s13 + $0x14] sm:$0xf] (!%p3627_p9)  ;;  %v496_v54 = vld [vmem:[#allocation2 + $0x38] sm:$0xf] (!%p3627_p9) }
  0x38   : > { %463 = sbr.rel (%p3627_p9) target bundleno = 65 (0x41), region = 56  ;;  %v470_v42 = vshrl.u32 (!%p3627_p9), %v3630_v41, 16  ;;  %v473_v43 = vshll.u32 (!%p3627_p9), %v3630_v41, 16  ;;  %v478_v45 = vshrl.u32 (!%p3627_p9), %v3631_v44, 16  ;;  %v481_v46 = vshll.u32 (!%p3627_p9), %v3631_v44, 16 }
  0x39   : > { %v490_v48 = vld [vmem:[#allocation2 + $0x30] sm:$0xf] (!%p3627_p9)  ;;  %v493_v50 = vld [vmem:[#allocation2 + $0x34] sm:$0x1] (!%p3627_p9)  ;;  %v499_v55 = vld [vmem:[#allocation2 + $0x3c] sm:$0x1] (!%p3627_p9) }
  0x3a   : > { %v472_v47 = vrot.slane (!%p3627_p9), %v470_v42, 7  ;;  %v480_v51 = vrot.slane (!%p3627_p9), %v478_v45, 7 }
  0x3c   : > { %v475_v52 = vor.u32 (!%p3627_p9), %v473_v43, %v472_v47  ;;  %v476_v53 = vrot.slane (!%p3627_p9), %v472_v47, 4  ;;  %v483_v56 = vor.u32 (!%p3627_p9), %v481_v46, %v480_v51  ;;  %v484_v57 = vrot.slane (!%p3627_p9), %v480_v51, 4 }
  0x3e   : > { %v491_v58 = vsel (!%p3627_p9), %vm5125_vm6, %v475_v52, %v490_v48  ;;  %v494_v59 = vsel (!%p3627_p9), %vm5055_vm2, %v476_v53, %v493_v50  ;;  %v497_v60 = vsel (!%p3627_p9), %vm5125_vm6, %v483_v56, %v496_v54  ;;  %v500_v61 = vsel (!%p3627_p9), %vm5055_vm2, %v484_v57, %v499_v55 }
  0x3f   : > { %492 = vst [vmem:[#allocation2 + $0x30] sm:$0xf] %v491_v58  ;;  %495 = vst [vmem:[#allocation2 + $0x34] sm:$0x1] %v494_v59 }
  0x40   : > { %498 = vst [vmem:[#allocation2 + $0x38] sm:$0xf] %v497_v60  ;;  %501 = vst [vmem:[#allocation2 + $0x3c] sm:$0x1] %v500_v61 }
  0x41 PF: > { %p3632_p10 = scmp.ne.s32.totalorder %s4967_s21, 1 }
  0x43   : > { %505 = sbr.rel (%p3632_p10) target bundleno = 75 (0x4b), region = 60 }
  0x47   : > { %v513_v0 = vld [vmem:[#allocation2 + $0x38] sm:$0xf] (!%p3632_p10)  ;;  %v516_v5 = vld [vmem:[#allocation2 + $0x3c] sm:$0x1] (!%p3632_p10) }
  0x48   : > { %v507_v62 = vld [vmem:[#allocation2 + $0x30] sm:$0xf] (!%p3632_p10)  ;;  %v510_v63 = vld [vmem:[#allocation2 + $0x34] sm:$0x1] (!%p3632_p10)  ;;  %v514_v4 = vsel (!%p3632_p10), %vm5125_vm6, 0, %v513_v0  ;;  %v517_v6 = vsel (!%p3632_p10), %vm5055_vm2, 0, %v516_v5 }
  0x49   : > { %v508_v2 = vsel (!%p3632_p10), %vm5125_vm6, 0, %v507_v62  ;;  %v511_v3 = vsel (!%p3632_p10), %vm5055_vm2, 0, %v510_v63  ;;  %515 = vst [vmem:[#allocation2 + $0x38] sm:$0xf] (!%p3632_p10), %v514_v4  ;;  %518 = vst [vmem:[#allocation2 + $0x3c] sm:$0x1] (!%p3632_p10), %v517_v6 }
  0x4a   : > { %509 = vst [vmem:[#allocation2 + $0x30] sm:$0xf] %v508_v2  ;;  %512 = vst [vmem:[#allocation2 + $0x34] sm:$0x1] %v511_v3 }
  0x4b PF: > { %v4750_v7 = vld [vmem:[%s5963_s1 + $0xc0] sm:$0xff]   ;;  %v4985_v9 = vmov 0.0   ;;  %v4751_v10 = vld [vmem:[%s5963_s1 + $0xc8] sm:$0xff]   ;;  %vm4986_vm7 = vmmov 0   ;;  %v4752_v11 = vld [vmem:[%s5963_s1 + $0xd0] sm:$0xff]  }
  0x4c   : > { %4259 = vmatprep.subr.bf16.mxu1 %v4985_v9  ;;  %4455 = vmatprep.subr.bf16.mxu0 %v4985_v9  ;;  %v4758_v12 = vld [vmem:[#allocation2 + $0x8] ss:$0 sps:$4 sm:$0xff]   ;;  %v528_v13 = vld [vmem:[#allocation2 + $0x10] sm:$0xf]  ;;  %v4759_v14 = vld [vmem:[#allocation2 + $0x18] ss:$0 sps:$4 sm:$0xff]  }
  0x4d   : > { %4260 = vmatpush3.bf16.msra.mxu1 %v4750_v7  ;;  %4275 = vmatprep.mubr.msk.bf16.mxu1 %vm4986_vm7, %v4985_v9  ;;  %529 = vst [vmem:[#allocation3 + $0x8] sm:$0xf] %v528_v13  ;;  %v4753_v15 = vld [vmem:[%s5963_s1 + $0xd8] sm:$0xff]   ;;  %527 = vst [vmem:[#allocation3] sm:$0xf0] %v4758_v12  ;;  %v4754_v16 = vld [vmem:[%s5963_s1 + $0xe0] sm:$0xff]  }
  0x4e   : > { %4261 = vmatprep.subr.bf16.mxu1 %v4985_v9  ;;  %4471 = vmatprep.mubr.msk.bf16.mxu0 %vm4986_vm7, %v4985_v9  ;;  %536 = vst [vmem:[#allocation3 + $0x8] sm:$0xf0] %v4759_v14  ;;  %v538_v17 = vld [vmem:[#allocation2 + $0x20] sm:$0xf]  ;;  %v4764_v18 = vld [vmem:[#allocation2 + $0x28] ss:$0 sps:$4 sm:$0xff]  }
  0x4f   : > { %539 = vst [vmem:[#allocation3 + $0x10] sm:$0xf] %v538_v17  ;;  %546 = vst [vmem:[#allocation3 + $0x10] sm:$0xf0] %v4764_v18  ;;  %v4755_v20 = vld [vmem:[%s5963_s1 + $0xe8] sm:$0xff]   ;;  %v4756_v23 = vld [vmem:[%s5963_s1 + $0xf0] sm:$0xff]  }
  0x50   : > { %v519_v22 = vld [vmem:[#allocation2] sm:$0xf]  ;;  %v4770_v26 = vld [vmem:[#allocation2 + $0x8] sm:$0x1f]   ;;  %v4757_v31 = vld [vmem:[%s5963_s1 + $0xf8] sm:$0xff]  }
  0x51   : > { %4262 = vmatpush3.bf16.msra.mxu1 %v4751_v10  ;;  %v548_v19 = vld [vmem:[#allocation2 + $0x30] sm:$0xf]  ;;  %520 = vst [vmem:[#allocation3] sm:$0xf] %v519_v22  ;;  %v4769_v25 = vld [vmem:[#allocation2] sm:$0x1f]  }
  0x52   : > { %4263 = vmatprep.subr.bf16.mxu1 %v4985_v9  ;;  %549 = vst [vmem:[#allocation3 + $0x18] sm:$0xf] %v548_v19  ;;  %v958_v27 = vshrl.u32 %v4769_v25, 16  ;;  %v960_v28 = vshll.u32 %v4769_v25, 16  ;;  %v974_v29 = vshrl.u32 %v4770_v26, 16  ;;  %v977_v30 = vshll.u32 %v4770_v26, 16 }
  0x53   : > { %v4773_v39 = vld [vmem:[#allocation2 + $0x10] sm:$0x1f]   ;;  %v4774_v42 = vld [vmem:[#allocation2 + $0x18] sm:$0x1f]   ;;  %v4760_v45 = vld [vmem:[%s5963_s1] sm:$0xff]  }
  0x54   : > { %v576_v21 = vld [vmem:[#allocation3] sm:$0xf0]  ;;  %v962_v33 = vrot.slane %v960_v28, 1  ;;  %v976_v36 = vrot.slane %v974_v29, 4  ;;  %v979_v37 = vrot.slane %v977_v30, 5  ;;  %v991_v43 = vshrl.u32 %v4773_v39, 16 }
  0x55   : > { %4264 = vmatpush3.bf16.msra.mxu1 %v4752_v11  ;;  %v5221_v24 = vld [vmem:[#allocation3 + $0x8] sm:$0xff]  ;;  %v601_v32 = vrot.slane %v576_v21, 4  ;;  %v993_v44 = vshll.u32 %v4773_v39, 16  ;;  %v1007_v46 = vshrl.u32 %v4774_v42, 16  ;;  %v1010_v47 = vshll.u32 %v4774_v42, 16  ;;  %v4762_v0 = vld [vmem:[%s5963_s1 + $0x10] sm:$0xff]  }
  0x56   : > { %4265 = vmatprep.subr.bf16.mxu1 %v4985_v9  ;;  %v602_v34 = vrot.slane %v5221_v24, 4  ;;  %v5228_v35 = vld [vmem:[#allocation3 + $0x10] sm:$0xff]  ;;  %v963_v38 = vor.u32 %v962_v33, %v958_v27  ;;  %v980_v41 = vor.u32 %v979_v37, %v976_v36  ;;  %v4777_v54 = vld [vmem:[#allocation2 + $0x20] sm:$0x1f]   ;;  %v4761_v55 = vld [vmem:[%s5963_s1 + $0x8] sm:$0xff]  }
  0x57   : > { %v604_v50 = vrot.slane %v5228_v35, 4  ;;  %v995_v51 = vrot.slane %v993_v44, 1  ;;  %v1009_v52 = vrot.slane %v1007_v46, 4  ;;  %v1012_v53 = vrot.slane %v1010_v47, 5  ;;  %v4778_v57 = vld [vmem:[#allocation2 + $0x28] sm:$0x1f]  }
  0x58   : > { %v5231_v40 = vld [vmem:[#allocation3] sm:$0xff]  ;;  %v603_v48 = vsel %vm377_vm5, %v601_v32, %v602_v34  ;;  %v1024_v59 = vshrl.u32 %v4777_v54, 16  ;;  %v1026_v60 = vshll.u32 %v4777_v54, 16  ;;  %v1040_v61 = vshrl.u32 %v4778_v57, 16  ;;  %v4763_v10 = vld [vmem:[%s5963_s1 + $0x18] sm:$0xff]   ;;  %v4766_v21 = vld [vmem:[%s5963_s1 + $0x28] sm:$0xff]  }
  0x59   : > { %4266 = vmatpush3.bf16.msra.mxu1 %v4753_v15  ;;  %965 = vst [vmem:[#allocation3] sm:$0xf] %v963_v38  ;;  %982 = vst [vmem:[#allocation3] sm:$0xf0] %v980_v41  ;;  %v996_v56 = vor.u32 %v995_v51, %v991_v43  ;;  %v1013_v58 = vor.u32 %v1012_v53, %v1009_v52  ;;  %v1043_v62 = vshll.u32 %v4778_v57, 16  ;;  %v4767_v28 = vld [vmem:[%s5963_s1 + $0x30] sm:$0xff]  }
  0x5a   : > { %4267 = vmatprep.subr.bf16.mxu1 %v4985_v9  ;;  %v1028_v63 = vrot.slane %v1026_v60, 1  ;;  %v1042_v2 = vrot.slane %v1040_v61, 4  ;;  %v605_v5 = vsel %vm377_vm5, %v602_v34, %v604_v50  ;;  %v579_v6 = vld [vmem:[#allocation3 + $0x18] sm:$0xf]  ;;  %v4788_v13 = vld [vmem:[#allocation2 + $0x30] sm:$0x1f]  }
  0x5b   : > { %998 = vst [vmem:[#allocation3 + $0x8] sm:$0xf] %v996_v56  ;;  %1015 = vst [vmem:[#allocation3 + $0x8] sm:$0xf0] %v1013_v58  ;;  %v1045_v3 = vrot.slane %v1043_v62, 5  ;;  %v606_v11 = vrot.slane %v579_v6, 4 }
  0x5c   : > { %v1029_v4 = vor.u32 %v1028_v63, %v1024_v59  ;;  %v4787_v12 = vld [vmem:[#allocation2 + $0x38] ss:$0 sps:$4 sm:$0xff]   ;;  %v1057_v14 = vshrl.u32 %v4788_v13, 16  ;;  %v1059_v15 = vshll.u32 %v4788_v13, 16  ;;  %v4800_v26 = vld [vmem:[#allocation2 + $0x10] sm:$0x1e]  }
  0x5d   : > { %4268 = vmatpush3.bf16.msra.mxu1 %v4754_v16  ;;  %v1046_v7 = vor.u32 %v1045_v3, %v1042_v2  ;;  %556 = vst [vmem:[#allocation3 + $0x18] sm:$0xf0] %v4787_v12  ;;  %v4765_v16 = vld [vmem:[%s5963_s1 + $0x20] sm:$0xff]   ;;  %v607_v17 = vsel %vm377_vm5, %v604_v50, %v606_v11  ;;  %v4801_v27 = vld [vmem:[#allocation2 + $0x18] sm:$0x1e]   ;;  %v1550_v29 = vrot.slane %v4800_v26, 1 }
  0x5e   : > { %4269 = vmatprep.subr.bf16.mxu1 %v4985_v9  ;;  %1031 = vst [vmem:[#allocation3 + $0x10] sm:$0xf] %v1029_v4  ;;  %v1061_v18 = vrot.slane %v1059_v15, 1  ;;  %v4768_v32 = vld [vmem:[%s5963_s1 + $0x38] sm:$0xff]   ;;  %v4771_v33 = vld [vmem:[%s5963_s1 + $0x140] sm:$0xff]   ;;  %v4772_v37 = vld [vmem:[%s5963_s1 + $0x148] sm:$0xff]  }
  0x5f   : > { %1048 = vst [vmem:[#allocation3 + $0x10] sm:$0xf0] %v1046_v7  ;;  %v4820_v34 = vld [vmem:[#allocation2 + $0x8] sm:$0x1e]   ;;  %v4823_v39 = vld [vmem:[#allocation2 + $0x20] sm:$0x1e]  }
  0x60   : > { %v1062_v19 = vor.u32 %v1061_v18, %v1057_v14  ;;  %v5269_v25 = vld [vmem:[#allocation3] sm:$0xff]  ;;  %v1540_v38 = vrot.slane %v4820_v34, 5  ;;  %v4824_v41 = vld [vmem:[#allocation2 + $0x28] sm:$0x1e]   ;;  %v1570_v42 = vrot.slane %v4823_v39, 1  ;;  %v4781_v56 = vld [vmem:[%s5963_s1 + $0x170] sm:$0xff]  }
  0x61   : > { %4270 = vmatpush3.bf16.msra.mxu1 %v4755_v20  ;;  %v4793_v20 = vld [vmem:[#allocation2] sm:$0x1e]   ;;  %v1580_v44 = vrot.slane %v4824_v41, 5  ;;  %v4835_v47 = vld [vmem:[#allocation2 + $0x38] sm:$0x1f]   ;;  %v4780_v51 = vld [vmem:[%s5963_s1 + $0x168] sm:$0xff]  }
  0x62   : > { %4271 = vmatprep.subr.bf16.mxu1 %v4985_v9  ;;  %v5275_v30 = vld [vmem:[#allocation3 + $0x8] sm:$0xff]  ;;  %v5285_v36 = vld [vmem:[#allocation3] sm:$0xf0]  ;;  %v1076_v50 = vshll.u32 %v4835_v47, 16  ;;  %v4836_v54 = vld [vmem:[#allocation2 + $0x30] sm:$0x1e]  }
  0x63   : > { %1552 = vst [vmem:[#allocation3 + $0x8] sm:$0xf] %v1550_v29  ;;  %1542 = vst [vmem:[#allocation3] sm:$0xf0] %v1540_v38  ;;  %v4779_v46 = vld [vmem:[%s5963_s1 + $0x160] sm:$0xff]   ;;  %v1590_v58 = vrot.slane %v4836_v54, 1 }
  0x64   : > { %v5266_v22 = vld [vmem:[#allocation3 + $0x18] sm:$0xff]  ;;  %v1078_v53 = vrot.slane %v1076_v50, 5  ;;  %v4783_v63 = vld [vmem:[%s5963_s1 + $0x40] sm:$0xff]   ;;  %v4784_v2 = vld [vmem:[%s5963_s1 + $0x48] sm:$0xff]   ;;  %v1237_v41 = vrot.slane %v5285_v36, 4 }
  0x65   : > { %4272 = vmatpush3.bf16.msra.mxu1 %v4756_v23  ;;  %v1530_v23 = vrot.slane %v4793_v20, 1  ;;  %1064 = vst [vmem:[#allocation3 + $0x18] sm:$0xf] %v1062_v19  ;;  %v4782_v60 = vld [vmem:[%s5963_s1 + $0x178] sm:$0xff]   ;;  %v4844_v3 = vld [vmem:[%s5963_s1 + $0x1c8] sm:$0xff]   ;;  %v4846_v4 = vld [vmem:[%s5963_s1 + $0x1d0] sm:$0xff]  }
  0x66   : > { %4273 = vmatprep.subr.bf16.mxu1 %v4985_v9  ;;  %v5294_v43 = vld [vmem:[#allocation3 + $0x10] sm:$0xff]  ;;  %v4848_v6 = vld [vmem:[%s5963_s1 + $0x1d8] sm:$0xff]   ;;  %v4850_v7 = vld [vmem:[%s5963_s1 + $0x1e0] sm:$0xff]  }
  0x67   : > { %1532 = vst [vmem:[#allocation3] sm:$0xf] %v1530_v23  ;;  %1572 = vst [vmem:[#allocation3 + $0x10] sm:$0xf] %v1570_v42  ;;  %v4852_v11 = vld [vmem:[%s5963_s1 + $0x1e8] sm:$0xff]   ;;  %v4791_v12 = vld [vmem:[%s5963_s1 + $0x70] sm:$0xff]  }
  0x68   : > { %1582 = vst [vmem:[#allocation3 + $0x10] sm:$0xf0] %v1580_v44  ;;  %v4854_v13 = vld [vmem:[%s5963_s1 + $0x1f0] sm:$0xff]   ;;  %v4792_v14 = vld [vmem:[%s5963_s1 + $0x78] sm:$0xff]   ;;  %v4796_v15 = vld [vmem:[%s5964_s2 + $0x4] ss:$8 sps:$4 sm:$0xff]  }
  0x69   : > { %4274 = vmatpush3.bf16.msra.mxu1 %v4757_v31  ;;  %v1560_v31 = vrot.slane %v4801_v27, 5  ;;  %v4799_v18 = vld [vmem:[%s5964_s2 + $0x14] ss:$8 sps:$4 sm:$0xff]   ;;  %v4797_v20 = vld [vmem:[%s5964_s2 + $0x10] ss:$8 sps:$4 sm:$0xff]   ;;  %v1238_v42 = vrot.slane %v5275_v30, 4 }
  0x6a   : > { %4287 = vmatprep.subr.bf16.mxu1 %v4985_v9  ;;  %v4807_v23 = vld [vmem:[%s5964_s2 + $0x34] ss:$8 sps:$4 sm:$0xff]   ;;  %v4805_v26 = vld [vmem:[%s5964_s2 + $0x30] ss:$8 sps:$4 sm:$0xff]   ;;  %v4810_v27 = vld [vmem:[%s5964_s2 + $0x44] ss:$8 sps:$4 sm:$0xff]  }
  0x6b   : > { %1562 = vst [vmem:[#allocation3 + $0x8] sm:$0xf0] %v1560_v31  ;;  %v4808_v29 = vld [vmem:[%s5964_s2 + $0x40] ss:$8 sps:$4 sm:$0xff]   ;;  %v4813_v31 = vld [vmem:[%s5964_s2 + $0x54] ss:$8 sps:$4 sm:$0xff]   ;;  %v1239_v44 = vsel %vm377_vm5, %v1237_v41, %v1238_v42 }
  0x6c   : > { %4276 = vmatmul.mubr.bf16.vlgmr.msra.gmra.mrb[0].mxu1 %v603_v48  ;;  %v1073_v48 = vshrl.u32 %v4835_v47, 16  ;;  %v5326_v61 = vld [vmem:[#allocation3 + $0x18] sm:$0xf]  ;;  %v4816_v34 = vld [vmem:[%s5964_s2 + $0x64] ss:$8 sps:$4 sm:$0xff]   ;;  %v1240_v36 = vrot.slane %v5294_v43, 4 }
  0x6d   : > { %4288 = vmatpush3.bf16.msra.mxu1 %v4760_v45  ;;  %4279 = vmatprep.mubr.msk.bf16.mxu1 %vm4986_vm7, %v4985_v9  ;;  %v4776_v45 = vld [vmem:[%s5963_s1 + $0x158] sm:$0xff]   ;;  %v4825_v47 = vld [vmem:[%s5963_s1 + $0x190] sm:$0xff]   ;;  %v1242_v50 = vrot.slane %v5326_v61, 4 }
  0x6e   : > { %4289 = vmatprep.subr.bf16.mxu1 %v4985_v9  ;;  %v1075_v52 = vrot.slane %v1073_v48, 4  ;;  %v4819_v38 = vld [vmem:[%s5964_s2 + $0x74] ss:$8 sps:$4 sm:$0xff]   ;;  %v4817_v39 = vld [vmem:[%s5964_s2 + $0x70] ss:$8 sps:$4 sm:$0xff]  }
  0x6f   : > { %v4826_v48 = vld [vmem:[%s5963_s1 + $0x198] sm:$0xff]   ;;  %v4829_v54 = vld [vmem:[%s5963_s1 + $0x1b0] sm:$0xff]  }
  0x70   : > { %v1079_v57 = vor.u32 %v1078_v53, %v1075_v52  ;;  %v4827_v52 = vld [vmem:[%s5963_s1 + $0x1a0] sm:$0xff]   ;;  %v4828_v53 = vld [vmem:[%s5963_s1 + $0x1a8] sm:$0xff]   ;;  %v4841_v61 = vld [vmem:[%s5963_s1 + $0xb8] sm:$0xff]  }
  0x71   : > { %4290 = vmatpush3.bf16.msra.mxu1 %v4761_v55  ;;  %v4837_v55 = vld [vmem:[#allocation2 + $0x38] sm:$0x1e]  }
  0x72   : > { %4291 = vmatprep.subr.bf16.mxu1 %v4985_v9  ;;  %1081 = vst [vmem:[#allocation3 + $0x18] sm:$0xf0] %v1079_v57  ;;  %v1600_v59 = vrot.slane %v4837_v55, 5  ;;  %v5411_v19 = vld [vmem:[#allocation3 + $0x8] sm:$0xff]  ;;  %v4830_v55 = vld [vmem:[%s5963_s1 + $0x1b8] sm:$0xff]  }
  0x73   : > { %v4832_v57 = vld [vmem:[%s5963_s1 + $0x88] sm:$0xff]  }
  0x74   : > { %4280 = vmatmul.mubr.bf16.gmra.mrb[4].mxu1 %v605_v5  ;;  %v4786_v5 = vld [vmem:[%s5963_s1 + $0x58] sm:$0xff]  }
  0x75   : > { %4292 = vmatpush3.bf16.msra.mxu1 %v4762_v0  ;;  %4283 = vmatprep.mubr.msk.bf16.mxu1 %vm4986_vm7, %v4985_v9  ;;  %v4842_v0 = vld [vmem:[%s5963_s1 + $0x1c0] sm:$0xff]  }
  0x76   : > { %4293 = vmatprep.subr.bf16.mxu1 %v4985_v9  ;;  %4456 = vmatpush3.bf16.msra.mxu0 %v4842_v0  ;;  %v4845_v0 = vld [vmem:[%s5963_s1 + $0x108] sm:$0xff]  }
  0x77   : > { %4457 = vmatprep.subr.bf16.mxu0 %v4985_v9 }
  0x79   : > { %4294 = vmatpush3.bf16.msra.mxu1 %v4763_v10  ;;  %v5328_v62 = vld [vmem:[#allocation3 + $0x18] sm:$0xff]  ;;  %v4790_v10 = vld [vmem:[%s5963_s1 + $0x68] sm:$0xff]  }
  0x7a   : > { %4295 = vmatprep.subr.bf16.mxu1 %v4985_v9  ;;  %1592 = vst [vmem:[#allocation3 + $0x18] sm:$0xf] %v1590_v58  ;;  %1602 = vst [vmem:[#allocation3 + $0x18] sm:$0xf0] %v1600_v59  ;;  %4458 = vmatpush3.bf16.msra.mxu0 %v4844_v3  ;;  %v4833_v58 = vld [vmem:[%s5963_s1 + $0x90] sm:$0xff]   ;;  %v4838_v59 = vld [vmem:[%s5963_s1 + $0xa0] sm:$0xff]  }
  0x7b   : > { %4459 = vmatprep.subr.bf16.mxu0 %v4985_v9  ;;  %v4849_v3 = vld [vmem:[%s5963_s1 + $0x118] sm:$0xff]  }
  0x7c   : > { %4284 = vmatmul.mubr.bf16.gmra.mrb[8].mxu1 %v607_v17  ;;  %v4794_v17 = vld [vmem:[%s5964_s2] ss:$8 sps:$4 sm:$0xff]  }
  0x7d   : > { %4296 = vmatpush3.bf16.msra.mxu1 %v4765_v16  ;;  %4303 = vmatprep.mubr.msk.bf16.mxu1 %vm4986_vm7, %v4985_v9  ;;  %v4856_v16 = vld [vmem:[%s5963_s1 + $0x1f8] sm:$0xff]  }
  0x7e   : > { %4297 = vmatprep.subr.bf16.mxu1 %v4985_v9  ;;  %4460 = vmatpush3.bf16.msra.mxu0 %v4846_v4  ;;  %v4853_v4 = vld [vmem:[%s5963_s1 + $0x128] sm:$0xff]  }
  0x7f   : > { %4461 = vmatprep.subr.bf16.mxu0 %v4985_v9 }
  0x81   : > { %4298 = vmatpush3.bf16.msra.mxu1 %v4766_v21  ;;  %v4804_v21 = vld [vmem:[%s5964_s2 + $0x24] ss:$8 sps:$4 sm:$0xff]  }
  0x82   : > { %4299 = vmatprep.subr.bf16.mxu1 %v4985_v9  ;;  %4462 = vmatpush3.bf16.msra.mxu0 %v4848_v6 }
  0x83   : > { %4463 = vmatprep.subr.bf16.mxu0 %v4985_v9 }
  0x85   : > { %4300 = vmatpush3.bf16.msra.mxu1 %v4767_v28  ;;  %v1880_v28 = vld [vmem:[#allocation3 + $0x18] sm:$0xff] }
  0x86   : > { %4301 = vmatprep.subr.bf16.mxu1 %v4985_v9  ;;  %4464 = vmatpush3.bf16.msra.mxu0 %v4850_v7  ;;  %v4855_v7 = vld [vmem:[%s5963_s1 + $0x130] sm:$0xff]  }
  0x87   : > { %4465 = vmatprep.subr.bf16.mxu0 %v4985_v9 }
  0x89   : > { %4302 = vmatpush3.bf16.msra.mxu1 %v4768_v32  ;;  %v4811_v32 = vld [vmem:[%s5964_s2 + $0x50] ss:$8 sps:$4 sm:$0xff]  }
  0x8a   : > { %4315 = vmatprep.subr.bf16.mxu1 %v4985_v9  ;;  %4466 = vmatpush3.bf16.msra.mxu0 %v4852_v11  ;;  %v1734_v11 = vld [vmem:[#allocation3] sm:$0xf0] }
  0x8b   : > { %4467 = vmatprep.subr.bf16.mxu0 %v4985_v9 }
  0x8c   : > { %4304 = vmatmul.mubr.bf16.vlgmr.msra.gmra.mrb[12].mxu1 %v5231_v40  ;;  %v4775_v40 = vld [vmem:[%s5963_s1 + $0x150] sm:$0xff]  }
  0x8d   : > { %4316 = vmatpush3.bf16.msra.mxu1 %v4771_v33  ;;  %4307 = vmatprep.mubr.msk.bf16.mxu1 %vm4986_vm7, %v4985_v9  ;;  %v4987_v33 = vmov 0  }
  0x8e   : > { %4317 = vmatprep.subr.bf16.mxu1 %v4985_v9  ;;  %4468 = vmatpush3.bf16.msra.mxu0 %v4854_v13  ;;  %v1759_v13 = vrot.slane %v1734_v11, 4 }
  0x8f   : > { %4469 = vmatprep.subr.bf16.mxu0 %v4985_v9 }
  0x91   : > { %4318 = vmatpush3.bf16.msra.mxu1 %v4772_v37  ;;  %v4814_v37 = vld [vmem:[%s5964_s2 + $0x60] ss:$8 sps:$4 sm:$0xff]  }
  0x92   : > { %4319 = vmatprep.subr.bf16.mxu1 %v4985_v9  ;;  %4470 = vmatpush3.bf16.msra.mxu0 %v4856_v16 }
  0x94   : > { %4308 = vmatmul.mubr.bf16.gmra.mrb[4].mxu1 %v5221_v24 }
  0x95   : > { %4320 = vmatpush3.bf16.msra.mxu1 %v4775_v40  ;;  %4311 = vmatprep.mubr.msk.bf16.mxu1 %vm4986_vm7, %v4985_v9  ;;  %v4821_v40 = vld [vmem:[%s5963_s1 + $0x180] sm:$0xff]  }
  0x96   : > { %4321 = vmatprep.subr.bf16.mxu1 %v4985_v9  ;;  %4472 = vmatmul.mubr.bf16.vlgmr.msra.gmra.mrb[0].mxu0 %v5411_v19 }
  0x97   : > { %4475 = vmatprep.mubr.msk.bf16.mxu0 %vm4986_vm7, %v4985_v9 }
  0x99   : > { %4322 = vmatpush3.bf16.msra.mxu1 %v4776_v45  ;;  %v4822_v45 = vld [vmem:[%s5963_s1 + $0x188] sm:$0xff]  }
  0x9a   : > { %4323 = vmatprep.subr.bf16.mxu1 %v4985_v9 }
  0x9c   : > { %4312 = vmatmul.mubr.bf16.gmra.mrb[16].mxu1 %v5228_v35 }
  0x9d   : > { %4324 = vmatpush3.bf16.msra.mxu1 %v4779_v46  ;;  %4331 = vmatprep.mubr.msk.bf16.mxu1 %vm4986_vm7, %v4985_v9  ;;  %v1241_v46 = vsel %vm377_vm5, %v1238_v42, %v1240_v36 }
  0x9e   : > { %4325 = vmatprep.subr.bf16.mxu1 %v4985_v9 }
  0xa1   : > { %4326 = vmatpush3.bf16.msra.mxu1 %v4780_v51  ;;  %v1243_v51 = vsel %vm377_vm5, %v1240_v36, %v1242_v50 }
  0xa2   : > { %4327 = vmatprep.subr.bf16.mxu1 %v4985_v9 }
  0xa5   : > { %4328 = vmatpush3.bf16.msra.mxu1 %v4781_v56  ;;  %v4831_v56 = vld [vmem:[%s5963_s1 + $0x80] sm:$0xff]  }
  0xa6   : > { %4329 = vmatprep.subr.bf16.mxu1 %v4985_v9 }
  0xa9   : > { %4330 = vmatpush3.bf16.msra.mxu1 %v4782_v60  ;;  %v4840_v60 = vld [vmem:[%s5963_s1 + $0xb0] sm:$0xff]  }
  0xaa   : > { %4343 = vmatprep.subr.bf16.mxu1 %v4985_v9 }
  0xac   : > { %4332 = vmatmul.mubr.bf16.vlgmr.msra.gmra.mrb[20].mxu1 %v5221_v24  ;;  %v4785_v24 = vld [vmem:[%s5963_s1 + $0x50] sm:$0xff]  }
  0xad   : > { %4344 = vmatpush3.bf16.msra.mxu1 %v4783_v63  ;;  %4335 = vmatprep.mubr.msk.bf16.mxu1 %vm4986_vm7, %v4985_v9  ;;  %v4843_v63 = vld [vmem:[%s5963_s1 + $0x100] sm:$0xff]  }
  0xae   : > { %4345 = vmatprep.subr.bf16.mxu1 %v4985_v9 }
  0xb1   : > { %4346 = vmatpush3.bf16.msra.mxu1 %v4784_v2  ;;  %v4847_v2 = vld [vmem:[%s5963_s1 + $0x110] sm:$0xff]  }
  0xb2   : > { %4347 = vmatprep.subr.bf16.mxu1 %v4985_v9 }
  0xb4   : > { %4336 = vmatmul.mubr.bf16.gmra.mrb[4].mxu1 %v5228_v35  ;;  %v4789_v35 = vld [vmem:[%s5963_s1 + $0x60] sm:$0xff]  }
  0xb5   : > { %4348 = vmatpush3.bf16.msra.mxu1 %v4785_v24  ;;  %4339 = vmatprep.mubr.msk.bf16.mxu1 %vm4986_vm7, %v4985_v9  ;;  %v4851_v24 = vld [vmem:[%s5963_s1 + $0x120] sm:$0xff]  }
  0xb6   : > { %4349 = vmatprep.subr.bf16.mxu1 %v4985_v9 }
  0xb9   : > { %4350 = vmatpush3.bf16.msra.mxu1 %v4786_v5 }
  0xba   : > { %4351 = vmatprep.subr.bf16.mxu1 %v4985_v9 }
  0xbc   : > { %4340 = vmatmul.mubr.bf16.gmra.mrb[24].mxu1 %v5266_v22  ;;  %v4802_v22 = vld [vmem:[%s5964_s2 + $0x20] ss:$8 sps:$4 sm:$0xff]  }
  0xbd   : > { %4352 = vmatpush3.bf16.msra.mxu1 %v4789_v35  ;;  %4359 = vmatprep.mubr.msk.bf16.mxu1 %vm4986_vm7, %v4985_v9 }
  0xbe   : > { %4353 = vmatprep.subr.bf16.mxu1 %v4985_v9 }
  0xc1   : > { %4354 = vmatpush3.bf16.msra.mxu1 %v4790_v10 }
  0xc2   : > { %4355 = vmatprep.subr.bf16.mxu1 %v4985_v9 }
  0xc5   : > { %4356 = vmatpush3.bf16.msra.mxu1 %v4791_v12  ;;  %v4857_v12 = vld [vmem:[%s5963_s1 + $0x138] sm:$0xff]  }
  0xc6   : > { %4357 = vmatprep.subr.bf16.mxu1 %v4985_v9 }
  0xc9   : > { %4358 = vmatpush3.bf16.msra.mxu1 %v4792_v14  ;;  %v1760_v14 = vrot.slane %v5411_v19, 4 }
  0xca   : > { %1327 = vmatprep.subr.bf16.mxu1 %v4796_v15 }
  0xcb   : > { %v1761_v15 = vsel %vm377_vm5, %v1759_v13, %v1760_v14 }
  0xcc   : > { %4360 = vmatmul.mubr.bf16.vlgmr.msra.gmra.mrb[28].mxu1 %v5269_v25  ;;  %v5431_v25 = vld [vmem:[#allocation3 + $0x10] sm:$0xff] }
  0xcd   : > { %1328 = vmatpush1.bf16.msra.mxu1 %v4794_v17  ;;  %4363 = vmatprep.mubr.msk.bf16.mxu1 %vm4986_vm7, %v4985_v9  ;;  %v1762_v16 = vrot.slane %v5431_v25, 4 }
  0xce   : > { %1329 = vmatprep.subr.bf16.mxu1 %v4799_v18  ;;  %4476 = vmatmul.mubr.bf16.gmra.mrb[4].mxu0 %v5431_v25 }
  0xcf   : > { %4479 = vmatprep.mubr.msk.bf16.mxu0 %vm4986_vm7, %v4985_v9 }
  0xd1   : > { %1330 = vmatpush1.bf16.msra.mxu1 %v4797_v20  ;;  %v1763_v20 = vsel %vm377_vm5, %v1760_v14, %v1762_v16  ;;  %v2034_v14 = vld [vmem:[#allocation4 + $0x10] sm:$0x1] }
  0xd2   : > { %1331 = vmatprep.subr.bf16.mxu1 %v4804_v21 }
  0xd4   : > { %4364 = vmatmul.mubr.bf16.gmra.mrb[4].mxu1 %v5275_v30 }
  0xd5   : > { %1332 = vmatpush1.bf16.msra.mxu1 %v4802_v22  ;;  %4367 = vmatprep.mubr.msk.bf16.mxu1 %vm4986_vm7, %v4985_v9 }
  0xd6   : > { %1333 = vmatprep.subr.bf16.mxu1 %v4807_v23  ;;  %4480 = vmatmul.mubr.bf16.gmra.mrb[8].mxu0 %v1880_v28  ;;  %v1737_v23 = vld [vmem:[#allocation3 + $0x18] sm:$0xf] }
  0xd9   : > { %1334 = vmatpush1.bf16.msra.mxu1 %v4805_v26 }
  0xda   : > { %1335 = vmatprep.subr.bf16.mxu1 %v4810_v27 }
  0xdc   : > { %4368 = vmatmul.mubr.bf16.gmra.mrb[32].mxu1 %v5294_v43 }
  0xdd   : > { %1336 = vmatpush1.bf16.msra.mxu1 %v4808_v29  ;;  %1359 = vmatprep.mubr.bf16.mxu1 %v4987_v33 }
  0xde   : > { %1337 = vmatprep.subr.bf16.mxu1 %v4813_v31 }
  0xe1   : > { %1338 = vmatpush1.bf16.msra.mxu1 %v4811_v32 }
  0xe2   : > { %1339 = vmatprep.subr.bf16.mxu1 %v4816_v34 }
  0xe5   : > { %1340 = vmatpush1.bf16.msra.mxu1 %v4814_v37 }
  0xe6   : > { %1341 = vmatprep.subr.bf16.mxu1 %v4819_v38 }
  0xe9   : > { %1342 = vmatpush1.bf16.msra.mxu1 %v4817_v39 }
  0xea   : > { %4371 = vmatprep.subr.bf16.mxu1 %v4985_v9 }
  0xec   : > { %1360 = vmatmul.mubr.bf16.vlgmr.msra.gmra.mrb[36].mxu1 %v1239_v44 }
  0xed   : > { %4372 = vmatpush3.bf16.msra.mxu1 %v4821_v40  ;;  %1368 = vmatprep.mubr.bf16.mxu1 %v4987_v33 }
  0xee   : > { %4373 = vmatprep.subr.bf16.mxu1 %v4985_v9 }
  0xf1   : > { %4374 = vmatpush3.bf16.msra.mxu1 %v4822_v45 }
  0xf2   : > { %4375 = vmatprep.subr.bf16.mxu1 %v4985_v9 }
  0xf4   : > { %1369 = vmatmul.mubr.bf16.gmra.mrb[40].mxu1 %v1241_v46 }
  0xf5   : > { %4376 = vmatpush3.bf16.msra.mxu1 %v4825_v47  ;;  %1378 = vmatprep.mubr.bf16.mxu1 %v4987_v33 }
  0xf6   : > { %4377 = vmatprep.subr.bf16.mxu1 %v4985_v9 }
  0xf9   : > { %4378 = vmatpush3.bf16.msra.mxu1 %v4826_v48 }
  0xfa   : > { %4379 = vmatprep.subr.bf16.mxu1 %v4985_v9 }
  0xfc   : > { %1379 = vmatmul.mubr.bf16.gmra.mrb[44].mxu1 %v1243_v51 }
  0xfd   : > { %4380 = vmatpush3.bf16.msra.mxu1 %v4827_v52  ;;  %4387 = vmatprep.mubr.msk.bf16.mxu1 %vm4986_vm7, %v4985_v9 }
  0xfe   : > { %4381 = vmatprep.subr.bf16.mxu1 %v4985_v9 }
 0x101   : > { %4382 = vmatpush3.bf16.msra.mxu1 %v4828_v53 }
 0x102   : > { %4383 = vmatprep.subr.bf16.mxu1 %v4985_v9 }
 0x105   : > { %4384 = vmatpush3.bf16.msra.mxu1 %v4829_v54 }
 0x106   : > { %4385 = vmatprep.subr.bf16.mxu1 %v4985_v9 }
 0x109   : > { %4386 = vmatpush3.bf16.msra.mxu1 %v4830_v55 }
 0x10a   : > { %4399 = vmatprep.subr.bf16.mxu1 %v4985_v9 }
 0x10c   : > { %4388 = vmatmul.mubr.bf16.vlgmr.msra.gmra.mrb[48].mxu1 %v5275_v30  ;;  %v4834_v30 = vld [vmem:[%s5963_s1 + $0x98] sm:$0xff]  }
 0x10d   : > { %4400 = vmatpush3.bf16.msra.mxu1 %v4831_v56  ;;  %4391 = vmatprep.mubr.msk.bf16.mxu1 %vm4986_vm7, %v4985_v9 }
 0x10e   : > { %4401 = vmatprep.subr.bf16.mxu1 %v4985_v9 }
 0x111   : > { %4402 = vmatpush3.bf16.msra.mxu1 %v4832_v57 }
 0x112   : > { %4403 = vmatprep.subr.bf16.mxu1 %v4985_v9 }
 0x114   : > { %4392 = vmatmul.mubr.bf16.gmra.mrb[52].mxu1 %v5294_v43  ;;  %v4839_v43 = vld [vmem:[%s5963_s1 + $0xa8] sm:$0xff]  }
 0x115   : > { %4404 = vmatpush3.bf16.msra.mxu1 %v4833_v58  ;;  %4395 = vmatprep.mubr.msk.bf16.mxu1 %vm4986_vm7, %v4985_v9 }
 0x116   : > { %4405 = vmatprep.subr.bf16.mxu1 %v4985_v9 }
 0x119   : > { %4406 = vmatpush3.bf16.msra.mxu1 %v4834_v30 }
 0x11a   : > { %4407 = vmatprep.subr.bf16.mxu1 %v4985_v9 }
 0x11c   : > { %4396 = vmatmul.mubr.bf16.gmra.mrb[56].mxu1 %v5328_v62  ;;  %v1603_v62 = vld [vmem:[#allocation3] sm:$0xff] }
 0x11d   : > { %4408 = vmatpush3.bf16.msra.mxu1 %v4838_v59  ;;  %4415 = vmatprep.mubr.msk.bf16.mxu1 %vm4986_vm7, %v4985_v9 }
 0x11e   : > { %4409 = vmatprep.subr.bf16.mxu1 %v4985_v9 }
 0x121   : > { %4410 = vmatpush3.bf16.msra.mxu1 %v4839_v43 }
 0x122   : > { %4411 = vmatprep.subr.bf16.mxu1 %v4985_v9 }
 0x125   : > { %4412 = vmatpush3.bf16.msra.mxu1 %v4840_v60 }
 0x126   : > { %4413 = vmatprep.subr.bf16.mxu1 %v4985_v9 }
 0x129   : > { %4414 = vmatpush3.bf16.msra.mxu1 %v4841_v61  ;;  %v2028_v61 = vld [vmem:[#allocation4] sm:$0x1] }
 0x12a   : > { %4427 = vmatprep.subr.bf16.mxu1 %v4985_v9 }
 0x12c   : > { %4416 = vmatmul.mubr.bf16.vlgmr.msra.gmra.mrb[60].mxu1 %v1603_v62  ;;  %v2046_v62 = vld [vmem:[#allocation4 + $0x4] sm:$0x1] }
 0x12d   : > { %4428 = vmatpush3.bf16.msra.mxu1 %v4843_v63  ;;  %4419 = vmatprep.mubr.msk.bf16.mxu1 %vm4986_vm7, %v4985_v9 }
 0x12e   : > { %4429 = vmatprep.subr.bf16.mxu1 %v4985_v9 }
 0x131   : > { %4430 = vmatpush3.bf16.msra.mxu1 %v4845_v0 }
 0x132   : > { %4431 = vmatprep.subr.bf16.mxu1 %v4985_v9 }
 0x134   : > { %4420 = vmatmul.mubr.bf16.gmra.mrb[64].mxu1 %v5411_v19  ;;  %v1764_v19 = vrot.slane %v1737_v23, 4 }
 0x135   : > { %4432 = vmatpush3.bf16.msra.mxu1 %v4847_v2  ;;  %4423 = vmatprep.mubr.msk.bf16.mxu1 %vm4986_vm7, %v4985_v9  ;;  %v2029_v2 = vsel %vm5055_vm2, 0, %v2028_v61 }
 0x136   : > { %4433 = vmatprep.subr.bf16.mxu1 %v4985_v9  ;;  %v1765_v26 = vsel %vm377_vm5, %v1762_v16, %v1764_v19  ;;  %2030 = vst [vmem:[#allocation4] sm:$0x1] %v2029_v2 }
 0x139   : > { %4434 = vmatpush3.bf16.msra.mxu1 %v4849_v3  ;;  %v2047_v3 = vsel %vm5066_vm4, 0, %v2046_v62 }
 0x13a   : > { %4435 = vmatprep.subr.bf16.mxu1 %v4985_v9  ;;  %2048 = vst [vmem:[#allocation4 + $0x4] sm:$0x1] %v2047_v3 }
 0x13c   : > { %4424 = vmatmul.mubr.bf16.gmra.mrb[68].mxu1 %v5431_v25 }
 0x13d   : > { %4436 = vmatpush3.bf16.msra.mxu1 %v4851_v24  ;;  %4443 = vmatprep.mubr.msk.bf16.mxu1 %vm4986_vm7, %v4985_v9 }
 0x13e   : > { %4437 = vmatprep.subr.bf16.mxu1 %v4985_v9 }
 0x13f   : > { %v693_v5 = vpop.f32.mrb[0].mxu1 }
 0x140   : > { %v4277_v6 = vpop.f32.mrb[1].mxu1 }
 0x141   : > { %v696_v35 = vpop.f32.mrb[2].mxu1  ;;  %4438 = vmatpush3.bf16.msra.mxu1 %v4853_v4  ;;  %v2049_v6 = vld [vmem:[#allocation4 + $0xc] sm:$0x1] }
 0x142   : > { %v4278_v10 = vpop.f32.mrb[3].mxu1  ;;  %4439 = vmatprep.subr.bf16.mxu1 %v4985_v9 }
 0x143   : > { %v2050_v10 = vsel %vm5066_vm4, 0, %v2049_v6 }
 0x144   : > { %2051 = vst [vmem:[#allocation4 + $0xc] sm:$0x1] %v2050_v10 }
 0x145   : > { %4440 = vmatpush3.bf16.msra.mxu1 %v4855_v7 }
 0x146   : > { %4441 = vmatprep.subr.bf16.mxu1 %v4985_v9 }
 0x149   : > { %4442 = vmatpush3.bf16.msra.mxu1 %v4857_v12 }
 0x14c   : > { %4444 = vmatmul.mubr.bf16.vlgmr.msra.gmra.mrb[72].mxu1 %v1761_v15  ;;  %v2052_v15 = vld [vmem:[#allocation4 + $0x14] sm:$0x1] }
 0x14d   : > { %4447 = vmatprep.mubr.msk.bf16.mxu1 %vm4986_vm7, %v4985_v9 }
 0x14f   : > { %v709_v17 = vpop.f32.mrb[8].mxu1 }
 0x150   : > { %v4285_v18 = vpop.f32.mrb[9].mxu1 }
 0x151   : > { %v712_v21 = vpop.f32.mrb[10].mxu1 }
 0x152   : > { %v4286_v22 = vpop.f32.mrb[11].mxu1 }
 0x154   : > { %4448 = vmatmul.mubr.bf16.gmra.mrb[76].mxu1 %v1763_v20 }
 0x155   : > { %4451 = vmatprep.mubr.msk.bf16.mxu1 %vm4986_vm7, %v4985_v9 }
 0x15c   : > { %4452 = vmatmul.mubr.bf16.gmra.mrb[80].mxu1 %v1765_v26 }
 0x15f   : > { %v798_v27 = vpop.f32.mrb[12].mxu1 }
 0x160   : > { %v799_v28 = vadd.f32 %v798_v27, %v693_v5  ;;  %v4305_v29 = vpop.f32.mrb[13].mxu1  ;;  %v2031_v5 = vld [vmem:[#allocation4 + $0x8] sm:$0x1] }
 0x161   : > { %v801_v31 = vpop.f32.mrb[14].mxu1  ;;  %v2032_v7 = vsel %vm5055_vm2, 0, %v2031_v5  ;;  %v2055_v29 = vld [vmem:[#allocation4 + $0x1c] sm:$0x1] }
 0x162   : > { %v802_v25 = vadd.f32 %v801_v31, %v696_v35  ;;  %v4306_v32 = vpop.f32.mrb[15].mxu1  ;;  %2033 = vst [vmem:[#allocation4 + $0x8] sm:$0x1] %v2032_v7 }
 0x163   : > { %v2056_v32 = vsel %vm5066_vm4, 0, %v2055_v29 }
 0x164   : > { %2057 = vst [vmem:[#allocation4 + $0x1c] sm:$0x1] %v2056_v32 }
 0x169   : > { %v5598_v53 = vpop.f32.mrb[0].mxu0 }
 0x16a   : > { %v4473_v55 = vpop.f32.mrb[1].mxu0 }
 0x16b   : > { %v5600_v58 = vpop.f32.mrb[2].mxu0 }
 0x16c   : > { %v4474_v59 = vpop.f32.mrb[3].mxu0 }
 0x16f   : > { %v814_v33 = vpop.f32.mrb[16].mxu1 }
 0x170   : > { %v815_v34 = vadd.f32 %v814_v33, %v709_v17  ;;  %v4313_v37 = vpop.f32.mrb[17].mxu1  ;;  %v2035_v17 = vsel %vm5055_vm2, 0, %v2034_v14 }
 0x171   : > { %v817_v38 = vpop.f32.mrb[18].mxu1  ;;  %2036 = vst [vmem:[#allocation4 + $0x10] sm:$0x1] %v2035_v17  ;;  %v2058_v37 = vld [vmem:[#allocation4 + $0x24] sm:$0x1] }
 0x172   : > { %v818_v39 = vadd.f32 %v817_v38, %v712_v21  ;;  %v4314_v41 = vpop.f32.mrb[19].mxu1  ;;  %v2053_v21 = vsel %vm5066_vm4, 0, %v2052_v15 }
 0x173   : > { %2054 = vst [vmem:[#allocation4 + $0x14] sm:$0x1] %v2053_v21  ;;  %v2043_v41 = vld [vmem:[#allocation4 + $0x28] sm:$0x1] }
 0x17f   : > { %v921_v42 = vpop.f32.mrb[20].mxu1 }
 0x180   : > { %v944_v44 = vadd.f32 %v921_v42, %v799_v28  ;;  %v4333_v40 = vpop.f32.mrb[21].mxu1  ;;  %v2037_v28 = vld [vmem:[#allocation4 + $0x18] sm:$0x1]  ;;  %v2061_v42 = vld [vmem:[#allocation4 + $0x2c] sm:$0x1] }
 0x181   : > { %v924_v9 = vpop.f32.mrb[22].mxu1  ;;  %v2062_v40 = vsel %vm5066_vm4, 0, %v2061_v42 }
 0x182   : > { %v945_v45 = vadd.f32 %v924_v9, %v802_v25  ;;  %v4334_v36 = vpop.f32.mrb[23].mxu1  ;;  %v2038_v25 = vsel %vm5055_vm2, 0, %v2037_v28  ;;  %2063 = vst [vmem:[#allocation4 + $0x2c] sm:$0x1] %v2062_v40 }
 0x183   : > { %2039 = vst [vmem:[#allocation4 + $0x18] sm:$0x1] %v2038_v25 }
 0x18f   : > { %v937_v46 = vpop.f32.mrb[24].mxu1 }
 0x190   : > { %v948_v47 = vadd.f32 %v937_v46, %v815_v34  ;;  %v4341_v48 = vpop.f32.mrb[25].mxu1  ;;  %v2040_v34 = vld [vmem:[#allocation4 + $0x20] sm:$0x1] }
 0x191   : > { %v940_v50 = vpop.f32.mrb[26].mxu1  ;;  %v2041_v38 = vsel %vm5055_vm2, 0, %v2040_v34 }
 0x192   : > { %v949_v51 = vadd.f32 %v940_v50, %v818_v39  ;;  %v4342_v52 = vpop.f32.mrb[27].mxu1  ;;  %v2059_v39 = vsel %vm5066_vm4, 0, %v2058_v37  ;;  %2042 = vst [vmem:[#allocation4 + $0x20] sm:$0x1] %v2041_v38 }
 0x193   : > { %2060 = vst [vmem:[#allocation4 + $0x24] sm:$0x1] %v2059_v39 }
 0x19f   : > { %v1184_v54 = vpop.f32.mrb[28].mxu1 }
 0x1a0   : > { %v1207_v56 = vadd.f32 %v1184_v54, %v944_v44  ;;  %v4361_v57 = vpop.f32.mrb[29].mxu1  ;;  %v2044_v44 = vsel %vm5055_vm2, 0, %v2043_v41 }
 0x1a1   : > { %v1187_v30 = vpop.f32.mrb[30].mxu1  ;;  %v5602_v63 = vpop.f32.mrb[4].mxu0  ;;  %2045 = vst [vmem:[#allocation4 + $0x28] sm:$0x1] %v2044_v44 }
 0x1a2   : > { %v1208_v43 = vadd.f32 %v1187_v30, %v945_v45  ;;  %v4362_v60 = vpop.f32.mrb[31].mxu1  ;;  %v4477_v24 = vpop.f32.mrb[5].mxu0 }
 0x1a3   : > { %v5612_v11 = vpop.f32.mrb[6].mxu0 }
 0x1a4   : > { %v4478_v13 = vpop.f32.mrb[7].mxu0 }
 0x1a7   : > { %v1192_v0 = vpop.f32.mrb[4].mxu1 }
 0x1a8   : > { %v4365_v4 = vpop.f32.mrb[5].mxu1 }
 0x1a9   : > { %v1195_v35 = vpop.f32.mrb[6].mxu1  ;;  %v5618_v22 = vpop.f32.mrb[8].mxu0 }
 0x1aa   : > { %v4366_v12 = vpop.f32.mrb[7].mxu1  ;;  %v4481_v19 = vpop.f32.mrb[9].mxu0 }
 0x1ab   : > { %v5620_v31 = vpop.f32.mrb[10].mxu0 }
 0x1ac   : > { %v4482_v33 = vpop.f32.mrb[11].mxu0 }
 0x1af   : > { %v1200_v16 = vpop.f32.mrb[32].mxu1 }
 0x1b0   : > { %v1211_v18 = vadd.f32 %v1200_v16, %v948_v47  ;;  %v4369_v20 = vpop.f32.mrb[33].mxu1 }
 0x1b1   : > { %v1203_v23 = vpop.f32.mrb[34].mxu1 }
 0x1b2   : > { %v1212_v26 = vadd.f32 %v1203_v23, %v949_v51  ;;  %v4370_v27 = vpop.f32.mrb[35].mxu1 }
 0x1bf   : > { %v1361_v9 = vpop.f32.mrb[36].mxu1 }
 0x1c0   : > { %v1388_v45 = vadd.f32 %v1361_v9, %v1207_v56  ;;  %v1363_v36 = vpop.f32.mrb[37].mxu1 }
 0x1c1   : > { %v1364_v46 = vpop.f32.mrb[38].mxu1 }
 0x1c2   : > { %v1389_v47 = vadd.f32 %v1364_v46, %v1208_v43  ;;  %v5634_v48 = vpop.f32.mrb[39].mxu1 }
 0x1c7   : > { %v1370_v50 = vpop.f32.mrb[40].mxu1 }
 0x1c8   : > { %v1390_v51 = vadd.f32 %v1370_v50, %v1192_v0  ;;  %v5636_v52 = vpop.f32.mrb[41].mxu1 }
 0x1c9   : > { %v1374_v54 = vpop.f32.mrb[42].mxu1 }
 0x1ca   : > { %v1391_v55 = vadd.f32 %v1374_v54, %v1195_v35  ;;  %v5638_v57 = vpop.f32.mrb[43].mxu1 }
 0x1cf   : > { %v1380_v30 = vpop.f32.mrb[44].mxu1 }
 0x1d0   : > { %v1392_v8 = vadd.f32 %v1380_v30, %v1211_v18  ;;  %v5640_v59 = vpop.f32.mrb[45].mxu1 }
 0x1d1   : > { %v1384_v60 = vpop.f32.mrb[46].mxu1 }
 0x1d2   : > { %v1393_v61 = vadd.f32 %v1384_v60, %v1212_v26  ;;  %v1386_v56 = vpop.f32.mrb[47].mxu1 }
 0x1df   : > { %v1494_v62 = vpop.f32.mrb[48].mxu1 }
 0x1e0   : > { %v1517_v2 = vadd.f32 %v1494_v62, %v1388_v45  ;;  %v4389_v43 = vpop.f32.mrb[49].mxu1  ;;  %v5645_v45 = vld [vmem:[%s5965_s3] ss:$0 sm:$0xff] }
 0x1e1   : > { %v1497_v3 = vpop.f32.mrb[50].mxu1 }
 0x1e2   : > { %v1518_v24 = vadd.f32 %v1497_v3, %v1389_v47  ;;  %v4390_v4 = vpop.f32.mrb[51].mxu1 }
 0x1e7   : > { %v1502_v0 = vpop.f32.mrb[52].mxu1 }
 0x1e8   : > { %v1519_v5 = vadd.f32 %v1502_v0, %v1390_v51  ;;  %v4393_v6 = vpop.f32.mrb[53].mxu1 }
 0x1e9   : > { %v1505_v7 = vpop.f32.mrb[54].mxu1 }
 0x1ea   : > { %v1520_v35 = vadd.f32 %v1505_v7, %v1391_v55  ;;  %v4394_v10 = vpop.f32.mrb[55].mxu1  ;;  %v2148_v7 = vld [vmem:[#allocation4] sm:$0xf] }
 0x1ef   : > { %v1510_v12 = vpop.f32.mrb[56].mxu1 }
 0x1f0   : > { %v1521_v13 = vadd.f32 %v1510_v12, %v1392_v8  ;;  %v4397_v14 = vpop.f32.mrb[57].mxu1 }
 0x1f1   : > { %v1513_v15 = vpop.f32.mrb[58].mxu1 }
 0x1f2   : > { %v1522_v16 = vadd.f32 %v1513_v15, %v1393_v61  ;;  %v4398_v17 = vpop.f32.mrb[59].mxu1 }
 0x1f3   : > { %v2154_v17 = vld [vmem:[#allocation4 + $0x8] sm:$0xf] }
 0x1ff   : > { %v1705_v18 = vpop.f32.mrb[60].mxu1 }
 0x200   : > { %v1728_v20 = vadd.f32 %v1705_v18, %v1517_v2  ;;  %v4417_v21 = vpop.f32.mrb[61].mxu1  ;;  %v2157_v18 = vld [vmem:[#allocation4 + $0xc] sm:$0x1] }
 0x201   : > { %v1708_v23 = vpop.f32.mrb[62].mxu1 }
 0x202   : > { %v1729_v19 = vadd.f32 %v1708_v23, %v1518_v24  ;;  %v4418_v26 = vpop.f32.mrb[63].mxu1 }
 0x207   : > { %v1713_v27 = vpop.f32.mrb[64].mxu1 }
 0x208   : > { %v1730_v28 = vadd.f32 %v1713_v27, %v1519_v5  ;;  %v4421_v29 = vpop.f32.mrb[65].mxu1 }
 0x209   : > { %v1716_v25 = vpop.f32.mrb[66].mxu1 }
 0x20a   : > { %v1731_v32 = vadd.f32 %v1716_v25, %v1520_v35  ;;  %v4422_v33 = vpop.f32.mrb[67].mxu1  ;;  %v2151_v35 = vld [vmem:[#allocation4 + $0x4] sm:$0x1] }
 0x20f   : > { %v1721_v34 = vpop.f32.mrb[68].mxu1 }
 0x210   : > { %v1732_v37 = vadd.f32 %v1721_v34, %v1521_v13  ;;  %v4425_v38 = vpop.f32.mrb[69].mxu1 }
 0x211   : > { %v1724_v39 = vpop.f32.mrb[70].mxu1 }
 0x212   : > { %v1733_v41 = vadd.f32 %v1724_v39, %v1522_v16  ;;  %v4426_v42 = vpop.f32.mrb[71].mxu1 }
 0x21f   : > { %v1851_v44 = vpop.f32.mrb[72].mxu1 }
 0x220   : > { %v1874_v40 = vadd.f32 %v1851_v44, %v1728_v20  ;;  %v4445_v9 = vpop.f32.mrb[73].mxu1 }
 0x221   : > { %v1854_v36 = vpop.f32.mrb[74].mxu1 }
 0x222   : > { %v2003_v46 = vadd.f32 %v5598_v53, %v1874_v40  ;;  %v1875_v47 = vadd.f32 %v1854_v36, %v1729_v19  ;;  %v4446_v50 = vpop.f32.mrb[75].mxu1 }
 0x223   : > { %v2163_v50 = vld [vmem:[#allocation4 + $0x14] sm:$0x1] }
 0x224   : > { %v2016_v51 = vadd.f32 %v5645_v45, %v2003_v46  ;;  %v2004_v54 = vadd.f32 %v5600_v58, %v1875_v47  ;;  %v2160_v47 = vld [vmem:[#allocation4 + $0x10] sm:$0xf] }
 0x226   : > { %v2022_v55 = vmax.f32 %v2016_v51, 0.0  ;;  %v2017_v30 = vadd.f32 %v5645_v45, %v2004_v54 }
 0x227   : > { %v1859_v8 = vpop.f32.mrb[76].mxu1 }
 0x228   : > { %v4075_v60 = vpack.c.bf16 %v2022_v55, %v2022_v55  ;;  %v2023_v61 = vmax.f32 %v2017_v30, 0.0  ;;  %v1876_v56 = vadd.f32 %v1859_v8, %v1730_v28  ;;  %v4449_v62 = vpop.f32.mrb[77].mxu1 }
 0x229   : > { %v1862_v2 = vpop.f32.mrb[78].mxu1 }
 0x22a   : > { %v2089_v43 = vshrl.u32 %v4075_v60, 16  ;;  %v4076_v3 = vpack.c.bf16 %v2023_v61, %v2023_v61  ;;  %v2005_v24 = vadd.f32 %v5602_v63, %v1876_v56  ;;  %v4450_v53 = vpop.f32.mrb[79].mxu1  ;;  %v1877_v4 = vadd.f32 %v1862_v2, %v1731_v32  ;;  %v2169_v61 = vld [vmem:[#allocation4 + $0x1c] sm:$0x1] }
 0x22b   : > { %v2092_v5 = vshll.u32 %v4075_v60, 16  ;;  %v2166_v60 = vld [vmem:[#allocation4 + $0x18] sm:$0xf] }
 0x22c   : > { %v2091_v0 = vrot.slane %v2089_v43, 7  ;;  %v2097_v6 = vshrl.u32 %v4076_v3, 16  ;;  %v2018_v58 = vadd.f32 %v5645_v45, %v2005_v24  ;;  %v2100_v10 = vshll.u32 %v4076_v3, 16 }
 0x22d   : > { %v2006_v12 = vadd.f32 %v5612_v11, %v1877_v4 }
 0x22e   : > { %v2094_v13 = vor.u32 %v2092_v5, %v2091_v0  ;;  %v2095_v14 = vrot.slane %v2091_v0, 4  ;;  %v2099_v15 = vrot.slane %v2097_v6, 7  ;;  %v2024_v16 = vmax.f32 %v2018_v58, 0.0  ;;  %v2172_v6 = vld [vmem:[#allocation4 + $0x20] sm:$0xf] }
 0x22f   : > { %v2019_v63 = vadd.f32 %v5645_v45, %v2006_v12  ;;  %v1867_v20 = vpop.f32.mrb[80].mxu1  ;;  %v2181_v12 = vld [vmem:[#allocation4 + $0x2c] sm:$0x1] }
 0x230   : > { %v2149_v21 = vsel %vm5125_vm6, %v2094_v13, %v2148_v7  ;;  %v2152_v23 = vsel %vm5055_vm2, %v2095_v14, %v2151_v35  ;;  %v2102_v19 = vor.u32 %v2100_v10, %v2099_v15  ;;  %v2103_v26 = vrot.slane %v2099_v15, 4  ;;  %v4453_v27 = vpop.f32.mrb[81].mxu1  ;;  %v2175_v35 = vld [vmem:[#allocation4 + $0x24] sm:$0x1]  ;;  %v2178_v10 = vld [vmem:[#allocation4 + $0x28] sm:$0xf] }
 0x231   : > { %2150 = vst [vmem:[#allocation4] sm:$0xf] %v2149_v21  ;;  %2153 = vst [vmem:[#allocation4 + $0x4] sm:$0x1] %v2152_v23  ;;  %v4077_v11 = vpack.c.bf16 %v2024_v16, %v2024_v16  ;;  %v2025_v28 = vmax.f32 %v2019_v63, 0.0  ;;  %v1878_v29 = vadd.f32 %v1867_v20, %v1732_v37  ;;  %v1870_v25 = vpop.f32.mrb[82].mxu1 }
 0x232   : > { %v2155_v32 = vsel %vm5125_vm6, %v2102_v19, %v2154_v17  ;;  %v2158_v33 = vsel %vm5055_vm2, %v2103_v26, %v2157_v18  ;;  %v1879_v34 = vadd.f32 %v1870_v25, %v1733_v41  ;;  %v4454_v38 = vpop.f32.mrb[83].mxu1 }
 0x233   : > { %2156 = vst [vmem:[#allocation4 + $0x8] sm:$0xf] %v2155_v32  ;;  %2159 = vst [vmem:[#allocation4 + $0xc] sm:$0x1] %v2158_v33  ;;  %v2105_v39 = vshrl.u32 %v4077_v11, 16  ;;  %v4078_v42 = vpack.c.bf16 %v2025_v28, %v2025_v28  ;;  %v2007_v44 = vadd.f32 %v5618_v22, %v1878_v29  ;;  %v2108_v36 = vshll.u32 %v4077_v11, 16 }
 0x234   : > { %v2008_v40 = vadd.f32 %v5620_v31, %v1879_v34 }
 0x235   : > { %v2107_v9 = vrot.slane %v2105_v39, 7  ;;  %v2113_v37 = vshrl.u32 %v4078_v42, 16  ;;  %v2020_v46 = vadd.f32 %v5645_v45, %v2007_v44  ;;  %v2116_v51 = vshll.u32 %v4078_v42, 16 }
 0x236   : > { %v2021_v54 = vadd.f32 %v5645_v45, %v2008_v40 }
 0x237   : > { %v2110_v41 = vor.u32 %v2108_v36, %v2107_v9  ;;  %v2111_v55 = vrot.slane %v2107_v9, 4  ;;  %v2115_v30 = vrot.slane %v2113_v37, 7  ;;  %v2026_v8 = vmax.f32 %v2020_v46, 0.0 }
 0x238   : > { %v2027_v56 = vmax.f32 %v2021_v54, 0.0  ;;  %v2187_v21 = vld [vmem:[#allocation4] sm:$0xf] (!%p3626_p8)  ;;  %v2190_v23 = vld [vmem:[#allocation4 + $0x4] sm:$0x1] (!%p3626_p8) }
 0x239   : > { %v2161_v22 = vsel %vm5125_vm6, %v2110_v41, %v2160_v47  ;;  %v2164_v31 = vsel %vm5055_vm2, %v2111_v55, %v2163_v50  ;;  %v2118_v62 = vor.u32 %v2116_v51, %v2115_v30  ;;  %v2119_v2 = vrot.slane %v2115_v30, 4 }
 0x23a   : > { %2162 = vst [vmem:[#allocation4 + $0x10] sm:$0xf] %v2161_v22  ;;  %2165 = vst [vmem:[#allocation4 + $0x14] sm:$0x1] %v2164_v31  ;;  %v4079_v43 = vpack.c.bf16 %v2026_v8, %v2026_v8  ;;  %v4080_v3 = vpack.c.bf16 %v2027_v56, %v2027_v56  ;;  %v2188_v19 = vsel (!%p3626_p8), %vm5125_vm6, 0, %v2187_v21  ;;  %v2191_v26 = vsel (!%p3626_p8), %vm5055_vm2, 0, %v2190_v23 }
 0x23b   : > { %v2167_v45 = vsel %vm5125_vm6, %v2118_v62, %v2166_v60  ;;  %v2170_v24 = vsel %vm5055_vm2, %v2119_v2, %v2169_v61  ;;  %2189 = vst [vmem:[#allocation4] sm:$0xf] (!%p3626_p8), %v2188_v19  ;;  %2192 = vst [vmem:[#allocation4 + $0x4] sm:$0x1] (!%p3626_p8), %v2191_v26 }
 0x23c   : > { %2168 = vst [vmem:[#allocation4 + $0x18] sm:$0xf] %v2167_v45  ;;  %2171 = vst [vmem:[#allocation4 + $0x1c] sm:$0x1] %v2170_v24  ;;  %v2121_v53 = vshrl.u32 %v4079_v43, 16  ;;  %v2129_v4 = vshrl.u32 %v4080_v3, 16 }
 0x23d   : > { %v2124_v5 = vshll.u32 %v4079_v43, 16  ;;  %v2132_v7 = vshll.u32 %v4080_v3, 16 }
 0x23e   : > { %v2123_v0 = vrot.slane %v2121_v53, 7  ;;  %v2131_v58 = vrot.slane %v2129_v4, 7  ;;  %2186 = sbr.rel (%p3626_p8) target bundleno = 581 (0x245), region = 64 }
 0x240   : > { %v2126_v13 = vor.u32 %v2124_v5, %v2123_v0  ;;  %v2127_v14 = vrot.slane %v2123_v0, 4  ;;  %v2134_v15 = vor.u32 %v2132_v7, %v2131_v58  ;;  %v2135_v16 = vrot.slane %v2131_v58, 4 }
 0x242   : > { %v2173_v17 = vsel %vm5125_vm6, %v2126_v13, %v2172_v6  ;;  %v2176_v18 = vsel %vm5055_vm2, %v2127_v14, %v2175_v35  ;;  %v2179_v63 = vsel %vm5125_vm6, %v2134_v15, %v2178_v10  ;;  %v2182_v20 = vsel %vm5055_vm2, %v2135_v16, %v2181_v12 }
 0x243   : > { %2174 = vst [vmem:[#allocation4 + $0x20] sm:$0xf] %v2173_v17  ;;  %2177 = vst [vmem:[#allocation4 + $0x24] sm:$0x1] %v2176_v18 }
 0x244   : > { %2180 = vst [vmem:[#allocation4 + $0x28] sm:$0xf] %v2179_v63  ;;  %2183 = vst [vmem:[#allocation4 + $0x2c] sm:$0x1] %v2182_v20 }
 0x245 PF: > { %2195 = sbr.rel (%p3632_p10) target bundleno = 590 (0x24e), region = 68 }
 0x24b   : > { %v2197_v27 = vld [vmem:[#allocation4 + $0x28] sm:$0xf] (!%p3632_p10)  ;;  %v2200_v11 = vld [vmem:[#allocation4 + $0x2c] sm:$0x1] (!%p3632_p10) }
 0x24c   : > { %v2198_v28 = vsel %vm5125_vm6, 0, %v2197_v27  ;;  %v2201_v29 = vsel %vm5055_vm2, 0, %v2200_v11 }
 0x24d   : > { %2199 = vst [vmem:[#allocation4 + $0x28] sm:$0xf] %v2198_v28  ;;  %2202 = vst [vmem:[#allocation4 + $0x2c] sm:$0x1] %v2201_v29 }
 0x24e PF: > { %v4858_v25 = vld [vmem:[%s5966_s4 + $0xc0] sm:$0xff]   ;;  %v4859_v32 = vld [vmem:[%s5966_s4 + $0xc8] sm:$0xff]   ;;  %v4860_v49 = vld [vmem:[%s5966_s4 + $0xd0] sm:$0xff]  }
 0x24f   : > { %4503 = vmatprep.subr.bf16.mxu0 %v4858_v25  ;;  %v4861_v1 = vld [vmem:[%s5966_s4 + $0xd8] sm:$0xff]   ;;  %v2203_v33 = vld [vmem:[#allocation4] sm:$0xf]  ;;  %v4866_v34 = vld [vmem:[#allocation4 + $0x8] ss:$0 sps:$4 sm:$0xff]  }
 0x250   : > { %4504 = vmatpush3.bf16.msra.mxu0 %v4858_v25  ;;  %2204 = vst [vmem:[#allocation5] sm:$0xf] %v2203_v33  ;;  %v2213_v38 = vld [vmem:[#allocation4 + $0x10] sm:$0xf]  ;;  %v4867_v39 = vld [vmem:[#allocation4 + $0x18] ss:$0 sps:$4 sm:$0xff]  }
 0x251   : > { %4505 = vmatprep.subr.bf16.mxu0 %v4859_v32  ;;  %v4862_v42 = vld [vmem:[%s5966_s4 + $0xe0] sm:$0xff]   ;;  %2211 = vst [vmem:[#allocation5] sm:$0xf0] %v4866_v34  ;;  %2214 = vst [vmem:[#allocation5 + $0x8] sm:$0xf] %v2213_v38  ;;  %v4863_v54 = vld [vmem:[%s5966_s4 + $0xe8] sm:$0xff]  }
 0x252   : > { %v4868_v44 = vld [vmem:[#allocation4 + $0x8] sm:$0x1f]   ;;  %2221 = vst [vmem:[#allocation5 + $0x8] sm:$0xf0] %v4867_v39  ;;  %v4869_v40 = vld [vmem:[#allocation4 + $0x10] sm:$0x1f]  }
 0x253   : > { %v2625_v9 = vshrl.u32 %v4868_v44, 16  ;;  %v2628_v36 = vshll.u32 %v4868_v44, 16  ;;  %v2642_v37 = vshrl.u32 %v4869_v40, 16  ;;  %v2644_v46 = vshll.u32 %v4869_v40, 16  ;;  %v4870_v47 = vld [vmem:[#allocation4 + $0x18] sm:$0x1f]  }
 0x254   : > { %4506 = vmatpush3.bf16.msra.mxu0 %v4859_v32  ;;  %v2658_v55 = vshrl.u32 %v4870_v47, 16  ;;  %v2661_v30 = vshll.u32 %v4870_v47, 16  ;;  %v2223_v8 = vld [vmem:[#allocation4 + $0x20] sm:$0xf]  ;;  %v4864_v3 = vld [vmem:[%s5966_s4 + $0xf0] sm:$0xff]   ;;  %v4865_v4 = vld [vmem:[%s5966_s4 + $0xf8] sm:$0xff]  }
 0x255   : > { %4507 = vmatprep.subr.bf16.mxu0 %v4860_v49  ;;  %v2627_v50 = vrot.slane %v2625_v9, 4  ;;  %v2630_v51 = vrot.slane %v2628_v36, 5  ;;  %v2646_v41 = vrot.slane %v2644_v46, 1  ;;  %2224 = vst [vmem:[#allocation5 + $0x10] sm:$0xf] %v2223_v8  ;;  %v4871_v7 = vld [vmem:[%s5966_s4 + $0x180] sm:$0xff]  }
 0x256   : > { %v2660_v31 = vrot.slane %v2658_v55, 4  ;;  %v2663_v62 = vrot.slane %v2661_v30, 5  ;;  %v4880_v5 = vld [vmem:[#allocation4 + $0x28] ss:$0 sps:$4 sm:$0xff]   ;;  %v4881_v6 = vld [vmem:[#allocation4 + $0x20] sm:$0x1f]  }
 0x257   : > { %v2631_v60 = vor.u32 %v2630_v51, %v2627_v50  ;;  %v2647_v22 = vor.u32 %v2646_v41, %v2642_v37  ;;  %2231 = vst [vmem:[#allocation5 + $0x10] sm:$0xf0] %v4880_v5  ;;  %v2675_v35 = vshrl.u32 %v4881_v6, 16  ;;  %v2677_v10 = vshll.u32 %v4881_v6, 16  ;;  %v4872_v14 = vld [vmem:[%s5966_s4 + $0x188] sm:$0xff]   ;;  %v4873_v18 = vld [vmem:[%s5966_s4 + $0x190] sm:$0xff]  }
 0x258   : > { %4508 = vmatpush3.bf16.msra.mxu0 %v4860_v49  ;;  %v2232_v61 = vld [vmem:[#allocation5] sm:$0xff]  ;;  %v2664_v24 = vor.u32 %v2663_v62, %v2660_v31  ;;  %v4889_v17 = vld [vmem:[#allocation4] sm:$0x1f]   ;;  %v4874_v23 = vld [vmem:[%s5966_s4 + $0x198] sm:$0xff]  }
 0x259   : > { %4509 = vmatprep.subr.bf16.mxu0 %v4861_v1  ;;  %v2351_v56 = vld [vmem:[#allocation5] sm:$0xf0]  ;;  %v5713_v2 = vld [vmem:[#allocation5 + $0x8] sm:$0xff]  ;;  %4499 = vmatprep.mubr.bf16.mxu1 %v2232_v61  ;;  %v2679_v12 = vrot.slane %v2677_v10, 1  ;;  %v2609_v63 = vshrl.u32 %v4889_v17, 16  ;;  %v2611_v20 = vshll.u32 %v4889_v17, 16 }
 0x25a   : > { %v2374_v43 = vrot.slane %v2351_v56, 4  ;;  %2633 = vst [vmem:[#allocation5] sm:$0xf0] %v2631_v60  ;;  %v2375_v45 = vrot.slane %v5713_v2, 4  ;;  %2649 = vst [vmem:[#allocation5 + $0x8] sm:$0xf] %v2647_v22 }
 0x25b   : > { %2666 = vst [vmem:[#allocation5 + $0x8] sm:$0xf0] %v2664_v24  ;;  %v2680_v15 = vor.u32 %v2679_v12, %v2675_v35  ;;  %v2613_v21 = vrot.slane %v2611_v20, 1  ;;  %v4890_v26 = vld [vmem:[#allocation4] sm:$0x1e]   ;;  %v4876_v25 = vld [vmem:[%s5966_s4 + $0x1a8] sm:$0xff]  }
 0x25c   : > { %4510 = vmatpush3.bf16.msra.mxu0 %v4861_v1  ;;  %v2376_v53 = vsel %vm377_vm5, %v2374_v43, %v2375_v45  ;;  %v2353_v0 = vld [vmem:[#allocation5 + $0x10] sm:$0xf]  ;;  %v3077_v11 = vrot.slane %v4890_v26, 1  ;;  %v4899_v28 = vld [vmem:[#allocation4 + $0x8] sm:$0x1e]   ;;  %v4878_v44 = vld [vmem:[%s5966_s4 + $0x1b8] sm:$0xff]  }
 0x25d   : > { %4511 = vmatprep.subr.bf16.mxu0 %v4862_v42  ;;  %4519 = vmatprep.mubr.bf16.mxu0 %v2376_v53  ;;  %v2377_v58 = vrot.slane %v2353_v0, 4  ;;  %v2614_v19 = vor.u32 %v2613_v21, %v2609_v63  ;;  %v4875_v27 = vld [vmem:[%s5966_s4 + $0x1a0] sm:$0xff]   ;;  %v4900_v29 = vld [vmem:[#allocation4 + $0x10] sm:$0x1e]   ;;  %v3087_v32 = vrot.slane %v4899_v28, 5  ;;  %v4882_v50 = vld [vmem:[%s5966_s4 + $0x48] sm:$0xff]  }
 0x25e   : > { %v2482_v16 = vld [vmem:[#allocation5 + $0x10] sm:$0xff]  ;;  %v4901_v49 = vld [vmem:[#allocation4 + $0x18] sm:$0x1e]   ;;  %v3097_v33 = vrot.slane %v4900_v29, 1  ;;  %v4911_v40 = vld [vmem:[#allocation4 + $0x28] sm:$0x1f]  }
 0x25f   : > { %v2378_v13 = vsel %vm377_vm5, %v2375_v45, %v2377_v58  ;;  %2682 = vst [vmem:[#allocation5 + $0x10] sm:$0xf] %v2680_v15  ;;  %2616 = vst [vmem:[#allocation5] sm:$0xf] %v2614_v19  ;;  %v3107_v39 = vrot.slane %v4901_v49, 5  ;;  %v2691_v9 = vshrl.u32 %v4911_v40, 16 }
 0x260   : > { %4512 = vmatpush3.bf16.msra.mxu0 %v4862_v42  ;;  %v4877_v42 = vld [vmem:[%s5966_s4 + $0x1b0] sm:$0xff]   ;;  %v2694_v36 = vshll.u32 %v4911_v40, 16  ;;  %v4879_v37 = vld [vmem:[%s5966_s4 + $0x40] sm:$0xff]   ;;  %v4913_v41 = vld [vmem:[#allocation4 + $0x28] sm:$0x1e]  }
 0x261   : > { %4513 = vmatprep.subr.bf16.mxu0 %v4863_v54  ;;  %v5745_v38 = vld [vmem:[#allocation5] sm:$0xf0]  ;;  %v2693_v46 = vrot.slane %v2691_v9, 4  ;;  %v3127_v8 = vrot.slane %v4913_v41, 5  ;;  %v4884_v60 = vld [vmem:[%s5966_s4 + $0x58] sm:$0xff]   ;;  %v4885_v22 = vld [vmem:[%s5966_s4 + $0x60] sm:$0xff]  }
 0x262   : > { %v5743_v1 = vld [vmem:[#allocation5 + $0x8] sm:$0xff]  ;;  %v2696_v47 = vrot.slane %v2694_v36, 5  ;;  %v4883_v55 = vld [vmem:[%s5966_s4 + $0x50] sm:$0xff]   ;;  %v4886_v31 = vld [vmem:[%s5966_s4 + $0x68] sm:$0xff]   ;;  %v2843_v24 = vrot.slane %v5745_v38, 4 }
 0x263   : > { %3099 = vst [vmem:[#allocation5 + $0x8] sm:$0xf] %v3097_v33  ;;  %3109 = vst [vmem:[#allocation5 + $0x8] sm:$0xf0] %v3107_v39  ;;  %v4887_v62 = vld [vmem:[%s5966_s4 + $0x70] sm:$0xff]   ;;  %v4888_v43 = vld [vmem:[%s5966_s4 + $0x78] sm:$0xff]  }
 0x264   : > { %4514 = vmatpush3.bf16.msra.mxu0 %v4863_v54  ;;  %v2697_v51 = vor.u32 %v2696_v47, %v2693_v46  ;;  %v4912_v54 = vld [vmem:[#allocation4 + $0x20] sm:$0x1e]   ;;  %v2844_v53 = vrot.slane %v5743_v1, 4  ;;  %v4892_v0 = vld [vmem:[%s5966_s4 + $0x108] sm:$0xff]   ;;  %v4932_v6 = vld [vmem:[%s5966_s4 + $0x10] sm:$0xff]  }
 0x265   : > { %4515 = vmatprep.subr.bf16.mxu0 %v4864_v3  ;;  %v3117_v30 = vrot.slane %v4912_v54, 1  ;;  %v4891_v45 = vld [vmem:[%s5966_s4 + $0x100] sm:$0xff]   ;;  %v4893_v58 = vld [vmem:[%s5966_s4 + $0x110] sm:$0xff]   ;;  %v4894_v35 = vld [vmem:[%s5966_s4 + $0x118] sm:$0xff]  }
 0x266   : > { %v2700_v34 = vld [vmem:[#allocation5] sm:$0xff]  ;;  %2699 = vst [vmem:[#allocation5 + $0x10] sm:$0xf0] %v2697_v51  ;;  %v5765_v61 = vld [vmem:[#allocation5 + $0x10] sm:$0xf]  ;;  %v2845_v5 = vsel %vm377_vm5, %v2843_v24, %v2844_v53  ;;  %v4942_v17 = vld [vmem:[%s5966_s4 + $0x38] sm:$0xff]  }
 0x267   : > { %3079 = vst [vmem:[#allocation5] sm:$0xf] %v3077_v11  ;;  %3089 = vst [vmem:[#allocation5] sm:$0xf0] %v3087_v32  ;;  %v4936_v10 = vld [vmem:[%s5966_s4 + $0x20] sm:$0xff]   ;;  %v4940_v15 = vld [vmem:[%s5966_s4 + $0x30] sm:$0xff]  }
 0x268   : > { %4516 = vmatpush3.bf16.msra.mxu0 %v4864_v3  ;;  %v4928_v3 = vld [vmem:[%s5966_s4] sm:$0xff]   ;;  %v2846_v63 = vrot.slane %v5765_v61, 4  ;;  %v4904_v19 = vld [vmem:[%s5966_s4 + $0x1d0] sm:$0xff]   ;;  %v4909_v28 = vld [vmem:[%s5966_s4 + $0x1f8] sm:$0xff]  }
 0x269   : > { %4517 = vmatprep.subr.bf16.mxu0 %v4865_v4  ;;  %4483 = vmatprep.subr.bf16.mxu1 %v4928_v3  ;;  %v4895_v12 = vld [vmem:[%s5966_s4 + $0x120] sm:$0xff]   ;;  %v4908_v11 = vld [vmem:[%s5966_s4 + $0x1f0] sm:$0xff]   ;;  %v4920_v39 = vld [vmem:[%s5966_s4 + $0xb8] sm:$0xff]  }
 0x26a   : > { %4484 = vmatpush3.bf16.msra.mxu1 %v4928_v3  ;;  %v4902_v20 = vld [vmem:[%s5966_s4 + $0x1c0] sm:$0xff]   ;;  %v2847_v21 = vsel %vm377_vm5, %v2844_v53, %v2846_v63  ;;  %v4915_v49 = vld [vmem:[%s5966_s4 + $0x90] sm:$0xff]   ;;  %v4926_v54 = vld [vmem:[%s5966_s4 + $0x168] sm:$0xff]  }
 0x26b   : > { %v4906_v26 = vld [vmem:[%s5966_s4 + $0x1e0] sm:$0xff]   ;;  %v4919_v38 = vld [vmem:[%s5966_s4 + $0xb0] sm:$0xff]  }
 0x26c   : > { %4518 = vmatpush3.bf16.msra.mxu0 %v4865_v4  ;;  %v4930_v4 = vld [vmem:[%s5966_s4 + $0x8] sm:$0xff]   ;;  %v4910_v29 = vld [vmem:[%s5966_s4 + $0x80] sm:$0xff]   ;;  %v4923_v47 = vld [vmem:[%s5966_s4 + $0x150] sm:$0xff]  }
 0x26d   : > { %4523 = vmatprep.subr.bf16.mxu0 %v4871_v7  ;;  %v5767_v56 = vld [vmem:[#allocation5 + $0x10] sm:$0xff]  ;;  %4485 = vmatprep.subr.bf16.mxu1 %v4930_v4  ;;  %v4927_v41 = vld [vmem:[%s5966_s4 + $0x170] sm:$0xff]  }
 0x26e   : > { %3119 = vst [vmem:[#allocation5 + $0x10] sm:$0xf] %v3117_v30  ;;  %3129 = vst [vmem:[#allocation5 + $0x10] sm:$0xf0] %v3127_v8  ;;  %4486 = vmatpush3.bf16.msra.mxu1 %v4930_v4  ;;  %v3130_v32 = vld [vmem:[#allocation5] sm:$0xff]  ;;  %v4917_v33 = vld [vmem:[%s5966_s4 + $0xa0] sm:$0xff]  }
 0x26f   : > { %4520 = vmatmul.mubr.bf16.vlgmr.msra.gmra.mrb[12].mxu0 %v2378_v13  ;;  %4487 = vmatprep.subr.bf16.mxu1 %v4932_v6  ;;  %v4938_v13 = vld [vmem:[%s5966_s4 + $0x28] sm:$0xff]   ;;  %v4921_v40 = vld [vmem:[%s5966_s4 + $0x140] sm:$0xff]   ;;  %v4943_v3 = vld [vmem:[%s5966_s4 + $0x230] sm:$0xff]  }
 0x270   : > { %4524 = vmatpush3.bf16.msra.mxu0 %v4871_v7  ;;  %4539 = vmatprep.mubr.bf16.mxu0 %v5713_v2  ;;  %v4934_v7 = vld [vmem:[%s5966_s4 + $0x18] sm:$0xff]   ;;  %v4925_v51 = vld [vmem:[%s5966_s4 + $0x160] sm:$0xff]  }
 0x271   : > { %4525 = vmatprep.subr.bf16.mxu0 %v4872_v14 }
 0x272   : > { %4488 = vmatpush3.bf16.msra.mxu1 %v4932_v6 }
 0x273   : > { %4489 = vmatprep.subr.bf16.mxu1 %v4934_v7 }
 0x274   : > { %4526 = vmatpush3.bf16.msra.mxu0 %v4872_v14  ;;  %v4896_v14 = vld [vmem:[%s5966_s4 + $0x128] sm:$0xff]  }
 0x275   : > { %4527 = vmatprep.subr.bf16.mxu0 %v4873_v18  ;;  %v3252_v30 = vld [vmem:[#allocation5 + $0x10] sm:$0xf] }
 0x276   : > { %4490 = vmatpush3.bf16.msra.mxu1 %v4934_v7  ;;  %v3276_v8 = vrot.slane %v3252_v30, 4  ;;  %v3381_v24 = vld [vmem:[#allocation5 + $0x10] sm:$0xff] }
 0x277   : > { %4491 = vmatprep.subr.bf16.mxu1 %v4936_v10 }
 0x278   : > { %4528 = vmatpush3.bf16.msra.mxu0 %v4873_v18  ;;  %v4898_v18 = vld [vmem:[%s5966_s4 + $0x138] sm:$0xff]  }
 0x279   : > { %4529 = vmatprep.subr.bf16.mxu0 %v4874_v23 }
 0x27a   : > { %4492 = vmatpush3.bf16.msra.mxu1 %v4936_v10 }
 0x27b   : > { %4493 = vmatprep.subr.bf16.mxu1 %v4938_v13 }
 0x27c   : > { %4530 = vmatpush3.bf16.msra.mxu0 %v4874_v23  ;;  %v4903_v23 = vld [vmem:[%s5966_s4 + $0x1c8] sm:$0xff]  }
 0x27d   : > { %4531 = vmatprep.subr.bf16.mxu0 %v4875_v27 }
 0x27e   : > { %4494 = vmatpush3.bf16.msra.mxu1 %v4938_v13 }
 0x27f   : > { %4495 = vmatprep.subr.bf16.mxu1 %v4940_v15 }
 0x280   : > { %4532 = vmatpush3.bf16.msra.mxu0 %v4875_v27  ;;  %v4907_v27 = vld [vmem:[%s5966_s4 + $0x1e8] sm:$0xff]  }
 0x281   : > { %4533 = vmatprep.subr.bf16.mxu0 %v4876_v25 }
 0x282   : > { %4496 = vmatpush3.bf16.msra.mxu1 %v4940_v15 }
 0x283   : > { %4497 = vmatprep.subr.bf16.mxu1 %v4942_v17 }
 0x284   : > { %4534 = vmatpush3.bf16.msra.mxu0 %v4876_v25  ;;  %v4914_v25 = vld [vmem:[%s5966_s4 + $0x88] sm:$0xff]  }
 0x285   : > { %4535 = vmatprep.subr.bf16.mxu0 %v4877_v42 }
 0x286   : > { %4498 = vmatpush3.bf16.msra.mxu1 %v4942_v17 }
 0x288   : > { %4536 = vmatpush3.bf16.msra.mxu0 %v4877_v42  ;;  %v3250_v42 = vld [vmem:[#allocation5] sm:$0xf0] }
 0x289   : > { %4537 = vmatprep.subr.bf16.mxu0 %v4878_v44  ;;  %4500 = vmatmul.mubr.bf16.vlgmr.msra.gmra.mrb[84].mxu1 %v5713_v2  ;;  %v4905_v2 = vld [vmem:[%s5966_s4 + $0x1d8] sm:$0xff]   ;;  %v3273_v9 = vrot.slane %v3250_v42, 4 }
 0x28c   : > { %4538 = vmatpush3.bf16.msra.mxu0 %v4878_v44  ;;  %v3131_v44 = vld [vmem:[#allocation5 + $0x8] sm:$0xff] }
 0x28d   : > { %4543 = vmatprep.subr.bf16.mxu0 %v4879_v37  ;;  %v3274_v36 = vrot.slane %v3131_v44, 4 }
 0x28f   : > { %4540 = vmatmul.mubr.bf16.vlgmr.msra.gmra.mrb[12].mxu0 %v2482_v16  ;;  %v4897_v16 = vld [vmem:[%s5966_s4 + $0x130] sm:$0xff]   ;;  %v3275_v46 = vsel %vm377_vm5, %v3273_v9, %v3274_v36  ;;  %v3277_v61 = vsel %vm377_vm5, %v3274_v36, %v3276_v8 }
 0x290   : > { %4544 = vmatpush3.bf16.msra.mxu0 %v4879_v37  ;;  %4559 = vmatprep.mubr.bf16.mxu0 %v2700_v34  ;;  %v4918_v34 = vld [vmem:[%s5966_s4 + $0xa8] sm:$0xff]  }
 0x291   : > { %4545 = vmatprep.subr.bf16.mxu0 %v4882_v50  ;;  %v4922_v37 = vld [vmem:[%s5966_s4 + $0x148] sm:$0xff]  }
 0x294   : > { %4546 = vmatpush3.bf16.msra.mxu0 %v4882_v50  ;;  %v4924_v50 = vld [vmem:[%s5966_s4 + $0x158] sm:$0xff]  }
 0x295   : > { %4547 = vmatprep.subr.bf16.mxu0 %v4883_v55 }
 0x298   : > { %4548 = vmatpush3.bf16.msra.mxu0 %v4883_v55  ;;  %v4929_v55 = vld [vmem:[%s5966_s4 + $0x178] sm:$0xff]  }
 0x299   : > { %4549 = vmatprep.subr.bf16.mxu0 %v4884_v60 }
 0x29c   : > { %4550 = vmatpush3.bf16.msra.mxu0 %v4884_v60  ;;  %v4931_v60 = vld [vmem:[%s5966_s4 + $0x200] sm:$0xff]  }
 0x29d   : > { %4551 = vmatprep.subr.bf16.mxu0 %v4885_v22 }
 0x2a0   : > { %4552 = vmatpush3.bf16.msra.mxu0 %v4885_v22  ;;  %v4935_v22 = vld [vmem:[%s5966_s4 + $0x210] sm:$0xff]  }
 0x2a1   : > { %4553 = vmatprep.subr.bf16.mxu0 %v4886_v31 }
 0x2a4   : > { %4554 = vmatpush3.bf16.msra.mxu0 %v4886_v31  ;;  %v4937_v31 = vld [vmem:[%s5966_s4 + $0x218] sm:$0xff]  }
 0x2a5   : > { %4555 = vmatprep.subr.bf16.mxu0 %v4887_v62 }
 0x2a8   : > { %4556 = vmatpush3.bf16.msra.mxu0 %v4887_v62  ;;  %v4939_v62 = vld [vmem:[%s5966_s4 + $0x220] sm:$0xff]  }
 0x2a9   : > { %4557 = vmatprep.subr.bf16.mxu0 %v4888_v43 }
 0x2ac   : > { %4558 = vmatpush3.bf16.msra.mxu0 %v4888_v43  ;;  %v4941_v43 = vld [vmem:[%s5966_s4 + $0x228] sm:$0xff]  }
 0x2ad   : > { %4563 = vmatprep.subr.bf16.mxu0 %v4891_v45 }
 0x2af   : > { %4560 = vmatmul.mubr.bf16.vlgmr.msra.gmra.mrb[12].mxu0 %v5743_v1 }
 0x2b0   : > { %4564 = vmatpush3.bf16.msra.mxu0 %v4891_v45  ;;  %4579 = vmatprep.mubr.bf16.mxu0 %v2845_v5  ;;  %v4944_v45 = vld [vmem:[%s5966_s4 + $0x238] sm:$0xff]  }
 0x2b1   : > { %4565 = vmatprep.subr.bf16.mxu0 %v4892_v0 }
 0x2b4   : > { %4566 = vmatpush3.bf16.msra.mxu0 %v4892_v0 }
 0x2b5   : > { %4567 = vmatprep.subr.bf16.mxu0 %v4893_v58 }
 0x2b8   : > { %4568 = vmatpush3.bf16.msra.mxu0 %v4893_v58 }
 0x2b9   : > { %4569 = vmatprep.subr.bf16.mxu0 %v4894_v35 }
 0x2bc   : > { %4570 = vmatpush3.bf16.msra.mxu0 %v4894_v35  ;;  %v4069_v35 = vld [vmem:[%s5967_s5] ss:$0 sm:$0xff] }
 0x2bd   : > { %4571 = vmatprep.subr.bf16.mxu0 %v4895_v12 }
 0x2c0   : > { %4572 = vmatpush3.bf16.msra.mxu0 %v4895_v12 }
 0x2c1   : > { %4573 = vmatprep.subr.bf16.mxu0 %v4896_v14 }
 0x2c4   : > { %4574 = vmatpush3.bf16.msra.mxu0 %v4896_v14 }
 0x2c5   : > { %4575 = vmatprep.subr.bf16.mxu0 %v4897_v16 }
 0x2c8   : > { %4576 = vmatpush3.bf16.msra.mxu0 %v4897_v16 }
 0x2c9   : > { %4577 = vmatprep.subr.bf16.mxu0 %v4898_v18 }
 0x2cc   : > { %4578 = vmatpush3.bf16.msra.mxu0 %v4898_v18 }
 0x2cd   : > { %4583 = vmatprep.subr.bf16.mxu0 %v4902_v20 }
 0x2cf   : > { %4580 = vmatmul.mubr.bf16.vlgmr.msra.gmra.mrb[12].mxu0 %v2847_v21 }
 0x2d0   : > { %4584 = vmatpush3.bf16.msra.mxu0 %v4902_v20  ;;  %4599 = vmatprep.mubr.bf16.mxu0 %v5743_v1  ;;  %v4916_v1 = vld [vmem:[%s5966_s4 + $0x98] sm:$0xff]  }
 0x2d1   : > { %4585 = vmatprep.subr.bf16.mxu0 %v4903_v23 }
 0x2d4   : > { %4586 = vmatpush3.bf16.msra.mxu0 %v4903_v23 }
 0x2d5   : > { %4587 = vmatprep.subr.bf16.mxu0 %v4904_v19 }
 0x2d8   : > { %4588 = vmatpush3.bf16.msra.mxu0 %v4904_v19 }
 0x2d9   : > { %4589 = vmatprep.subr.bf16.mxu0 %v4905_v2 }
 0x2dc   : > { %4590 = vmatpush3.bf16.msra.mxu0 %v4905_v2 }
 0x2dd   : > { %4591 = vmatprep.subr.bf16.mxu0 %v4906_v26 }
 0x2e0   : > { %4592 = vmatpush3.bf16.msra.mxu0 %v4906_v26 }
 0x2e1   : > { %4593 = vmatprep.subr.bf16.mxu0 %v4907_v27 }
 0x2e4   : > { %4594 = vmatpush3.bf16.msra.mxu0 %v4907_v27 }
 0x2e5   : > { %4595 = vmatprep.subr.bf16.mxu0 %v4908_v11 }
 0x2e8   : > { %4596 = vmatpush3.bf16.msra.mxu0 %v4908_v11 }
 0x2e9   : > { %4597 = vmatprep.subr.bf16.mxu0 %v4909_v28 }
 0x2ec   : > { %4598 = vmatpush3.bf16.msra.mxu0 %v4909_v28 }
 0x2ed   : > { %4603 = vmatprep.subr.bf16.mxu0 %v4910_v29 }
 0x2ef   : > { %4600 = vmatmul.mubr.bf16.vlgmr.msra.gmra.mrb[12].mxu0 %v5767_v56  ;;  %v4933_v56 = vld [vmem:[%s5966_s4 + $0x208] sm:$0xff]  }
 0x2f0   : > { %4604 = vmatpush3.bf16.msra.mxu0 %v4910_v29  ;;  %4619 = vmatprep.mubr.bf16.mxu0 %v3130_v32 }
 0x2f1   : > { %4605 = vmatprep.subr.bf16.mxu0 %v4914_v25 }
 0x2f4   : > { %4606 = vmatpush3.bf16.msra.mxu0 %v4914_v25 }
 0x2f5   : > { %4607 = vmatprep.subr.bf16.mxu0 %v4915_v49 }
 0x2f8   : > { %4608 = vmatpush3.bf16.msra.mxu0 %v4915_v49 }
 0x2f9   : > { %4609 = vmatprep.subr.bf16.mxu0 %v4916_v1 }
 0x2fc   : > { %4610 = vmatpush3.bf16.msra.mxu0 %v4916_v1 }
 0x2fd   : > { %4611 = vmatprep.subr.bf16.mxu0 %v4917_v33 }
 0x300   : > { %4612 = vmatpush3.bf16.msra.mxu0 %v4917_v33 }
 0x301   : > { %4613 = vmatprep.subr.bf16.mxu0 %v4918_v34 }
 0x304   : > { %4614 = vmatpush3.bf16.msra.mxu0 %v4918_v34 }
 0x305   : > { %4615 = vmatprep.subr.bf16.mxu0 %v4919_v38 }
 0x308   : > { %4616 = vmatpush3.bf16.msra.mxu0 %v4919_v38 }
 0x309   : > { %4617 = vmatprep.subr.bf16.mxu0 %v4920_v39 }
 0x30c   : > { %4618 = vmatpush3.bf16.msra.mxu0 %v4920_v39 }
 0x30d   : > { %4623 = vmatprep.subr.bf16.mxu0 %v4921_v40 }
 0x30f   : > { %4620 = vmatmul.mubr.bf16.vlgmr.msra.gmra.mrb[12].mxu0 %v3131_v44 }
 0x310   : > { %4624 = vmatpush3.bf16.msra.mxu0 %v4921_v40  ;;  %4639 = vmatprep.mubr.bf16.mxu0 %v3275_v46 }
 0x311   : > { %4625 = vmatprep.subr.bf16.mxu0 %v4922_v37 }
 0x314   : > { %4626 = vmatpush3.bf16.msra.mxu0 %v4922_v37 }
 0x315   : > { %4627 = vmatprep.subr.bf16.mxu0 %v4923_v47 }
 0x318   : > { %4628 = vmatpush3.bf16.msra.mxu0 %v4923_v47 }
 0x319   : > { %4629 = vmatprep.subr.bf16.mxu0 %v4924_v50 }
 0x31c   : > { %4630 = vmatpush3.bf16.msra.mxu0 %v4924_v50 }
 0x31d   : > { %4631 = vmatprep.subr.bf16.mxu0 %v4925_v51 }
 0x320   : > { %4632 = vmatpush3.bf16.msra.mxu0 %v4925_v51 }
 0x321   : > { %4633 = vmatprep.subr.bf16.mxu0 %v4926_v54 }
 0x324   : > { %4634 = vmatpush3.bf16.msra.mxu0 %v4926_v54 }
 0x325   : > { %4635 = vmatprep.subr.bf16.mxu0 %v4927_v41 }
 0x328   : > { %4636 = vmatpush3.bf16.msra.mxu0 %v4927_v41 }
 0x329   : > { %4637 = vmatprep.subr.bf16.mxu0 %v4929_v55 }
 0x32c   : > { %4638 = vmatpush3.bf16.msra.mxu0 %v4929_v55 }
 0x32d   : > { %4643 = vmatprep.subr.bf16.mxu0 %v4931_v60 }
 0x32f   : > { %4640 = vmatmul.mubr.bf16.vlgmr.msra.gmra.mrb[12].mxu0 %v3277_v61 }
 0x330   : > { %4644 = vmatpush3.bf16.msra.mxu0 %v4931_v60  ;;  %4659 = vmatprep.mubr.bf16.mxu0 %v3131_v44 }
 0x331   : > { %4645 = vmatprep.subr.bf16.mxu0 %v4933_v56 }
 0x334   : > { %4646 = vmatpush3.bf16.msra.mxu0 %v4933_v56 }
 0x335   : > { %4647 = vmatprep.subr.bf16.mxu0 %v4935_v22 }
 0x338   : > { %4648 = vmatpush3.bf16.msra.mxu0 %v4935_v22 }
 0x339   : > { %4649 = vmatprep.subr.bf16.mxu0 %v4937_v31 }
 0x33c   : > { %4650 = vmatpush3.bf16.msra.mxu0 %v4937_v31 }
 0x33d   : > { %4651 = vmatprep.subr.bf16.mxu0 %v4939_v62 }
 0x340   : > { %4652 = vmatpush3.bf16.msra.mxu0 %v4939_v62 }
 0x341   : > { %4653 = vmatprep.subr.bf16.mxu0 %v4941_v43 }
 0x344   : > { %4654 = vmatpush3.bf16.msra.mxu0 %v4941_v43 }
 0x345   : > { %4655 = vmatprep.subr.bf16.mxu0 %v4943_v3 }
 0x348   : > { %4656 = vmatpush3.bf16.msra.mxu0 %v4943_v3 }
 0x349   : > { %4657 = vmatprep.subr.bf16.mxu0 %v4944_v45 }
 0x34c   : > { %4658 = vmatpush3.bf16.msra.mxu0 %v4944_v45 }
 0x34f   : > { %4660 = vmatmul.mubr.bf16.vlgmr.msra.gmra.mrb[12].mxu0 %v3381_v24 }
 0x35c   : > { %v4501_v53 = vpop.f32.mrb[84].mxu1 }
 0x35d   : > { %v2332_v4 = vpop.f32.mrb[85].mxu1  ;;  %v2349_v6 = vadd.f32 %v4501_v53, %v5638_v57 }
 0x35e   : > { %v4502_v0 = vpop.f32.mrb[86].mxu1  ;;  %v2347_v58 = vadd.f32 %v2332_v4, %v5634_v48 }
 0x35f   : > { %v2335_v5 = vpop.f32.mrb[87].mxu1  ;;  %v2350_v10 = vadd.f32 %v4502_v0, %v5640_v59 }
 0x360   : > { %v2348_v14 = vadd.f32 %v2335_v5, %v5636_v52 }
 0x422   : > { %v4661_v7 = vpop.f32.mrb[12].mxu0 }
 0x423   : > { %v4663_v12 = vadd.f32 %v4661_v7, %v2349_v6  ;;  %v3481_v13 = vpop.f32.mrb[13].mxu0 }
 0x424   : > { %v4664_v15 = vadd.f32 %v3481_v13, %v2347_v58  ;;  %v4662_v16 = vpop.f32.mrb[14].mxu0 }
 0x425   : > { %v3509_v57 = vadd.f32 %v4663_v12, %v4069_v35  ;;  %v4665_v17 = vadd.f32 %v4662_v16, %v2350_v10  ;;  %v3484_v48 = vpop.f32.mrb[15].mxu0 }
 0x426   : > { %v3507_v18 = vadd.f32 %v4664_v15, %v4069_v35  ;;  %v4666_v63 = vadd.f32 %v3484_v48, %v2348_v14 }
 0x427   : > { %v3513_v20 = vmax.f32 %v3509_v57, 0.0  ;;  %v3510_v21 = vadd.f32 %v4665_v17, %v4069_v35 }
 0x428   : > { %v3511_v23 = vmax.f32 %v3507_v18, 0.0  ;;  %v3508_v19 = vadd.f32 %v4666_v63, %v4069_v35 }
 0x429   : > { %3517 = vst [vmem:[%s5119_s17 + $0x10] sm:$0xff] %v3513_v20  ;;  %v3514_v59 = vmax.f32 %v3510_v21, 0.0 }
 0x42a   : > { %3515 = vst [vmem:[%s5119_s17] sm:$0xff] %v3511_v23  ;;  %v3512_v2 = vmax.f32 %v3508_v19, 0.0 }
 0x42b   : > { %3518 = vst [vmem:[%s5119_s17 + $0x18] sm:$0xff] %v3514_v59 }
 0x42c   : > { %3516 = vst [vmem:[%s5119_s17 + $0x8] sm:$0xff] %v3512_v2 }
 0x42d PF: > { %s16_s25 = sadd.s32 1, %s4983_s25   ;;  %s5975_s21 = smov %s4975_s23 }
 0x42e   : > { %p13_p11 = scmp.ge.s32.totalorder %s16_s25, 6   ;;  %s5976_s22 = smov %s4979_s24 }
 0x42f   : > { %s5977_s23 = smov %s5980_s26  ;;  %s5978_s24 = smov %s5984_s27 }
 0x430   :  { %15 = sbr.rel (!%p13_p11) target bundleno = 3 (0x3), region = 131 }

</bundles_post_ra>
